<compile_context>
chip_gen: v7x
topology: tpu7x:2x2x1
jax: 0.10.0
libtpu: 0.0.40
codegen_flags: <defaults>
</compile_context>

<pallas_src>
import jax
import jax.numpy as jnp
from functools import partial
from jax.experimental import pallas as pl
from jax.experimental.pallas import tpu as pltpu

# ---------------- config ----------------
BATCH = 2
SEQ = 16
HIDDEN = 32
NUM_HEADS = 32                      # head_size = 1 (see NOTE above)
HEAD_SIZE = HIDDEN // NUM_HEADS
INTERMEDIATE = 64
LN_EPS = 1e-12
SCALE = 1.0 / (HEAD_SIZE ** 0.5)


# ---------------- Pallas kernel body ----------------
def _encoder_body(x_ref, mask_ref, wqkv_ref, bqkv_ref, wo_ref, w1_ref, w2_ref,
                  cb1_ref, vecs_ref, out_ref, qkv_scr, ctx_scr, attn_ref=None):
    x = x_ref[...]                                    # (B*S, H) f32
    vecs = vecs_ref[...]                              # (6, H)   f32
    bo  = vecs[0:1, :]
    g1  = vecs[1:2, :]
    be1 = vecs[2:3, :]
    cb2 = vecs[3:4, :]
    g2  = vecs[4:5, :]
    be2 = vecs[5:6, :]

    # --- fused Q/K/V projection: one bf16 MXU GEMM over all B*S rows ---
    qkv_scr[...] = (jnp.dot(x.astype(jnp.bfloat16), wqkv_ref[...],
                            preferred_element_type=jnp.float32)
                    + bqkv_ref[...])                  # (B*S, 3H) f32

    # --- scaled dot-product attention, head_size == 1, (S_q, S_k, H) layout ---
    # S_k on sublanes / H on lanes -> softmax reductions are sublane (XLU) ops.
    # fori_loop(unroll=True) + per-iteration stores bound live ranges to one batch.
    def attend(b, carry):
        row = pl.multiple_of(b * SEQ, SEQ)
        qb = qkv_scr[pl.ds(row, SEQ), 0 * HIDDEN:1 * HIDDEN]      # (S, H)
        kb = qkv_scr[pl.ds(row, SEQ), 1 * HIDDEN:2 * HIDDEN]      # (S, H)
        vb = qkv_scr[pl.ds(row, SEQ), 2 * HIDDEN:3 * HIDDEN]      # (S, H)

        # build -1e9 bias in-register from the compact int mask (no padded DMA)
        neg = jnp.where(mask_ref[b] != 0, jnp.float32(-1e9),
                        jnp.float32(0.0))                          # (S_q, S_k)
        scores = qb[:, None, :] * kb[None, :, :] * SCALE + neg[:, :, None]

        m = jnp.max(scores, axis=1, keepdims=True)                 # sublane reduce
        e = jnp.exp(scores - m)
        denom = jnp.sum(e, axis=1, keepdims=True)
        attn = e * pl.reciprocal(denom, approx=True)               # (S_q, S_k, H)
        if attn_ref is not None:
            attn_ref[b] = attn          # optional probs output (kernel-native layout)
        # dropout(attn) -> identity (eval mode)
        ctx_scr[pl.ds(row, SEQ), :] = jnp.sum(attn * vb[None, :, :], axis=1)
        return carry

    jax.lax.fori_loop(0, BATCH, attend, 0, unroll=True)

    ctx = ctx_scr[...]                                             # (B*S, H)
    att_out = jnp.dot(ctx.astype(jnp.bfloat16), wo_ref[...],
                      preferred_element_type=jnp.float32) + bo
    # dropout(att_out) -> identity (eval mode)

    # --- residual + LayerNorm1 ---
    h1 = x + att_out
    mu1 = jnp.mean(h1, axis=-1, keepdims=True)
    var1 = jnp.mean((h1 - mu1) ** 2, axis=-1, keepdims=True)
    ln1 = (h1 - mu1) * jax.lax.rsqrt(var1 + LN_EPS) * g1 + be1

    # --- position-wise FFN (Conv1d kernel_size=1 == per-position Linear) ---
    f = jnp.dot(ln1.astype(jnp.bfloat16), w1_ref[...],
                preferred_element_type=jnp.float32) + cb1_ref[...]
    # tanh GELU routes through the (otherwise idle) EUP; tiny deviation vs erf GELU.
    f = jax.nn.gelu(f, approximate=True)
    f2 = jnp.dot(f.astype(jnp.bfloat16), w2_ref[...],
                 preferred_element_type=jnp.float32) + cb2
    # dropout(ffn) -> identity (eval mode)

    # --- residual + LayerNorm2 ---
    h2 = f2 + ln1
    mu2 = jnp.mean(h2, axis=-1, keepdims=True)
    var2 = jnp.mean((h2 - mu2) ** 2, axis=-1, keepdims=True)
    out_ref[...] = (h2 - mu2) * jax.lax.rsqrt(var2 + LN_EPS) * g2 + be2


def _encoder_kernel(x_ref, mask_ref, wqkv_ref, bqkv_ref, wo_ref, w1_ref, w2_ref,
                    cb1_ref, vecs_ref, out_ref, qkv_scr, ctx_scr):
    _encoder_body(x_ref, mask_ref, wqkv_ref, bqkv_ref, wo_ref, w1_ref, w2_ref,
                  cb1_ref, vecs_ref, out_ref, qkv_scr, ctx_scr, attn_ref=None)


def _encoder_kernel_with_probs(x_ref, mask_ref, wqkv_ref, bqkv_ref, wo_ref, w1_ref,
                               w2_ref, cb1_ref, vecs_ref, out_ref, attn_ref,
                               qkv_scr, ctx_scr):
    _encoder_body(x_ref, mask_ref, wqkv_ref, bqkv_ref, wo_ref, w1_ref, w2_ref,
                  cb1_ref, vecs_ref, out_ref, qkv_scr, ctx_scr, attn_ref=attn_ref)


# ---------------- one-time parameter preparation (NOT per call) ----------------
def prepare_params(params):
    """Fuse / cast the 16 small parameter tensors once, at parameter-load time."""
    (wq, bq, wk, bk, wv, bv, wo, bo, g1, be1, w1, cb1, w2, cb2, g2, be2) = params
    wqkv = jnp.concatenate([wq, wk, wv], axis=1).astype(jnp.bfloat16)   # (H, 3H)
    bqkv = jnp.concatenate([bq, bk, bv], axis=1).astype(jnp.float32)    # (1, 3H)
    vecs = jnp.concatenate([bo, g1, be1, cb2, g2, be2],
                           axis=0).astype(jnp.float32)                  # (6, H)
    return (wqkv, bqkv,
            wo.astype(jnp.bfloat16), w1.astype(jnp.bfloat16),
            w2.astype(jnp.bfloat16),
            cb1.astype(jnp.float32), vecs)


# ---------------- jitted wrapper ----------------
@partial(jax.jit, static_argnames=("return_attn_prob",))
def encoder_layer(x, attn_mask, prepared, *, return_attn_prob=False):
    """x: (B,S,H) f32; attn_mask: (B,S,S) bool (True = masked).
    Returns out (B,S,H); if return_attn_prob, also attention probabilities in the
    kernel-native (B, S_q, S_k, H==NH) layout (no transpose dispatch in the jit)."""
    B, S, H = x.shape
    assert (B, S, H) == (BATCH, SEQ, HIDDEN)
    wqkv, bqkv, wo, w1, w2, cb1, vecs = prepared

    x_flat = x.reshape(B * S, H)                     # contiguous reshape (free in HBM)
    mask_i32 = attn_mask.astype(jnp.int32)           # compact (B,S,S); bias built in-kernel

    vmem = pltpu.MemorySpace.VMEM
    in_specs = [pl.BlockSpec(memory_space=vmem)] * 9
    scratch = [pltpu.VMEM((B * S, 3 * H), jnp.float32),   # fused QKV
               pltpu.VMEM((B * S, H), jnp.float32)]       # attention context

    args = (x_flat, mask_i32, wqkv, bqkv, wo, w1, w2, cb1, vecs)

    if return_attn_prob:
        out_flat, attn_qkh = pl.pallas_call(
            _encoder_kernel_with_probs,
            out_shape=[jax.ShapeDtypeStruct((B * S, H), jnp.float32),
                       jax.ShapeDtypeStruct((B, S, S, H), jnp.float32)],
            in_specs=in_specs,
            out_specs=[pl.BlockSpec(memory_space=vmem)] * 2,
            scratch_shapes=scratch,
        )(*args)
        return out_flat.reshape(B, S, H), attn_qkh

    out_flat = pl.pallas_call(
        _encoder_kernel,
        out_shape=jax.ShapeDtypeStruct((B * S, H), jnp.float32),
        in_specs=in_specs,
        out_specs=pl.BlockSpec(memory_space=vmem),
        scratch_shapes=scratch,
    )(*args)
    return out_flat.reshape(B, S, H)


# ---------------- pure-JAX reference (for sanity check) ----------------
def _layer_norm(x, g, b):
    mu = jnp.mean(x, axis=-1, keepdims=True)
    var = jnp.mean((x - mu) ** 2, axis=-1, keepdims=True)
    return (x - mu) * jax.lax.rsqrt(var + LN_EPS) * g + b


def reference(x, attn_mask_bool, params):
    (wq, bq, wk, bk, wv, bv, wo, bo, g1, be1, w1, cb1, w2, cb2, g2, be2) = params
    q = x @ wq + bq
    k = x @ wk + bk
    v = x @ wv + bv
    scores = jnp.einsum('bih,bjh->bhij', q, k) * SCALE       # head_size == 1
    scores = jnp.where(attn_mask_bool[:, None, :, :], jnp.float32(-1e9), scores)
    attn = jax.nn.softmax(scores, axis=-1)
    ctx = jnp.einsum('bhij,bjh->bih', attn, v)
    att_out = ctx @ wo + bo
    ln1 = _layer_norm(x + att_out, g1, be1)
    f = jax.nn.gelu(ln1 @ w1 + cb1, approximate=False)       # F.gelu default (erf)
    f2 = f @ w2 + cb2
    out = _layer_norm(f2 + ln1, g2, be2)
    return out, attn


# ---------------- main ----------------
if __name__ == "__main__":
    key = jax.random.PRNGKey(0)
    keys = jax.random.split(key, 20)

    H, I = HIDDEN, INTERMEDIATE
    # Deterministic synthetic parameters (Linear weights stored as (in, out),
    # Conv1d(k=1) weights folded to (in_channels, out_channels)).
    wq = 0.05 * jax.random.normal(keys[0], (H, H), jnp.float32)
    bq = 0.05 * jax.random.normal(keys[1], (1, H), jnp.float32)
    wk = 0.05 * jax.random.normal(keys[2], (H, H), jnp.float32)
    bk = 0.05 * jax.random.normal(keys[3], (1, H), jnp.float32)
    wv = 0.05 * jax.random.normal(keys[4], (H, H), jnp.float32)
    bv = 0.05 * jax.random.normal(keys[5], (1, H), jnp.float32)
    wo = 0.05 * jax.random.normal(keys[6], (H, H), jnp.float32)
    bo = 0.05 * jax.random.normal(keys[7], (1, H), jnp.float32)
    g1 = 1.0 + 0.1 * jax.random.normal(keys[8], (1, H), jnp.float32)
    be1 = 0.1 * jax.random.normal(keys[9], (1, H), jnp.float32)
    w1 = 0.05 * jax.random.normal(keys[10], (H, I), jnp.float32)
    cb1 = 0.05 * jax.random.normal(keys[11], (1, I), jnp.float32)
    w2 = 0.05 * jax.random.normal(keys[12], (I, H), jnp.float32)
    cb2 = 0.05 * jax.random.normal(keys[13], (1, H), jnp.float32)
    g2 = 1.0 + 0.1 * jax.random.normal(keys[14], (1, H), jnp.float32)
    be2 = 0.1 * jax.random.normal(keys[15], (1, H), jnp.float32)
    params = [wq, bq, wk, bk, wv, bv, wo, bo, g1, be1, w1, cb1, w2, cb2, g2, be2]

    # One-time parameter consolidation (hoisted out of the per-call path).
    prepared = prepare_params(params)
    prepared = jax.block_until_ready(prepared)

    # Inputs: (B, S, H) activations; (B, S, S) boolean padding mask
    # (True = masked key position; batch element 1 has 3 padded positions).
    x = jax.random.normal(keys[16], (BATCH, SEQ, HIDDEN), jnp.float32)
    valid_len = jnp.array([SEQ, SEQ - 3], dtype=jnp.int32)
    key_pos = jnp.arange(SEQ)[None, None, :]                        # (1, 1, S)
    attn_mask_bool = key_pos >= valid_len[:, None, None]            # (B, 1, S)
    attn_mask_bool = jnp.broadcast_to(attn_mask_bool, (BATCH, SEQ, SEQ))

    # Inference path (no attention-probability writeback).
    out_fast = jax.block_until_ready(encoder_layer(x, attn_mask_bool, prepared))

    # Full path (probs requested, kernel-native (B,Sq,Sk,H) layout).
    out, attn_qkh = encoder_layer(x, attn_mask_bool, prepared, return_attn_prob=True)
    out = jax.block_until_ready(out)
    attn_qkh = jax.block_until_ready(attn_qkh)

    ref_out, ref_attn = reference(x, attn_mask_bool, params)

    assert out.shape == (BATCH, SEQ, HIDDEN)
    assert out_fast.shape == (BATCH, SEQ, HIDDEN)
    assert attn_qkh.shape == (BATCH, SEQ, SEQ, NUM_HEADS)
    # module layout is (B, NH, S_q, S_k); transpose for the check only (outside jit)
    attn_prob = jnp.transpose(attn_qkh, (0, 3, 1, 2))
    assert jnp.allclose(attn_prob, ref_attn, rtol=1e-2, atol=1e-2), "attn mismatch"
    assert jnp.allclose(out, ref_out, rtol=2e-2, atol=2e-2), "output mismatch"
    assert jnp.allclose(out_fast, ref_out, rtol=2e-2, atol=2e-2), "fast-path mismatch"

    print("KERNEL_OK")
</pallas_src>

<mosaic_0001>
module attributes {stable_mosaic.version = 11 : i64} {
  func.func @_encoder_kernel(%arg0: memref<32x32xf32, #tpu.memory_space<vmem>>, %arg1: memref<2x16x16xi32, #tpu.memory_space<vmem>>, %arg2: memref<32x96xbf16, #tpu.memory_space<vmem>>, %arg3: memref<1x96xf32, #tpu.memory_space<vmem>>, %arg4: memref<32x32xbf16, #tpu.memory_space<vmem>>, %arg5: memref<32x64xbf16, #tpu.memory_space<vmem>>, %arg6: memref<64x32xbf16, #tpu.memory_space<vmem>>, %arg7: memref<1x64xf32, #tpu.memory_space<vmem>>, %arg8: memref<6x32xf32, #tpu.memory_space<vmem>>, %arg9: memref<32x32xf32, #tpu.memory_space<vmem>>, %arg10: memref<32x96xf32, #tpu.memory_space<vmem>>, %arg11: memref<32x32xf32, #tpu.memory_space<vmem>>) attributes {dimension_semantics = [], scalar_prefetch = 0 : i64, scratch_operands = 2 : i64, tpu.core_type = #tpu.core_type<tc>} {
    %c0 = arith.constant 0 : index
    %c0_0 = arith.constant 0 : index
    %0 = vector.load %arg0[%c0, %c0_0] : memref<32x32xf32, #tpu.memory_space<vmem>>, vector<32x32xf32>
    %c0_1 = arith.constant 0 : index
    %c0_2 = arith.constant 0 : index
    %1 = vector.load %arg8[%c0_1, %c0_2] : memref<6x32xf32, #tpu.memory_space<vmem>>, vector<6x32xf32>
    %2 = vector.extract_strided_slice %1 {offsets = [0, 0], sizes = [1, 32], strides = [1, 1]} : vector<6x32xf32> to vector<1x32xf32>
    %3 = vector.extract_strided_slice %1 {offsets = [1, 0], sizes = [1, 32], strides = [1, 1]} : vector<6x32xf32> to vector<1x32xf32>
    %4 = vector.extract_strided_slice %1 {offsets = [2, 0], sizes = [1, 32], strides = [1, 1]} : vector<6x32xf32> to vector<1x32xf32>
    %5 = vector.extract_strided_slice %1 {offsets = [3, 0], sizes = [1, 32], strides = [1, 1]} : vector<6x32xf32> to vector<1x32xf32>
    %6 = vector.extract_strided_slice %1 {offsets = [4, 0], sizes = [1, 32], strides = [1, 1]} : vector<6x32xf32> to vector<1x32xf32>
    %7 = vector.extract_strided_slice %1 {offsets = [5, 0], sizes = [1, 32], strides = [1, 1]} : vector<6x32xf32> to vector<1x32xf32>
    %8 = arith.truncf %0 : vector<32x32xf32> to vector<32x32xbf16>
    %c0_3 = arith.constant 0 : index
    %c0_4 = arith.constant 0 : index
    %9 = vector.load %arg2[%c0_3, %c0_4] : memref<32x96xbf16, #tpu.memory_space<vmem>>, vector<32x96xbf16>
    %cst = arith.constant dense<0.000000e+00> : vector<32x96xf32>
    %10 = tpu.matmul %8, %9, %cst {dimension_numbers = #tpu.dot_dimension_numbers<[1], [0], [0], [1], [0, 0, 1, 1], [], []>} : vector<32x32xbf16>, vector<32x96xbf16>, vector<32x96xf32> -> vector<32x96xf32>
    %c0_5 = arith.constant 0 : index
    %c0_6 = arith.constant 0 : index
    %11 = vector.load %arg3[%c0_5, %c0_6] : memref<1x96xf32, #tpu.memory_space<vmem>>, vector<1x96xf32>
    %12 = vector.broadcast %11 : vector<1x96xf32> to vector<32x96xf32>
    %13 = arith.addf %10, %12 : vector<32x96xf32>
    %c0_7 = arith.constant 0 : index
    %c0_8 = arith.constant 0 : index
    %14 = vector.load %arg10[%c0_7, %c0_8] : memref<32x96xf32, #tpu.memory_space<vmem>>, vector<32x96xf32>
    tpu.vector_store %arg10[%c0_7, %c0_8], %13 {strides = array<i32>} : memref<32x96xf32, #tpu.memory_space<vmem>>, vector<32x96xf32>,
    %c0_i32 = arith.constant 0 : i32
    %c16_i32 = arith.constant 16 : i32
    %15 = arith.muli %c0_i32, %c16_i32 : i32
    %16 = tpu.assume_multiple %15, 16 : i32
    %17 = arith.index_cast %16 : i32 to index
    %c0_9 = arith.constant 0 : index
    %18 = vector.load %arg10[%17, %c0_9] : memref<32x96xf32, #tpu.memory_space<vmem>>, vector<16x32xf32>
    %19 = arith.index_cast %16 : i32 to index
    %c32 = arith.constant 32 : index
    %20 = vector.load %arg10[%19, %c32] : memref<32x96xf32, #tpu.memory_space<vmem>>, vector<16x32xf32>
    %21 = arith.index_cast %16 : i32 to index
    %c64 = arith.constant 64 : index
    %22 = vector.load %arg10[%21, %c64] : memref<32x96xf32, #tpu.memory_space<vmem>>, vector<16x32xf32>
    %23 = arith.index_cast %c0_i32 : i32 to index
    %c0_10 = arith.constant 0 : index
    %c0_11 = arith.constant 0 : index
    %24 = vector.load %arg1[%23, %c0_10, %c0_11] : memref<2x16x16xi32, #tpu.memory_space<vmem>>, vector<1x16x16xi32>
    %25 = vector.shape_cast %24 : vector<1x16x16xi32> to vector<16x16xi32>
    %c0_i32_12 = arith.constant 0 : i32
    %26 = vector.broadcast %c0_i32_12 : i32 to vector<16x16xi32>
    %27 = arith.cmpi ne, %25, %26 : vector<16x16xi32>
    %cst_13 = arith.constant -1.000000e+09 : f32
    %cst_14 = arith.constant 0.000000e+00 : f32
    %28 = vector.broadcast %cst_13 : f32 to vector<16x16xf32>
    %29 = vector.broadcast %cst_14 : f32 to vector<16x16xf32>
    %30 = arith.select %27, %28, %29 : vector<16x16xi1>, vector<16x16xf32>
    %31 = vector.shape_cast %18 : vector<16x32xf32> to vector<16x1x32xf32>
    %32 = vector.shape_cast %20 : vector<16x32xf32> to vector<1x16x32xf32>
    %33 = vector.broadcast %31 : vector<16x1x32xf32> to vector<16x16x32xf32>
    %34 = vector.broadcast %32 : vector<1x16x32xf32> to vector<16x16x32xf32>
    %35 = arith.mulf %33, %34 : vector<16x16x32xf32>
    %cst_15 = arith.constant 1.000000e+00 : f32
    %36 = vector.broadcast %cst_15 : f32 to vector<16x16x32xf32>
    %37 = arith.mulf %35, %36 : vector<16x16x32xf32>
    %38 = vector.shape_cast %30 : vector<16x16xf32> to vector<16x16x1xf32>
    %39 = vector.broadcast %38 : vector<16x16x1xf32> to vector<16x16x32xf32>
    %40 = arith.addf %37, %39 : vector<16x16x32xf32>
    %cst_16 = arith.constant dense<0xFF800000> : vector<16x32xf32>
    %41 = vector.multi_reduction <maximumf>, %40, %cst_16 [1] : vector<16x16x32xf32> to vector<16x32xf32>
    %42 = vector.shape_cast %41 : vector<16x32xf32> to vector<16x1x32xf32>
    %43 = vector.broadcast %42 : vector<16x1x32xf32> to vector<16x16x32xf32>
    %44 = arith.subf %40, %43 : vector<16x16x32xf32>
    %45 = math.exp %44 : vector<16x16x32xf32>
    %cst_17 = arith.constant dense<0.000000e+00> : vector<16x32xf32>
    %46 = vector.multi_reduction <add>, %45, %cst_17 [1] : vector<16x16x32xf32> to vector<16x32xf32>
    %47 = vector.shape_cast %46 : vector<16x32xf32> to vector<16x1x32xf32>
    %48 = tpu.reciprocal %47 {approx = true} : vector<16x1x32xf32> -> vector<16x1x32xf32>
    %49 = vector.broadcast %48 : vector<16x1x32xf32> to vector<16x16x32xf32>
    %50 = arith.mulf %45, %49 : vector<16x16x32xf32>
    %51 = vector.shape_cast %22 : vector<16x32xf32> to vector<1x16x32xf32>
    %52 = vector.broadcast %51 : vector<1x16x32xf32> to vector<16x16x32xf32>
    %53 = arith.mulf %50, %52 : vector<16x16x32xf32>
    %cst_18 = arith.constant dense<0.000000e+00> : vector<16x32xf32>
    %54 = vector.multi_reduction <add>, %53, %cst_18 [1] : vector<16x16x32xf32> to vector<16x32xf32>
    %55 = arith.index_cast %16 : i32 to index
    %c0_19 = arith.constant 0 : index
    %56 = vector.load %arg11[%55, %c0_19] : memref<32x32xf32, #tpu.memory_space<vmem>>, vector<16x32xf32>
    tpu.vector_store %arg11[%55, %c0_19], %54 {strides = array<i32>} : memref<32x32xf32, #tpu.memory_space<vmem>>, vector<16x32xf32>,
    %c1_i32 = arith.constant 1 : i32
    %c16_i32_20 = arith.constant 16 : i32
    %57 = arith.muli %c1_i32, %c16_i32_20 : i32
    %58 = tpu.assume_multiple %57, 16 : i32
    %59 = arith.index_cast %58 : i32 to index
    %c0_21 = arith.constant 0 : index
    %60 = vector.load %arg10[%59, %c0_21] : memref<32x96xf32, #tpu.memory_space<vmem>>, vector<16x32xf32>
    %61 = arith.index_cast %58 : i32 to index
    %c32_22 = arith.constant 32 : index
    %62 = vector.load %arg10[%61, %c32_22] : memref<32x96xf32, #tpu.memory_space<vmem>>, vector<16x32xf32>
    %63 = arith.index_cast %58 : i32 to index
    %c64_23 = arith.constant 64 : index
    %64 = vector.load %arg10[%63, %c64_23] : memref<32x96xf32, #tpu.memory_space<vmem>>, vector<16x32xf32>
    %65 = arith.index_cast %c1_i32 : i32 to index
    %c0_24 = arith.constant 0 : index
    %c0_25 = arith.constant 0 : index
    %66 = vector.load %arg1[%65, %c0_24, %c0_25] : memref<2x16x16xi32, #tpu.memory_space<vmem>>, vector<1x16x16xi32>
    %67 = vector.shape_cast %66 : vector<1x16x16xi32> to vector<16x16xi32>
    %c0_i32_26 = arith.constant 0 : i32
    %68 = vector.broadcast %c0_i32_26 : i32 to vector<16x16xi32>
    %69 = arith.cmpi ne, %67, %68 : vector<16x16xi32>
    %cst_27 = arith.constant -1.000000e+09 : f32
    %cst_28 = arith.constant 0.000000e+00 : f32
    %70 = vector.broadcast %cst_27 : f32 to vector<16x16xf32>
    %71 = vector.broadcast %cst_28 : f32 to vector<16x16xf32>
    %72 = arith.select %69, %70, %71 : vector<16x16xi1>, vector<16x16xf32>
    %73 = vector.shape_cast %60 : vector<16x32xf32> to vector<16x1x32xf32>
    %74 = vector.shape_cast %62 : vector<16x32xf32> to vector<1x16x32xf32>
    %75 = vector.broadcast %73 : vector<16x1x32xf32> to vector<16x16x32xf32>
    %76 = vector.broadcast %74 : vector<1x16x32xf32> to vector<16x16x32xf32>
    %77 = arith.mulf %75, %76 : vector<16x16x32xf32>
    %cst_29 = arith.constant 1.000000e+00 : f32
    %78 = vector.broadcast %cst_29 : f32 to vector<16x16x32xf32>
    %79 = arith.mulf %77, %78 : vector<16x16x32xf32>
    %80 = vector.shape_cast %72 : vector<16x16xf32> to vector<16x16x1xf32>
    %81 = vector.broadcast %80 : vector<16x16x1xf32> to vector<16x16x32xf32>
    %82 = arith.addf %79, %81 : vector<16x16x32xf32>
    %cst_30 = arith.constant dense<0xFF800000> : vector<16x32xf32>
    %83 = vector.multi_reduction <maximumf>, %82, %cst_30 [1] : vector<16x16x32xf32> to vector<16x32xf32>
    %84 = vector.shape_cast %83 : vector<16x32xf32> to vector<16x1x32xf32>
    %85 = vector.broadcast %84 : vector<16x1x32xf32> to vector<16x16x32xf32>
    %86 = arith.subf %82, %85 : vector<16x16x32xf32>
    %87 = math.exp %86 : vector<16x16x32xf32>
    %cst_31 = arith.constant dense<0.000000e+00> : vector<16x32xf32>
    %88 = vector.multi_reduction <add>, %87, %cst_31 [1] : vector<16x16x32xf32> to vector<16x32xf32>
    %89 = vector.shape_cast %88 : vector<16x32xf32> to vector<16x1x32xf32>
    %90 = tpu.reciprocal %89 {approx = true} : vector<16x1x32xf32> -> vector<16x1x32xf32>
    %91 = vector.broadcast %90 : vector<16x1x32xf32> to vector<16x16x32xf32>
    %92 = arith.mulf %87, %91 : vector<16x16x32xf32>
    %93 = vector.shape_cast %64 : vector<16x32xf32> to vector<1x16x32xf32>
    %94 = vector.broadcast %93 : vector<1x16x32xf32> to vector<16x16x32xf32>
    %95 = arith.mulf %92, %94 : vector<16x16x32xf32>
    %cst_32 = arith.constant dense<0.000000e+00> : vector<16x32xf32>
    %96 = vector.multi_reduction <add>, %95, %cst_32 [1] : vector<16x16x32xf32> to vector<16x32xf32>
    %97 = arith.index_cast %58 : i32 to index
    %c0_33 = arith.constant 0 : index
    %98 = vector.load %arg11[%97, %c0_33] : memref<32x32xf32, #tpu.memory_space<vmem>>, vector<16x32xf32>
    tpu.vector_store %arg11[%97, %c0_33], %96 {strides = array<i32>} : memref<32x32xf32, #tpu.memory_space<vmem>>, vector<16x32xf32>,
    %c2_i32 = arith.constant 2 : i32
    %c0_34 = arith.constant 0 : index
    %c0_35 = arith.constant 0 : index
    %99 = vector.load %arg11[%c0_34, %c0_35] : memref<32x32xf32, #tpu.memory_space<vmem>>, vector<32x32xf32>
    %100 = arith.truncf %99 : vector<32x32xf32> to vector<32x32xbf16>
    %c0_36 = arith.constant 0 : index
    %c0_37 = arith.constant 0 : index
    %101 = vector.load %arg4[%c0_36, %c0_37] : memref<32x32xbf16, #tpu.memory_space<vmem>>, vector<32x32xbf16>
    %cst_38 = arith.constant dense<0.000000e+00> : vector<32x32xf32>
    %102 = tpu.matmul %100, %101, %cst_38 {dimension_numbers = #tpu.dot_dimension_numbers<[1], [0], [0], [1], [0, 0, 1, 1], [], []>} : vector<32x32xbf16>, vector<32x32xbf16>, vector<32x32xf32> -> vector<32x32xf32>
    %103 = vector.broadcast %2 : vector<1x32xf32> to vector<32x32xf32>
    %104 = arith.addf %102, %103 : vector<32x32xf32>
    %105 = arith.addf %0, %104 : vector<32x32xf32>
    %cst_39 = arith.constant dense<0.000000e+00> : vector<32xf32>
    %106 = vector.multi_reduction <add>, %105, %cst_39 [1] : vector<32x32xf32> to vector<32xf32>
    %107 = vector.shape_cast %106 : vector<32xf32> to vector<32x1xf32>
    %cst_40 = arith.constant 3.200000e+01 : f32
    %108 = vector.broadcast %cst_40 : f32 to vector<32x1xf32>
    %109 = arith.divf %107, %108 : vector<32x1xf32>
    %110 = vector.broadcast %109 : vector<32x1xf32> to vector<32x32xf32>
    %111 = arith.subf %105, %110 : vector<32x32xf32>
    %112 = arith.mulf %111, %111 : vector<32x32xf32>
    %cst_41 = arith.constant dense<0.000000e+00> : vector<32xf32>
    %113 = vector.multi_reduction <add>, %112, %cst_41 [1] : vector<32x32xf32> to vector<32xf32>
    %114 = vector.shape_cast %113 : vector<32xf32> to vector<32x1xf32>
    %cst_42 = arith.constant 3.200000e+01 : f32
    %115 = vector.broadcast %cst_42 : f32 to vector<32x1xf32>
    %116 = arith.divf %114, %115 : vector<32x1xf32>
    %117 = vector.broadcast %109 : vector<32x1xf32> to vector<32x32xf32>
    %118 = arith.subf %105, %117 : vector<32x32xf32>
    %cst_43 = arith.constant 9.99999996E-13 : f32
    %119 = vector.broadcast %cst_43 : f32 to vector<32x1xf32>
    %120 = arith.addf %116, %119 : vector<32x1xf32>
    %121 = math.rsqrt %120 : vector<32x1xf32>
    %122 = vector.broadcast %121 : vector<32x1xf32> to vector<32x32xf32>
    %123 = arith.mulf %118, %122 : vector<32x32xf32>
    %124 = vector.broadcast %3 : vector<1x32xf32> to vector<32x32xf32>
    %125 = arith.mulf %123, %124 : vector<32x32xf32>
    %126 = vector.broadcast %4 : vector<1x32xf32> to vector<32x32xf32>
    %127 = arith.addf %125, %126 : vector<32x32xf32>
    %128 = arith.truncf %127 : vector<32x32xf32> to vector<32x32xbf16>
    %c0_44 = arith.constant 0 : index
    %c0_45 = arith.constant 0 : index
    %129 = vector.load %arg5[%c0_44, %c0_45] : memref<32x64xbf16, #tpu.memory_space<vmem>>, vector<32x64xbf16>
    %cst_46 = arith.constant dense<0.000000e+00> : vector<32x64xf32>
    %130 = tpu.matmul %128, %129, %cst_46 {dimension_numbers = #tpu.dot_dimension_numbers<[1], [0], [0], [1], [0, 0, 1, 1], [], []>} : vector<32x32xbf16>, vector<32x64xbf16>, vector<32x64xf32> -> vector<32x64xf32>
    %c0_47 = arith.constant 0 : index
    %c0_48 = arith.constant 0 : index
    %131 = vector.load %arg7[%c0_47, %c0_48] : memref<1x64xf32, #tpu.memory_space<vmem>>, vector<1x64xf32>
    %132 = vector.broadcast %131 : vector<1x64xf32> to vector<32x64xf32>
    %133 = arith.addf %130, %132 : vector<32x64xf32>
    %134 = arith.mulf %133, %133 : vector<32x64xf32>
    %135 = arith.mulf %133, %134 : vector<32x64xf32>
    %cst_49 = arith.constant 4.471500e-02 : f32
    %136 = vector.broadcast %cst_49 : f32 to vector<32x64xf32>
    %137 = arith.mulf %136, %135 : vector<32x64xf32>
    %138 = arith.addf %133, %137 : vector<32x64xf32>
    %cst_50 = arith.constant 0.797884583 : f32
    %139 = vector.broadcast %cst_50 : f32 to vector<32x64xf32>
    %140 = arith.mulf %139, %138 : vector<32x64xf32>
    %141 = math.tanh %140 : vector<32x64xf32>
    %cst_51 = arith.constant 1.000000e+00 : f32
    %142 = vector.broadcast %cst_51 : f32 to vector<32x64xf32>
    %143 = arith.addf %142, %141 : vector<32x64xf32>
    %cst_52 = arith.constant 5.000000e-01 : f32
    %144 = vector.broadcast %cst_52 : f32 to vector<32x64xf32>
    %145 = arith.mulf %144, %143 : vector<32x64xf32>
    %146 = arith.mulf %133, %145 : vector<32x64xf32>
    %147 = arith.truncf %146 : vector<32x64xf32> to vector<32x64xbf16>
    %c0_53 = arith.constant 0 : index
    %c0_54 = arith.constant 0 : index
    %148 = vector.load %arg6[%c0_53, %c0_54] : memref<64x32xbf16, #tpu.memory_space<vmem>>, vector<64x32xbf16>
    %cst_55 = arith.constant dense<0.000000e+00> : vector<32x32xf32>
    %149 = tpu.matmul %147, %148, %cst_55 {dimension_numbers = #tpu.dot_dimension_numbers<[1], [0], [0], [1], [0, 0, 1, 1], [], []>} : vector<32x64xbf16>, vector<64x32xbf16>, vector<32x32xf32> -> vector<32x32xf32>
    %150 = vector.broadcast %5 : vector<1x32xf32> to vector<32x32xf32>
    %151 = arith.addf %149, %150 : vector<32x32xf32>
    %152 = arith.addf %151, %127 : vector<32x32xf32>
    %cst_56 = arith.constant dense<0.000000e+00> : vector<32xf32>
    %153 = vector.multi_reduction <add>, %152, %cst_56 [1] : vector<32x32xf32> to vector<32xf32>
    %154 = vector.shape_cast %153 : vector<32xf32> to vector<32x1xf32>
    %cst_57 = arith.constant 3.200000e+01 : f32
    %155 = vector.broadcast %cst_57 : f32 to vector<32x1xf32>
    %156 = arith.divf %154, %155 : vector<32x1xf32>
    %157 = vector.broadcast %156 : vector<32x1xf32> to vector<32x32xf32>
    %158 = arith.subf %152, %157 : vector<32x32xf32>
    %159 = arith.mulf %158, %158 : vector<32x32xf32>
    %cst_58 = arith.constant dense<0.000000e+00> : vector<32xf32>
    %160 = vector.multi_reduction <add>, %159, %cst_58 [1] : vector<32x32xf32> to vector<32xf32>
    %161 = vector.shape_cast %160 : vector<32xf32> to vector<32x1xf32>
    %cst_59 = arith.constant 3.200000e+01 : f32
    %162 = vector.broadcast %cst_59 : f32 to vector<32x1xf32>
    %163 = arith.divf %161, %162 : vector<32x1xf32>
    %164 = vector.broadcast %156 : vector<32x1xf32> to vector<32x32xf32>
    %165 = arith.subf %152, %164 : vector<32x32xf32>
    %cst_60 = arith.constant 9.99999996E-13 : f32
    %166 = vector.broadcast %cst_60 : f32 to vector<32x1xf32>
    %167 = arith.addf %163, %166 : vector<32x1xf32>
    %168 = math.rsqrt %167 : vector<32x1xf32>
    %169 = vector.broadcast %168 : vector<32x1xf32> to vector<32x32xf32>
    %170 = arith.mulf %165, %169 : vector<32x32xf32>
    %171 = vector.broadcast %6 : vector<1x32xf32> to vector<32x32xf32>
    %172 = arith.mulf %170, %171 : vector<32x32xf32>
    %173 = vector.broadcast %7 : vector<1x32xf32> to vector<32x32xf32>
    %174 = arith.addf %172, %173 : vector<32x32xf32>
    %c0_61 = arith.constant 0 : index
    %c0_62 = arith.constant 0 : index
    %175 = vector.load %arg9[%c0_61, %c0_62] : memref<32x32xf32, #tpu.memory_space<vmem>>, vector<32x32xf32>
    tpu.vector_store %arg9[%c0_61, %c0_62], %174 {strides = array<i32>} : memref<32x32xf32, #tpu.memory_space<vmem>>, vector<32x32xf32>,
    return
  }
}

</mosaic_0001>

<bundles_post_ra>
// kernel: encoder_layer.1
= control target key start
LH: loop header
LB: loop body
LE: loop exit
PB: predicated region body
PF: predicated region fallthrough
CT: control target
= control target key end

     0   :  { %v139_v1 = vlaneseq  ;;  %vm64_vm0 = vcmask 261120   ;;  %v3096_v13 = vmov 0.0   ;;  %s5153_s0 = inlined_call_operand.vmem [shape: f32[32,32], index: 0, kind: input, shape index: {}]   ;;  %s5154_s1 = inlined_call_operand.vmem [shape: s32[2,16,16], index: 1, kind: input, shape index: {}]   ;;  %s5155_s2 = inlined_call_operand.vmem [shape: bf16[32,96], index: 2, kind: input, shape index: {}]   ;;  %s5156_s3 = inlined_call_operand.vmem [shape: f32[1,96], index: 3, kind: input, shape index: {}]   ;;  %s5157_s4 = inlined_call_operand.vmem [shape: bf16[32,32], index: 4, kind: input, shape index: {}]   ;;  %s5158_s5 = inlined_call_operand.vmem [shape: bf16[32,64], index: 5, kind: input, shape index: {}]   ;;  %s5159_s6 = inlined_call_operand.vmem [shape: bf16[64,32], index: 6, kind: input, shape index: {}]   ;;  %s5160_s7 = inlined_call_operand.vmem [shape: f32[1,64], index: 7, kind: input, shape index: {}]   ;;  %s5161_s8 = inlined_call_operand.vmem [shape: f32[6,32], index: 8, kind: input, shape index: {}]   ;;  %s5162_s9 = inlined_call_operand.hbm [shape: f32[32,32], index: 9, kind: output, shape index: {}]  }
   0x1   :  { %v2838_v0 = vld [vmem:[%s5155_s2] sm:$0xff]   ;;  %v2839_v2 = vld [vmem:[%s5155_s2 + $0x8] sm:$0xff]   ;;  %v36_v5 = vld [vmem:[%s5153_s0 + $0x10] sm:$0xff] }
   0x2   :  { %2795 = vmatprep.subr.bf16.mxu0 %v2838_v0  ;;  %v34_v3 = vld [vmem:[%s5153_s0] sm:$0xff]  ;;  %v35_v4 = vld [vmem:[%s5153_s0 + $0x8] sm:$0xff]  ;;  %v3168_v6 = vshrl.u32 %v139_v1, 7  ;;  %v37_v8 = vld [vmem:[%s5153_s0 + $0x18] sm:$0xff] }
   0x3   :  { %2796 = vmatpush3.bf16.msra.mxu0 %v2838_v0  ;;  %v39_v7 = vpack.c.bf16 %v35_v4, %v34_v3  ;;  %v127_v9 = vld [vmem:[%s5154_s1] sm:$0xff]  ;;  %v128_v10 = vld [vmem:[%s5154_s1 + $0x8] sm:$0xff]  ;;  %v40_v15 = vpack.c.bf16 %v37_v8, %v36_v5 }
   0x4   :  { %2797 = vmatprep.subr.bf16.mxu0 %v2839_v2  ;;  %vm129_vm1 = vcmp.ne.s32.totalorder %v127_v9, 0  ;;  %v3180_v11 = vsub.s32 0, %v3168_v6  ;;  %v3183_v12 = vsub.s32 1, %v3168_v6  ;;  %vm130_vm2 = vcmp.ne.s32.totalorder %v128_v10, 0 }
   0x5   :  { %2799 = vmatprep.mubr.msk.bf16.mxu0 %vm64_vm0, %v39_v7  ;;  %v3186_v14 = vsel %vm129_vm1, -1e+09, %v3096_v13  ;;  %v3192_v18 = vsel %vm130_vm2, -1e+09, %v3096_v13 }
   0x6   :  { %5240 = vst [vmem:[#allocation7_spill] sm:$0xff] %v3180_v11  ;;  %5241 = vst [vmem:[#allocation8_spill] sm:$0xff] %v3183_v12  ;;  %v354_v16 = vrot.slane %v3186_v14, %v3180_v11  ;;  %v365_v17 = vrot.slane %v3186_v14, %v3183_v12  ;;  %v442_v19 = vrot.slane %v3192_v18, %v3180_v11 }
   0x7   :  { %2798 = vmatpush3.bf16.msra.mxu0 %v2839_v2 }
   0x8   :  { %360 = vbcast.lane.b32.xlu1 %v354_v16, 264  ;;  %356 = vbcast.lane.b32.xlu0 %v354_v16, 256 }
   0xa   :  { %2800 = vmatmul.mubr.msk.bf16.vlgmr.msra.gmra.mrb[0].mxu0 %vm64_vm0, %v40_v15 }
   0xc   :  { %371 = vbcast.lane.b32.xlu1 %v365_v17, 264  ;;  %367 = vbcast.lane.b32.xlu0 %v365_v17, 256 }
   0xd   :  { %14 = vsyncpa [#allocation5], 0  ;;  %v453_v20 = vrot.slane %v3192_v18, %v3183_v12  ;;  %v3200_v21 = vsub.s32 2, %v3168_v6  ;;  %v2760_v22 = vld [vmem:[%s5154_s1 + $0x10] sm:$0xff]  ;;  %v2761_v26 = vld [vmem:[%s5154_s1 + $0x18] sm:$0xff]  ;;  %v3225_v32 = vsub.s32 3, %v3168_v6 }
   0xe   :  { %vm1220_vm3 = vcmp.ne.s32.totalorder %v2760_v22, 0  ;;  %vm1221_vm4 = vcmp.ne.s32.totalorder %v2761_v26, 0  ;;  %v3236_v37 = vsub.s32 4, %v3168_v6  ;;  %v3247_v42 = vsub.s32 5, %v3168_v6  ;;  %v2755_v8 = vld [vmem:[%s5156_s3] ss:$0 sm:$0xff] }
   0xf   :  { %5242 = vst [vmem:[#allocation9_spill] sm:$0xff] %v3200_v21  ;;  %v376_v23 = vrot.slane %v3186_v14, %v3200_v21  ;;  %v464_v24 = vrot.slane %v3192_v18, %v3200_v21  ;;  %v3209_v25 = vsel %vm1220_vm3, -1e+09, %v3096_v13  ;;  %v3218_v29 = vsel %vm1221_vm4, -1e+09, %v3096_v13  ;;  %5243 = vst [vmem:[#allocation10_spill] sm:$0xff] %v3225_v32 }
  0x10   :  { %448 = vbcast.lane.b32.xlu1 %v442_v19, 264  ;;  %444 = vbcast.lane.b32.xlu0 %v442_v19, 256  ;;  %v1445_v27 = vrot.slane %v3209_v25, %v3180_v11  ;;  %v1456_v28 = vrot.slane %v3209_v25, %v3183_v12  ;;  %v1533_v30 = vrot.slane %v3218_v29, %v3180_v11  ;;  %v3258_v47 = vsub.s32 6, %v3168_v6  ;;  %s3098_s3 = smov 96   ;;  %s3099_s29 = smov 64  }
  0x11   :  { %v1544_v31 = vrot.slane %v3218_v29, %v3183_v12  ;;  %v387_v33 = vrot.slane %v3186_v14, %v3225_v32  ;;  %v475_v34 = vrot.slane %v3192_v18, %v3225_v32  ;;  %v1467_v35 = vrot.slane %v3209_v25, %v3200_v21  ;;  %5244 = vst [vmem:[#allocation11_spill] sm:$0xff] %v3236_v37 }
  0x12   :  { %v1555_v36 = vrot.slane %v3218_v29, %v3200_v21  ;;  %v398_v38 = vrot.slane %v3186_v14, %v3236_v37  ;;  %v486_v39 = vrot.slane %v3192_v18, %v3236_v37  ;;  %v1478_v40 = vrot.slane %v3209_v25, %v3225_v32  ;;  %5245 = vst [vmem:[#allocation12_spill] sm:$0xff] %v3247_v42 }
  0x13   :  { %v1566_v41 = vrot.slane %v3218_v29, %v3225_v32  ;;  %v409_v43 = vrot.slane %v3186_v14, %v3247_v42  ;;  %v497_v44 = vrot.slane %v3192_v18, %v3247_v42  ;;  %v1489_v45 = vrot.slane %v3209_v25, %v3236_v37 }
  0x14   :  { %459 = vbcast.lane.b32.xlu1 %v453_v20, 264  ;;  %455 = vbcast.lane.b32.xlu0 %v453_v20, 256  ;;  %v1577_v46 = vrot.slane %v3218_v29, %v3236_v37  ;;  %v420_v48 = vrot.slane %v3186_v14, %v3258_v47  ;;  %v508_v49 = vrot.slane %v3192_v18, %v3258_v47  ;;  %v3269_v52 = vsub.s32 7, %v3168_v6 }
  0x15   :  { %v1500_v50 = vrot.slane %v3209_v25, %v3247_v42  ;;  %v1588_v51 = vrot.slane %v3218_v29, %v3247_v42  ;;  %v1511_v55 = vrot.slane %v3209_v25, %v3258_v47  ;;  %v3097_v10 = vmov 1966171168  }
  0x16   :  { %v431_v53 = vrot.slane %v3186_v14, %v3269_v52  ;;  %v519_v54 = vrot.slane %v3192_v18, %v3269_v52  ;;  %v137_v13 = vunpack.c.l.s4 %v3097_v10  ;;  %vm120_vm5 = vcmask 785408  }
  0x17   :  { %v1610_v10 = vrot.slane %v3218_v29, %v3269_v52  ;;  %vm1189_vm6 = vcmask 1041409   ;;  %vm1191_vm7 = vcmask 1042434   ;;  %vm1193_vm8 = vcmask 1043459  }
  0x18   :  { %382 = vbcast.lane.b32.xlu1 %v376_v23, 264  ;;  %378 = vbcast.lane.b32.xlu0 %v376_v23, 256  ;;  %v138_v23 = vunpack.c.0.s8 %v137_v13  ;;  %vm1195_vm9 = vcmask 1044484   ;;  %vm1197_vm10 = vcmask 1045509   ;;  %vm1199_vm11 = vcmask 1046534  }
  0x19   :  { %vm1201_vm12 = vcmask 1047559   ;;  %vm2607_vm13 = vcmask 523264  }
  0x1c   :  { %470 = vbcast.lane.b32.xlu1 %v464_v24, 264  ;;  %466 = vbcast.lane.b32.xlu0 %v464_v24, 256 }
  0x20   :  { %1451 = vbcast.lane.b32.xlu1 %v1445_v27, 264  ;;  %1447 = vbcast.lane.b32.xlu0 %v1445_v27, 256 }
  0x24   :  { %1462 = vbcast.lane.b32.xlu1 %v1456_v28, 264  ;;  %1458 = vbcast.lane.b32.xlu0 %v1456_v28, 256  ;;  %v3319_v28 = vsub.s32 %v138_v23, %v3168_v6 }
  0x28   :  { %1539 = vbcast.lane.b32.xlu1 %v1533_v30, 264  ;;  %1535 = vbcast.lane.b32.xlu0 %v1533_v30, 256 }
  0x2c   :  { %1550 = vbcast.lane.b32.xlu1 %v1544_v31, 264  ;;  %1546 = vbcast.lane.b32.xlu0 %v1544_v31, 256 }
  0x30   :  { %393 = vbcast.lane.b32.xlu1 %v387_v33, 264  ;;  %389 = vbcast.lane.b32.xlu0 %v387_v33, 256 }
  0x34   :  { %481 = vbcast.lane.b32.xlu1 %v475_v34, 264  ;;  %477 = vbcast.lane.b32.xlu0 %v475_v34, 256 }
  0x38   :  { %1473 = vbcast.lane.b32.xlu1 %v1467_v35, 264  ;;  %1469 = vbcast.lane.b32.xlu0 %v1467_v35, 256 }
  0x3c   :  { %1561 = vbcast.lane.b32.xlu1 %v1555_v36, 264  ;;  %1557 = vbcast.lane.b32.xlu0 %v1555_v36, 256 }
  0x40   :  { %404 = vbcast.lane.b32.xlu1 %v398_v38, 264  ;;  %400 = vbcast.lane.b32.xlu0 %v398_v38, 256 }
  0x44   :  { %492 = vbcast.lane.b32.xlu1 %v486_v39, 264  ;;  %488 = vbcast.lane.b32.xlu0 %v486_v39, 256 }
  0x48   :  { %1484 = vbcast.lane.b32.xlu1 %v1478_v40, 264  ;;  %1480 = vbcast.lane.b32.xlu0 %v1478_v40, 256 }
  0x4c   :  { %1572 = vbcast.lane.b32.xlu1 %v1566_v41, 264  ;;  %1568 = vbcast.lane.b32.xlu0 %v1566_v41, 256 }
  0x50   :  { %415 = vbcast.lane.b32.xlu1 %v409_v43, 264  ;;  %411 = vbcast.lane.b32.xlu0 %v409_v43, 256 }
  0x54   :  { %503 = vbcast.lane.b32.xlu1 %v497_v44, 264  ;;  %499 = vbcast.lane.b32.xlu0 %v497_v44, 256 }
  0x58   :  { %1495 = vbcast.lane.b32.xlu1 %v1489_v45, 264  ;;  %1491 = vbcast.lane.b32.xlu0 %v1489_v45, 256 }
  0x5c   :  { %1583 = vbcast.lane.b32.xlu1 %v1577_v46, 264  ;;  %1579 = vbcast.lane.b32.xlu0 %v1577_v46, 256  ;;  %v1599_v46 = vrot.slane %v3218_v29, %v3258_v47 }
  0x60   :  { %426 = vbcast.lane.b32.xlu1 %v420_v48, 264  ;;  %422 = vbcast.lane.b32.xlu0 %v420_v48, 256 }
  0x64   :  { %514 = vbcast.lane.b32.xlu1 %v508_v49, 264  ;;  %510 = vbcast.lane.b32.xlu0 %v508_v49, 256 }
  0x68   :  { %1506 = vbcast.lane.b32.xlu1 %v1500_v50, 264  ;;  %1502 = vbcast.lane.b32.xlu0 %v1500_v50, 256 }
  0x6c   :  { %1594 = vbcast.lane.b32.xlu1 %v1588_v51, 264  ;;  %1590 = vbcast.lane.b32.xlu0 %v1588_v51, 256  ;;  %v1522_v51 = vrot.slane %v3209_v25, %v3269_v52 }
  0x70   :  { %437 = vbcast.lane.b32.xlu1 %v431_v53, 264  ;;  %433 = vbcast.lane.b32.xlu0 %v431_v53, 256 }
  0x74   :  { %525 = vbcast.lane.b32.xlu1 %v519_v54, 264  ;;  %521 = vbcast.lane.b32.xlu0 %v519_v54, 256 }
  0x78   :  { %1517 = vbcast.lane.b32.xlu1 %v1511_v55, 264  ;;  %1513 = vbcast.lane.b32.xlu0 %v1511_v55, 256 }
  0x7a   :  { %v3277_v56 = vpop.permute.xlu1 %360  ;;  %v3279_v57 = vpop.permute.xlu0 %356 }
  0x7b   :  { %5246 = vst [vmem:[#allocation13_spill] sm:$0xff] %v3277_v56 }
  0x7e   :  { %v3281_v58 = vpop.permute.xlu1 %371  ;;  %v3283_v59 = vpop.permute.xlu0 %367 }
  0x7f   :  { %5247 = vst [vmem:[#allocation14_spill] sm:$0xff] %v3281_v58 }
  0x82   :  { %v3285_v60 = vpop.permute.xlu1 %448  ;;  %v3287_v61 = vpop.permute.xlu0 %444 }
  0x83   :  { %5248 = vst [vmem:[#allocation15_spill] sm:$0xff] %v3285_v60 }
  0x86   :  { %v3289_v62 = vpop.permute.xlu1 %459  ;;  %v3291_v63 = vpop.permute.xlu0 %455 }
  0x87   :  { %5249 = vst [vmem:[#allocation16_spill] sm:$0xff] %v3289_v62 }
  0x8a   :  { %v3293_v0 = vpop.permute.xlu1 %382  ;;  %v3295_v1 = vpop.permute.xlu0 %378 }
  0x8b   :  { %5250 = vst [vmem:[#allocation17_spill] sm:$0xff] %v3293_v0 }
  0x8e   :  { %v3297_v2 = vpop.permute.xlu1 %470  ;;  %v3299_v3 = vpop.permute.xlu0 %466 }
  0x8f   :  { %5251 = vst [vmem:[#allocation18_spill] sm:$0xff] %v3297_v2 }
  0x92   :  { %v3301_v4 = vpop.permute.xlu1 %1451  ;;  %v3303_v5 = vpop.permute.xlu0 %1447 }
  0x96   :  { %v3305_v7 = vpop.permute.xlu1 %1462  ;;  %v3310_v9 = vpop.permute.xlu0 %1458 }
  0x9a   :  { %v3312_v14 = vpop.permute.xlu1 %1539  ;;  %v3314_v26 = vpop.permute.xlu0 %1535 }
  0x9b   :  { %5252 = vst [vmem:[#allocation19_spill] sm:$0xff] %v3312_v14 }
  0x9e   :  { %v3316_v27 = vpop.permute.xlu1 %1550  ;;  %v3321_v31 = vpop.permute.xlu0 %1546 }
  0x9f   :  { %5253 = vst [vmem:[#allocation20_spill] sm:$0xff] %v3316_v27 }
  0xa2   :  { %v3326_v36 = vpop.permute.xlu1 %393  ;;  %v3345_v48 = vpop.permute.xlu0 %389 }
  0xa3   :  { %5254 = vst [vmem:[#allocation21_spill] sm:$0xff] %v3326_v36 }
  0xa6   :  { %v3347_v50 = vpop.permute.xlu1 %481 }
  0xa7   :  { %5255 = vst [vmem:[#allocation22_spill] sm:$0xff] %v3347_v50 }
  0xaa   :  { %v3362_v13 = vpop.permute.xlu1 %1473 }
  0xdd   :  { %v2801_v15 = vpop.f32.mrb[0].mxu0 }
  0xde   :  { %v114_v16 = vadd.f32 %v2801_v15, %v2755_v8  ;;  %v105_v17 = vpop.f32.mrb[1].mxu0 }
  0xdf   :  { %v106_v18 = vadd.f32 %v2755_v8, %v105_v17  ;;  %v2802_v19 = vpop.f32.mrb[2].mxu0 }
  0xe0   :  { %123 = vst.msk [vmem:[#allocation2 + $0x10] sm:$0xff] %vm120_vm5, %v114_v16  ;;  %v117_v20 = vadd.f32 %v2802_v19, %v2755_v8  ;;  %v108_v22 = vpop.f32.mrb[3].mxu0 }
  0xe1   :  { %121 = vst.msk [vmem:[#allocation2] sm:$0xff] %vm120_vm5, %v106_v18  ;;  %v109_v24 = vadd.f32 %v2755_v8, %v108_v22  ;;  %v3355_v8 = vpop.permute.xlu0 %477  ;;  %v3369_v18 = vpop.permute.xlu1 %1561 }
  0xe2   :  { %124 = vst.msk [vmem:[#allocation2 + $0x18] sm:$0xff] %vm120_vm5, %v117_v20  ;;  %5256 = vst [vmem:[#allocation23_spill] sm:$0xff] %v3369_v18 }
  0xe3   :  { %122 = vst.msk [vmem:[#allocation2 + $0x8] sm:$0xff] %vm120_vm5, %v109_v24 }
  0xe5   :  { %v3367_v17 = vpop.permute.xlu0 %1469  ;;  %v3381_v20 = vpop.permute.xlu1 %404 }
  0xe6   :  { %5257 = vst [vmem:[#allocation24_spill] sm:$0xff] %v3381_v20 }
  0xe7   :  { %v1215_v30 = vld [vmem:[#allocation2 + $0x10] sm:$0xff] }
  0xe8   :  { %1404 = vrot.lane.b32.xlu1 %v1215_v30, %s3098_s3  ;;  %v1226_v33 = vcombine.high %v1215_v30, %v1215_v30  ;;  %v1233_v34 = vrot.slane %v1215_v30, %v3319_v28  ;;  %v3324_v35 = vld [vmem:[#allocation2] sm:$0xff] }
  0xe9   :  { %313 = vrot.lane.b32.xlu0 %v3324_v35, %s3098_s3  ;;  %v1216_v38 = vld [vmem:[#allocation2 + $0x18] sm:$0xff]  ;;  %v3379_v52 = vpop.permute.xlu0 %1557  ;;  %v3385_v23 = vpop.permute.xlu1 %492  ;;  %v135_v12 = vcombine.high %v3324_v35, %v3324_v35 }
  0xea   :  { %v1240_v39 = vrot.slane %v1226_v33, %v3319_v28  ;;  %v1241_v40 = vcombine.high %v1233_v34, %v1233_v34  ;;  %v3331_v6 = vrot.slane %v1233_v34, %v3319_v28  ;;  %v1282_v41 = vrot.slane %v1216_v38, %v3319_v28  ;;  %v3340_v45 = vld [vmem:[#allocation2 + $0x8] sm:$0xff]  ;;  %5259 = vst [vmem:[#allocation26_spill] sm:$0xff] %v3385_v23 }
  0xeb   :  { %v1275_v49 = vcombine.high %v1216_v38, %v1216_v38 }
  0xec   :  { %v3335_v43 = vrot.slane %v1240_v39, %v3319_v28  ;;  %v3338_v44 = vrot.slane %v1241_v40, %v3319_v28  ;;  %1406 = vrot.lane.b32.xlu1 %v1216_v38, %s3098_s3  ;;  %v1290_v54 = vcombine.high %v1282_v41, %v1282_v41  ;;  %v3353_v55 = vrot.slane %v1282_v41, %v3319_v28 }
  0xed   :  { %315 = vrot.lane.b32.xlu0 %v3340_v45, %s3098_s3  ;;  %v1289_v53 = vrot.slane %v1275_v49, %v3319_v28  ;;  %v1242_v15 = vcombine.high %v1240_v39, %v1240_v39  ;;  %v3383_v22 = vpop.permute.xlu0 %400  ;;  %v3389_v33 = vpop.permute.xlu1 %1484 }
  0xee   :  { %v3358_v47 = vrot.slane %v1290_v54, %v3319_v28  ;;  %5258 = vst [vmem:[#allocation25_spill] sm:$0xff] %v3383_v22 }
  0xef   :  { %v3365_v25 = vrot.slane %v1289_v53, %v3319_v28  ;;  %v1291_v16 = vcombine.high %v1289_v53, %v1289_v53  ;;  %v3372_v19 = vrot.slane %v1242_v15, %v3319_v28 }
  0xf0   :  { %1605 = vbcast.lane.b32.xlu1 %v1599_v46, 264 }
  0xf1   :  { %1601 = vbcast.lane.b32.xlu0 %v1599_v46, 256  ;;  %v3376_v29 = vrot.slane %v1291_v16, %v3319_v28  ;;  %v3387_v24 = vpop.permute.xlu0 %488  ;;  %v3393_v39 = vpop.permute.xlu1 %1572  ;;  %v1321_v0 = vcombine.high %v3365_v25, %v3365_v25 }
  0xf2   :  { %5260 = vst [vmem:[#allocation27_spill] sm:$0xff] %v3387_v24  ;;  %5261 = vst [vmem:[#allocation28_spill] sm:$0xff] %v3393_v39 }
  0xf4   :  { %1528 = vbcast.lane.b32.xlu1 %v1522_v51, 264 }
  0xf5   :  { %1524 = vbcast.lane.b32.xlu0 %v1522_v51, 256  ;;  %v3391_v34 = vpop.permute.xlu0 %1480  ;;  %v3397_v41 = vpop.permute.xlu1 %415 }
  0xf6   :  { %5262 = vst [vmem:[#allocation29_spill] sm:$0xff] %v3397_v41 }
  0xf8   :  { %1616 = vbcast.lane.b32.xlu1 %v1610_v10, 264 }
  0xf9   :  { %1612 = vbcast.lane.b32.xlu0 %v1610_v10, 256  ;;  %v3395_v40 = vpop.permute.xlu0 %1568  ;;  %v3401_v46 = vpop.permute.xlu1 %503 }
  0xfa   :  { %5264 = vst [vmem:[#allocation31_spill] sm:$0xff] %v3401_v46  ;;  %v142_v46 = vrot.slane %v3324_v35, %v3319_v28 }
  0xfc   :  { %993 = vrot.lane.b32.xlu1 %v3340_v45, %s3099_s29  ;;  %v158_v41 = vrot.slane %v142_v46, %v3319_v28 }
  0xfd   :  { %991 = vrot.lane.b32.xlu0 %v3324_v35, %s3099_s29  ;;  %v3405_v49 = vpop.permute.xlu1 %1495 }
  0xfe   :  { %5266 = vst [vmem:[#allocation33_spill] sm:$0xff] %v3405_v49 }
 0x100   :  { %2084 = vrot.lane.b32.xlu1 %v1216_v38, %s3099_s29  ;;  %v3399_v38 = vpop.permute.xlu0 %411 }
 0x101   :  { %2082 = vrot.lane.b32.xlu0 %v1215_v30, %s3099_s29  ;;  %5263 = vst [vmem:[#allocation30_spill] sm:$0xff] %v3399_v38  ;;  %v3409_v53 = vpop.permute.xlu1 %1583 }
 0x102   :  { %5267 = vst [vmem:[#allocation34_spill] sm:$0xff] %v3409_v53 }
 0x104   :  { %v3403_v30 = vpop.permute.xlu0 %499 }
 0x105   :  { %5265 = vst [vmem:[#allocation32_spill] sm:$0xff] %v3403_v30  ;;  %v3413_v10 = vpop.permute.xlu1 %426  ;;  %v149_v30 = vrot.slane %v135_v12, %v3319_v28  ;;  %v1271_v12 = vcombine.high %v3331_v6, %v3331_v6 }
 0x106   :  { %5269 = vst [vmem:[#allocation36_spill] sm:$0xff] %v3413_v10  ;;  %v191_v10 = vrot.slane %v3340_v45, %v3319_v28 }
 0x108   :  { %v3407_v51 = vpop.permute.xlu0 %1491 }
 0x109   :  { %v3417_v16 = vpop.permute.xlu1 %514 }
 0x10a   :  { %5271 = vst [vmem:[#allocation38_spill] sm:$0xff] %v3417_v16  ;;  %v150_v16 = vcombine.high %v142_v46, %v142_v46  ;;  %v165_v46 = vrot.slane %v149_v30, %v3319_v28 }
 0x10c   :  { %v3411_v54 = vpop.permute.xlu0 %1579  ;;  %v172_v38 = vrot.slane %v150_v16, %v3319_v28 }
 0x10d   :  { %5268 = vst [vmem:[#allocation35_spill] sm:$0xff] %v3411_v54  ;;  %v3421_v37 = vpop.permute.xlu1 %1506  ;;  %v181_v54 = vcombine.high %v165_v46, %v165_v46 }
 0x10e   :  { %5273 = vst [vmem:[#allocation40_spill] sm:$0xff] %v3421_v37  ;;  %v207_v37 = vrot.slane %v191_v10, %v3319_v28 }
 0x110   :  { %v3415_v15 = vpop.permute.xlu0 %422 }
 0x111   :  { %5270 = vst [vmem:[#allocation37_spill] sm:$0xff] %v3415_v15  ;;  %v3425_v21 = vpop.permute.xlu1 %1594  ;;  %v151_v15 = vcombine.high %v149_v30, %v149_v30  ;;  %v3469_v30 = vrot.slane %v3335_v43, %v3180_v11 }
 0x112   :  { %5275 = vst [vmem:[#allocation42_spill] sm:$0xff] %v3425_v21  ;;  %v1272_v21 = vcombine.high %v3335_v43, %v3335_v43  ;;  %v1320_v43 = vcombine.high %v3353_v55, %v3353_v55 }
 0x113   :  { %v179_v16 = vrot.slane %v151_v15, %v3319_v28 }
 0x114   :  { %v3419_v42 = vpop.permute.xlu0 %510 }
 0x115   :  { %5272 = vst [vmem:[#allocation39_spill] sm:$0xff] %v3419_v42  ;;  %v3434_v24 = vpop.permute.xlu1 %437  ;;  %v184_v42 = vcombine.high %v3340_v45, %v3340_v45  ;;  %v1273_v45 = vcombine.high %v3338_v44, %v3338_v44  ;;  %v183_v50 = vcombine.high %v179_v16, %v179_v16 }
 0x116   :  { %5277 = vst [vmem:[#allocation44_spill] sm:$0xff] %v3434_v24  ;;  %v199_v24 = vcombine.high %v191_v10, %v191_v10  ;;  %v3481_v10 = vrot.slane %v158_v41, %v3180_v11 }
 0x117   :  { %v198_v35 = vrot.slane %v184_v42, %v3319_v28  ;;  %v3461_v42 = vrot.slane %v3338_v44, %v3180_v11  ;;  %v3476_v44 = vrot.slane %v1272_v21, %v3180_v11 }
 0x118   :  { %v3423_v32 = vpop.permute.xlu0 %1502  ;;  %v221_v53 = vrot.slane %v199_v24, %v3319_v28  ;;  %v1322_v24 = vcombine.high %v3358_v47, %v3358_v47 }
 0x119   :  { %5274 = vst [vmem:[#allocation41_spill] sm:$0xff] %v3423_v32  ;;  %v3447_v22 = vpop.permute.xlu1 %525  ;;  %v3465_v32 = vrot.slane %v1271_v12, %v3180_v11  ;;  %v200_v15 = vcombine.high %v198_v35, %v198_v35  ;;  %v3484_v12 = vrot.slane %v172_v38, %v3180_v11 }
 0x11a   :  { %5279 = vst [vmem:[#allocation46_spill] sm:$0xff] %v3447_v22  ;;  %v182_v22 = vcombine.high %v172_v38, %v172_v38  ;;  %v3500_v38 = vrot.slane %v165_v46, %v3180_v11  ;;  %v231_v60 = vcombine.high %v221_v53, %v221_v53  ;;  %v3523_v46 = vrot.slane %v1320_v43, %v3180_v11 }
 0x11b   :  { %v228_v36 = vrot.slane %v200_v15, %v3319_v28 }
 0x11c   :  { %v3432_v23 = vpop.permute.xlu0 %1590  ;;  %v3496_v62 = vrot.slane %v182_v22, %v3180_v11  ;;  %5282 = vst [vmem:[#allocation49_spill] sm:$0xff] %v3500_v38  ;;  %v3512_v22 = vrot.slane %v183_v50, %v3180_v11  ;;  %v3532_v50 = vrot.slane %v221_v53, %v3180_v11  ;;  %v3552_v53 = vrot.slane %v1321_v0, %v3180_v11 }
 0x11d   :  { %5276 = vst [vmem:[#allocation43_spill] sm:$0xff] %v3432_v23  ;;  %v180_v23 = vcombine.high %v158_v41, %v158_v41  ;;  %v214_v41 = vrot.slane %v198_v35, %v3319_v28  ;;  %v3516_v35 = vrot.slane %v3353_v55, %v3180_v11  ;;  %v3520_v28 = vrot.slane %v3358_v47, %v3180_v11 }
 0x11e   :  { %5285 = vst [vmem:[#allocation52_spill] sm:$0xff] %v3512_v22  ;;  %v3541_v47 = vrot.slane %v3365_v25, %v3180_v11  ;;  %v232_v43 = vcombine.high %v228_v36, %v228_v36  ;;  %5291 = vst [vmem:[#allocation58_spill] sm:$0xff] %v3552_v53  ;;  %v1323_v53 = vcombine.high %v3376_v29, %v3376_v29 }
 0x11f   :  { %v3493_v21 = vrot.slane %v180_v23, %v3180_v11  ;;  %v3509_v23 = vrot.slane %v181_v54, %v3180_v11  ;;  %v3529_v54 = vrot.slane %v207_v37, %v3180_v11  ;;  %v230_v15 = vcombine.high %v214_v41, %v214_v41 }
 0x120   :  { %v3442_v20 = vpop.permute.xlu0 %433  ;;  %5288 = vst [vmem:[#allocation55_spill] sm:$0xff] %v3541_v47  ;;  %v3592_v14 = vrot.slane %v232_v43, %v3180_v11 }
 0x121   :  { %5278 = vst [vmem:[#allocation45_spill] sm:$0xff] %v3442_v20  ;;  %v3457_v20 = vrot.slane %v3331_v6, %v3180_v11  ;;  %v3473_v6 = vrot.slane %v1273_v45, %v3180_v11  ;;  %v3490_v45 = vpop.permute.xlu1 %1517  ;;  %5284 = vst [vmem:[#allocation51_spill] sm:$0xff] %v3509_v23 }
 0x122   :  { %5281 = vst [vmem:[#allocation48_spill] sm:$0xff] %v3490_v45  ;;  %v3506_v45 = vrot.slane %v179_v16, %v3180_v11  ;;  %v3526_v16 = vrot.slane %v1322_v24, %v3180_v11  ;;  %v3544_v24 = vrot.slane %v231_v60, %v3180_v11  ;;  %v1274_v60 = vcombine.high %v3372_v19, %v3372_v19 }
 0x123   :  { %5295 = vst [vmem:[#allocation62_spill] sm:$0xff] %v3592_v14 }
 0x124   :  { %v3478_v2 = vpop.permute.xlu0 %521  ;;  %5283 = vst [vmem:[#allocation50_spill] sm:$0xff] %v3506_v45  ;;  %5286 = vst [vmem:[#allocation53_spill] sm:$0xff] %v3526_v16 }
 0x125   :  { %5280 = vst [vmem:[#allocation47_spill] sm:$0xff] %v3478_v2  ;;  %v229_v2 = vcombine.high %v207_v37, %v207_v37  ;;  %v3547_v37 = vrot.slane %v214_v41, %v3180_v11  ;;  %v3563_v41 = vrot.slane %v228_v36, %v3180_v11 }
 0x127   :  { %v3535_v55 = vrot.slane %v229_v2, %v3180_v11  ;;  %5289 = vst [vmem:[#allocation56_spill] sm:$0xff] %v3547_v37  ;;  %5292 = vst [vmem:[#allocation59_spill] sm:$0xff] %v3563_v41  ;;  %v3580_v41 = vrot.slane %v230_v15, %v3180_v11  ;;  %v3601_v15 = vrot.slane %v1274_v60, %v3180_v11 }
 0x128   :  { %v3537_v22 = vpop.permute.xlu0 %1513 }
 0x129   :  { %5287 = vst [vmem:[#allocation54_spill] sm:$0xff] %v3537_v22  ;;  %5293 = vst [vmem:[#allocation60_spill] sm:$0xff] %v3580_v41 }
 0x12a   :  { %5298 = vst [vmem:[#allocation65_spill] sm:$0xff] %v3601_v15 }
 0x15a   :  { %v3549_v23 = vpop.permute.xlu1 %1404 }
 0x15b   :  { %5290 = vst [vmem:[#allocation57_spill] sm:$0xff] %v3549_v23  ;;  %v1410_v2 = vmul.f32 %v3549_v23, %v3457_v20  ;;  %v1412_v22 = vmul.f32 %v3549_v23, %v3461_v42  ;;  %v1414_v25 = vmul.f32 %v3549_v23, %v3465_v32  ;;  %v1416_v45 = vmul.f32 %v3549_v23, %v3473_v6  ;;  %v3594_v49 = vpop.permute.xlu0 %313 }
 0x15c   :  { %v1418_v0 = vmul.f32 %v3549_v23, %v3469_v30  ;;  %v1426_v47 = vmul.f32 %v3549_v23, %v3516_v35  ;;  %v1428_v58 = vmul.f32 %v3549_v23, %v3520_v28  ;;  %v1430_v56 = vmul.f32 %v3549_v23, %v3523_v46  ;;  %5296 = vst [vmem:[#allocation63_spill] sm:$0xff] %v3594_v49 }
 0x15d   :  { %v1432_v36 = vmul.f32 %v3549_v23, %v3526_v16  ;;  %v3583_v39 = vadd.f32 %v3303_v5, %v1410_v2  ;;  %v3586_v18 = vadd.f32 %v3310_v9, %v1412_v22  ;;  %v3589_v27 = vadd.f32 %v3367_v17, %v1414_v25 }
 0x15e   :  { %v3598_v16 = vrot.slane %v3372_v19, %v3180_v11  ;;  %v3605_v5 = vrot.slane %v3376_v29, %v3180_v11  ;;  %v3609_v9 = vmul.f32 %v3549_v23, %v3476_v44  ;;  %v3612_v17 = vadd.f32 %v3391_v34, %v1416_v45 }
 0x15f   :  { %5294 = vst [vmem:[#allocation61_spill] sm:$0xff] %v3589_v27  ;;  %v3615_v22 = vadd.f32 %v3407_v51, %v1418_v0  ;;  %v3618_v19 = vrot.slane %v1323_v53, %v3180_v11  ;;  %v3621_v43 = vadd.f32 %v3314_v26, %v1426_v47  ;;  %v3624_v2 = vadd.f32 %v3321_v31, %v1428_v58  ;;  %v2845_v47 = vld [vmem:[%s5157_s4 + $0x8] sm:$0xff]  }
 0x160   :  { %5297 = vst [vmem:[#allocation64_spill] sm:$0xff] %v3598_v16  ;;  %5299 = vst [vmem:[#allocation66_spill] sm:$0xff] %v3605_v5  ;;  %v3627_v29 = vadd.f32 %v3379_v52, %v1430_v56  ;;  %v3630_v25 = vadd.f32 %v3395_v40, %v1432_v36  ;;  %v1650_v34 = vsel %vm64_vm0, %v3583_v39, -inf  ;;  %v1659_v51 = vsel %vm64_vm0, %v3586_v18, -inf  ;;  %v2844_v40 = vld [vmem:[%s5157_s4] sm:$0xff]  }
 0x161   :  { %5300 = vst [vmem:[#allocation67_spill] sm:$0xff] %v3609_v9  ;;  %5301 = vst [vmem:[#allocation68_spill] sm:$0xff] %v3612_v17  ;;  %v1668_v45 = vsel %vm64_vm0, %v3589_v27, -inf  ;;  %v319_v26 = vmul.f32 %v3594_v49, %v3481_v10  ;;  %v321_v58 = vmul.f32 %v3594_v49, %v3484_v12  ;;  %v323_v56 = vmul.f32 %v3594_v49, %v3493_v21 }
 0x162   :  { %5302 = vst [vmem:[#allocation69_spill] sm:$0xff] %v3615_v22  ;;  %5303 = vst [vmem:[#allocation70_spill] sm:$0xff] %v3618_v19  ;;  %v325_v31 = vmul.f32 %v3594_v49, %v3496_v62  ;;  %v335_v52 = vmul.f32 %v3594_v49, %v3529_v54  ;;  %v1677_v53 = vsel %vm64_vm0, %v3612_v17, -inf  ;;  %v3658_v60 = vsel %vm64_vm0, %v3615_v22, -inf  ;;  %v3672_v22 = vpop.permute.xlu1 %1406  ;;  %2803 = vmatprep.subr.bf16.mxu1 %v2844_v40 }
 0x163   :  { %5304 = vst [vmem:[#allocation71_spill] sm:$0xff] %v3627_v29  ;;  %5305 = vst [vmem:[#allocation72_spill] sm:$0xff] %v3630_v25  ;;  %v337_v0 = vmul.f32 %v3594_v49, %v3532_v50  ;;  %v339_v36 = vmul.f32 %v3594_v49, %v3535_v55  ;;  %v1722_v11 = vsel %vm64_vm0, %v3621_v43, -inf  ;;  %v1731_v9 = vsel %vm64_vm0, %v3624_v2, -inf  ;;  %2804 = vmatpush3.bf16.msra.mxu1 %v2844_v40 }
 0x164   :  { %v1740_v14 = vsel %vm64_vm0, %v3627_v29, -inf  ;;  %v341_v17 = vmul.f32 %v3594_v49, %v3544_v24  ;;  %v3676_v41 = vsel %vm64_vm0, %v3630_v25, -inf  ;;  %v3680_v19 = vmul.f32 %v3594_v49, %v3500_v38  ;;  %2805 = vmatprep.subr.bf16.mxu1 %v2845_v47 }
 0x165   :  { %v3684_v5 = vmul.f32 %v3594_v49, %v3547_v37  ;;  %v3687_v15 = vadd.f32 %v3279_v57, %v319_v26  ;;  %v3690_v16 = vadd.f32 %v3283_v59, %v321_v58  ;;  %v3693_v23 = vadd.f32 %v3295_v1, %v323_v56 }
 0x166   :  { %5306 = vst [vmem:[#allocation73_spill] sm:$0xff] %v3680_v19  ;;  %v3696_v25 = vadd.f32 %v3345_v48, %v325_v31  ;;  %v3699_v38 = vadd.f32 %v3287_v61, %v335_v52  ;;  %v3702_v19 = vadd.f32 %v3291_v63, %v337_v0  ;;  %v3705_v57 = vadd.f32 %v3299_v3, %v339_v36 }
 0x167   :  { %5307 = vst [vmem:[#allocation74_spill] sm:$0xff] %v3684_v5  ;;  %5308 = vst [vmem:[#allocation75_spill] sm:$0xff] %v3687_v15  ;;  %v1411_v59 = vmul.f32 %v3672_v22, %v3457_v20  ;;  %v1413_v1 = vmul.f32 %v3672_v22, %v3461_v42  ;;  %v3712_v26 = vadd.f32 %v3355_v8, %v341_v17  ;;  %v3722_v3 = vsel %vm64_vm0, %v3687_v15, -inf  ;;  %v5321_v15 = vld [vmem:[#allocation28_spill] sm:$0xff] }
 0x168   :  { %5309 = vst [vmem:[#allocation76_spill] sm:$0xff] %v3690_v16  ;;  %5310 = vst [vmem:[#allocation77_spill] sm:$0xff] %v3699_v38  ;;  %v1415_v61 = vmul.f32 %v3672_v22, %v3465_v32  ;;  %v1417_v48 = vmul.f32 %v3672_v22, %v3473_v6  ;;  %v1419_v63 = vmul.f32 %v3672_v22, %v3469_v30  ;;  %2806 = vmatpush3.bf16.msra.mxu1 %v2845_v47 }
 0x169   :  { %5311 = vst [vmem:[#allocation78_spill] sm:$0xff] %v3702_v19  ;;  %5312 = vst [vmem:[#allocation79_spill] sm:$0xff] %v3705_v57  ;;  %v1427_v20 = vmul.f32 %v3672_v22, %v3516_v35  ;;  %v1429_v8 = vmul.f32 %v3672_v22, %v3520_v28  ;;  %v1431_v42 = vmul.f32 %v3672_v22, %v3523_v46  ;;  %v3744_v35 = vsel %vm64_vm0, %v3690_v16, -inf  ;;  %v5315_v28 = vld [vmem:[#allocation33_spill] sm:$0xff]  ;;  %v5317_v46 = vld [vmem:[#allocation19_spill] sm:$0xff] }
 0x16a   :  { %5313 = vst [vmem:[#allocation80_spill] sm:$0xff] %v3712_v26  ;;  %v3731_v32 = vadd.f32 %v3301_v4, %v1411_v59  ;;  %v3734_v6 = vadd.f32 %v3305_v7, %v1413_v1  ;;  %v3737_v30 = vadd.f32 %v3362_v13, %v1415_v61  ;;  %v3740_v17 = vadd.f32 %v3389_v33, %v1417_v48  ;;  %v5318_v4 = vld [vmem:[#allocation20_spill] sm:$0xff]  ;;  %v5319_v7 = vld [vmem:[#allocation23_spill] sm:$0xff] }
 0x16b   :  { %5314 = vst [vmem:[#allocation81_spill] sm:$0xff] %v3744_v35  ;;  %v3747_v58 = vadd.f32 %v5315_v28, %v1419_v63  ;;  %v3750_v56 = vadd.f32 %v5317_v46, %v1427_v20  ;;  %v3753_v31 = vadd.f32 %v5318_v4, %v1429_v8  ;;  %v3756_v52 = vadd.f32 %v5319_v7, %v1431_v42  ;;  %v5320_v20 = vld [vmem:[#allocation53_spill] sm:$0xff] }
 0x16c   :  { %v1651_v13 = vsel %vm64_vm0, %v3731_v32, -inf  ;;  %v1660_v33 = vsel %vm64_vm0, %v3734_v6, -inf  ;;  %v1669_v40 = vsel %vm64_vm0, %v3737_v30, -inf  ;;  %v1678_v59 = vsel %vm64_vm0, %v3740_v17, -inf }
 0x16d   :  { %5316 = vst [vmem:[#allocation33_spill] sm:$0xff] %v3747_v58  ;;  %v1652_v47 = vmax.f32 %v1650_v34, %v1651_v13  ;;  %v1661_v0 = vmax.f32 %v1659_v51, %v1660_v33  ;;  %v1670_v36 = vmax.f32 %v1668_v45, %v1669_v40  ;;  %v1679_v1 = vmax.f32 %v1677_v53, %v1678_v59 }
 0x16e   :  { %v1687_v61 = vsel %vm64_vm0, %v3747_v58, -inf  ;;  %v1723_v48 = vsel %vm64_vm0, %v3750_v56, -inf  ;;  %v1732_v63 = vsel %vm64_vm0, %v3753_v31, -inf  ;;  %v1433_v8 = vmul.f32 %v3672_v22, %v5320_v20 }
 0x16f   :  { %v1653_v42 = vrot.slane %v1652_v47, 4  ;;  %v1662_v34 = vrot.slane %v1661_v0, 4  ;;  %v1671_v51 = vrot.slane %v1670_v36, 4  ;;  %v1680_v45 = vrot.slane %v1679_v1, 4 }
 0x170   :  { %v1724_v28 = vmax.f32 %v1722_v11, %v1723_v48  ;;  %v1733_v46 = vmax.f32 %v1731_v9, %v1732_v63  ;;  %v1741_v53 = vsel %vm64_vm0, %v3756_v52, -inf  ;;  %v1688_v33 = vmax.f32 %v3658_v60, %v1687_v61 }
 0x171   :  { %v1654_v4 = vmax.f32 %v1652_v47, %v1653_v42  ;;  %v1663_v7 = vmax.f32 %v1661_v0, %v1662_v34  ;;  %v1672_v13 = vmax.f32 %v1670_v36, %v1671_v51  ;;  %v1681_v40 = vmax.f32 %v1679_v1, %v1680_v45 }
 0x172   :  { %v1725_v59 = vrot.slane %v1724_v28, 4  ;;  %v1734_v58 = vrot.slane %v1733_v46, 4  ;;  %v1742_v16 = vmax.f32 %v1740_v14, %v1741_v53  ;;  %v3778_v20 = vadd.f32 %v5321_v15, %v1433_v8 }
 0x173   :  { %v1655_v5 = vrot.slane %v1654_v4, 2  ;;  %v1664_v49 = vrot.slane %v1663_v7, 2  ;;  %v1673_v37 = vrot.slane %v1672_v13, 2  ;;  %v1682_v11 = vrot.slane %v1681_v40, 2 }
 0x174   :  { %v1726_v9 = vmax.f32 %v1724_v28, %v1725_v59  ;;  %v1735_v48 = vmax.f32 %v1733_v46, %v1734_v58  ;;  %v1743_v63 = vrot.slane %v1742_v16, 4  ;;  %v1689_v36 = vrot.slane %v1688_v33, 4 }
 0x175   :  { %v1656_v35 = vmax.f32 %v1654_v4, %v1655_v5  ;;  %v1665_v47 = vmax.f32 %v1663_v7, %v1664_v49  ;;  %v1674_v0 = vmax.f32 %v1672_v13, %v1673_v37  ;;  %v1683_v42 = vmax.f32 %v1681_v40, %v1682_v11 }
 0x176   :  { %v1727_v60 = vrot.slane %v1726_v9, 2  ;;  %v1736_v1 = vrot.slane %v1735_v48, 2  ;;  %v1744_v61 = vmax.f32 %v1742_v16, %v1743_v63  ;;  %v1750_v15 = vsel %vm64_vm0, %v3778_v20, -inf }
 0x177   :  { %v1657_v34 = vrot.slane %v1656_v35, 1  ;;  %v1666_v14 = vrot.slane %v1665_v47, 1  ;;  %v1675_v51 = vrot.slane %v1674_v0, 1  ;;  %v1684_v8 = vrot.slane %v1683_v42, 1 }
 0x178   :  { %v1728_v45 = vmax.f32 %v1726_v9, %v1727_v60  ;;  %v1737_v53 = vmax.f32 %v1735_v48, %v1736_v1  ;;  %v1745_v28 = vrot.slane %v1744_v61, 2  ;;  %v3784_v5 = vsel %vm64_vm0, %v3693_v23, -inf }
 0x179   :  { %v3788_v49 = vsel %vm64_vm0, %v3696_v25, -inf  ;;  %v1658_v37 = vmax.f32 %v1656_v35, %v1657_v34  ;;  %v1751_v16 = vmax.f32 %v3676_v41, %v1750_v15  ;;  %v1667_v58 = vmax.f32 %v1665_v47, %v1666_v14 }
 0x17a   :  { %v1729_v46 = vrot.slane %v1728_v45, 1  ;;  %v1738_v4 = vrot.slane %v1737_v53, 1  ;;  %v1746_v7 = vmax.f32 %v1744_v61, %v1745_v28  ;;  %v3793_v13 = vsel %vm64_vm0, %v3699_v38, -inf  ;;  %v3832_v28 = vpop.permute.xlu0 %315 }
 0x17b   :  { %v3797_v40 = vsel %vm64_vm0, %v3702_v19, -inf  ;;  %v1752_v59 = vrot.slane %v1751_v16, 4  ;;  %v1794_v11 = vsub.f32 %v3583_v39, %v1658_v37  ;;  %v3800_v9 = vmax.f32 %v1674_v0, %v1675_v51 }
 0x17c   :  { %v3802_v35 = vmax.f32 %v1683_v42, %v1684_v8  ;;  %v3804_v41 = vmax.f32 %v1688_v33, %v1689_v36  ;;  %v1747_v48 = vrot.slane %v1746_v7, 1  ;;  %v3808_v63 = vsel %vm64_vm0, %v3705_v57, -inf }
 0x17d   :  { %5322 = vst [vmem:[#allocation19_spill] sm:$0xff] %v3800_v9  ;;  %v1730_v47 = vmax.f32 %v1728_v45, %v1729_v46  ;;  %v1753_v60 = vmax.f32 %v1751_v16, %v1752_v59  ;;  %v1795_v1 = vsub.f32 %v3731_v32, %v1658_v37  ;;  %v3813_v61 = vsel %vm64_vm0, %v3712_v26, -inf  ;;  %v5359_v32 = vld [vmem:[#allocation34_spill] sm:$0xff] }
 0x17e   :  { %5323 = vst [vmem:[#allocation20_spill] sm:$0xff] %v3802_v35  ;;  %5324 = vst [vmem:[#allocation23_spill] sm:$0xff] %v3804_v41  ;;  %v1739_v39 = vmax.f32 %v1737_v53, %v1738_v4  ;;  %v3815_v0 = vmax.f32 %v1746_v7, %v1747_v48  ;;  %v1796_v42 = vsub.f32 %v3586_v18, %v1667_v58  ;;  %v1826_v14 = vmul.f32 1.442695, %v1794_v11 }
 0x17f   :  { %v3820_v33 = vmul.f32 %v3672_v22, %v3476_v44  ;;  %v1754_v36 = vrot.slane %v1753_v60, 2  ;;  %v1797_v34 = vsub.f32 %v3734_v6, %v1667_v58  ;;  %v1799_v15 = vsub.f32 %v3737_v30, %v3800_v9 }
 0x180   :  { %5325 = vst [vmem:[#allocation53_spill] sm:$0xff] %v3815_v0  ;;  %v1801_v8 = vsub.f32 %v3740_v17, %v3802_v35  ;;  %v1810_v45 = vsub.f32 %v3621_v43, %v1730_v47  ;;  %v1811_v44 = vsub.f32 %v3750_v56, %v1730_v47  ;;  %v1828_v53 = vmul.f32 1.442695, %v1795_v1  ;;  %v5328_v47 = vld [vmem:[#allocation13_spill] sm:$0xff]  ;;  %v5330_v1 = vld [vmem:[#allocation14_spill] sm:$0xff] }
 0x181   :  { %5326 = vst [vmem:[#allocation28_spill] sm:$0xff] %v3820_v33  ;;  %v1755_v18 = vmax.f32 %v1753_v60, %v1754_v36  ;;  %v1812_v6 = vsub.f32 %v3624_v2, %v1739_v39  ;;  %v1813_v37 = vsub.f32 %v3753_v31, %v1739_v39  ;;  %v1830_v58 = vmul.f32 1.442695, %v1796_v42  ;;  %v5333_v36 = vld [vmem:[#allocation15_spill] sm:$0xff] }
 0x182   :  { %v1815_v17 = vsub.f32 %v3756_v52, %v3815_v0  ;;  %2852 = vpow2.f32 %v1826_v14  ;;  %v1832_v46 = vmul.f32 1.442695, %v1797_v34  ;;  %v1836_v43 = vmul.f32 1.442695, %v1799_v15  ;;  %v5335_v14 = vld [vmem:[#allocation21_spill] sm:$0xff] }
 0x183   :  { %v1756_v30 = vrot.slane %v1755_v18, 1  ;;  %v320_v56 = vmul.f32 %v3832_v28, %v3481_v10  ;;  %v322_v4 = vmul.f32 %v3832_v28, %v3484_v12  ;;  %v324_v2 = vmul.f32 %v3832_v28, %v3493_v21 }
 0x184   :  { %2854 = vpow2.f32 %v1828_v53  ;;  %v1840_v31 = vmul.f32 1.442695, %v1801_v8  ;;  %v1858_v7 = vmul.f32 1.442695, %v1810_v45  ;;  %v1860_v59 = vmul.f32 1.442695, %v1811_v44 }
 0x185   :  { %2856 = vpow2.f32 %v1830_v58  ;;  %v326_v52 = vmul.f32 %v3832_v28, %v3496_v62  ;;  %v336_v11 = vmul.f32 %v3832_v28, %v3529_v54  ;;  %v338_v10 = vmul.f32 %v3832_v28, %v3532_v50  ;;  %v5332_v62 = vld [vmem:[#allocation17_spill] sm:$0xff]  ;;  %v5336_v8 = vld [vmem:[#allocation16_spill] sm:$0xff]  ;;  %v5338_v45 = vld [vmem:[#allocation18_spill] sm:$0xff] }
 0x186   :  { %v3852_v48 = vmax.f32 %v1755_v18, %v1756_v30  ;;  %2858 = vpow2.f32 %v1832_v46  ;;  %v1864_v12 = vmul.f32 1.442695, %v1813_v37  ;;  %v340_v21 = vmul.f32 %v3832_v28, %v3535_v55  ;;  %v5340_v30 = vld [vmem:[#allocation81_spill] sm:$0xff] }
 0x187   :  { %2860 = vpow2.f32 %v1836_v43  ;;  %v3857_v60 = vadd.f32 %v5328_v47, %v320_v56  ;;  %v3860_v39 = vadd.f32 %v5330_v1, %v322_v4  ;;  %v3863_v42 = vadd.f32 %v5332_v62, %v324_v2  ;;  %v5342_v43 = vld [vmem:[#allocation22_spill] sm:$0xff] }
 0x188   :  { %5327 = vst [vmem:[#allocation82_spill] sm:$0xff] %v3852_v48  ;;  %2862 = vpow2.f32 %v1840_v31  ;;  %v1862_v54 = vmul.f32 1.442695, %v1812_v6  ;;  %v342_v50 = vmul.f32 %v3832_v28, %v3544_v24  ;;  %v3868_v34 = vadd.f32 %v5333_v36, %v336_v11 }
 0x189   :  { %5329 = vst [vmem:[#allocation13_spill] sm:$0xff] %v3857_v60  ;;  %5331 = vst [vmem:[#allocation14_spill] sm:$0xff] %v3860_v39  ;;  %2864 = vpow2.f32 %v1860_v59  ;;  %v1868_v55 = vmul.f32 1.442695, %v1815_v17  ;;  %v3871_v15 = vadd.f32 %v5335_v14, %v326_v52  ;;  %v3874_v18 = vadd.f32 %v5336_v8, %v338_v10 }
 0x18a   :  { %5334 = vst [vmem:[#allocation17_spill] sm:$0xff] %v3868_v34  ;;  %v3877_v44 = vadd.f32 %v5338_v45, %v340_v21  ;;  %v560_v53 = vsel %vm64_vm0, %v3857_v60, -inf  ;;  %v569_v24 = vsel %vm64_vm0, %v3860_v39, -inf  ;;  %v578_v6 = vsel %vm64_vm0, %v3863_v42, -inf  ;;  %v5402_v39 = vld [vmem:[#allocation38_spill] sm:$0xff] }
 0x18b   :  { %5337 = vst [vmem:[#allocation15_spill] sm:$0xff] %v3874_v18  ;;  %v1817_v37 = vsub.f32 %v3778_v20, %v3852_v48  ;;  %2866 = vpow2.f32 %v1864_v12  ;;  %v561_v58 = vmax.f32 %v3722_v3, %v560_v53  ;;  %v570_v17 = vmax.f32 %v5340_v30, %v569_v24  ;;  %v5344_v20 = vld [vmem:[#allocation49_spill] sm:$0xff]  ;;  %v5352_v30 = vld [vmem:[#allocation56_spill] sm:$0xff] }
 0x18c   :  { %5339 = vst [vmem:[#allocation21_spill] sm:$0xff] %v3877_v44  ;;  %v3889_v46 = vpop.eup %2852  ;;  %v3892_v56 = vadd.f32 %v5342_v43, %v342_v50  ;;  %v579_v4 = vmax.f32 %v3784_v5, %v578_v6  ;;  %v632_v2 = vsel %vm64_vm0, %v3868_v34, -inf  ;;  %v641_v31 = vsel %vm64_vm0, %v3874_v18, -inf  ;;  %v5350_v6 = vld [vmem:[#allocation57_spill] sm:$0xff] }
 0x18d   :  { %5341 = vst [vmem:[#allocation16_spill] sm:$0xff] %v3889_v46  ;;  %2868 = vpow2.f32 %v1858_v7  ;;  %v3901_v59 = vmul.f32 %v3832_v28, %v5344_v20  ;;  %v562_v3 = vrot.slane %v561_v58, 4  ;;  %v571_v52 = vrot.slane %v570_v17, 4 }
 0x18e   :  { %5343 = vst [vmem:[#allocation18_spill] sm:$0xff] %v3892_v56  ;;  %v3903_v11 = vpop.eup %2854  ;;  %v587_v10 = vsel %vm64_vm0, %v3871_v15, -inf  ;;  %v633_v5 = vmax.f32 %v3793_v13, %v632_v2  ;;  %v642_v12 = vmax.f32 %v3797_v40, %v641_v31  ;;  %v650_v21 = vsel %vm64_vm0, %v3877_v44, -inf }
 0x18f   :  { %5345 = vst [vmem:[#allocation81_spill] sm:$0xff] %v3903_v11  ;;  %v3911_v47 = vpop.eup %2856  ;;  %2870 = vpow2.f32 %v1862_v54  ;;  %v1872_v7 = vmul.f32 1.442695, %v1817_v37  ;;  %v563_v1 = vmax.f32 %v561_v58, %v562_v3  ;;  %v572_v62 = vmax.f32 %v570_v17, %v571_v52  ;;  %v5349_v54 = vld [vmem:[#allocation55_spill] sm:$0xff] }
 0x190   :  { %5346 = vst [vmem:[#allocation22_spill] sm:$0xff] %v3911_v47  ;;  %v3913_v50 = vpop.eup %2858  ;;  %v580_v36 = vrot.slane %v579_v4, 4  ;;  %v634_v14 = vrot.slane %v633_v5, 4  ;;  %v643_v8 = vrot.slane %v642_v12, 4  ;;  %v659_v45 = vsel %vm64_vm0, %v3892_v56, -inf }
 0x191   :  { %5347 = vst [vmem:[#allocation49_spill] sm:$0xff] %v3913_v50  ;;  %v3917_v13 = vpop.eup %2860  ;;  %v564_v40 = vrot.slane %v563_v1, 2  ;;  %v3920_v53 = vmax.f32 %v3788_v49, %v587_v10  ;;  %v651_v24 = vmax.f32 %v3808_v63, %v650_v21  ;;  %v1434_v37 = vmul.f32 %v5350_v6, %v5349_v54  ;;  %v1606_v63 = vpop.permute.xlu1 %1605 }
 0x192   :  { %5348 = vst [vmem:[#allocation83_spill] sm:$0xff] %v3917_v13  ;;  %v3925_v58 = vpop.eup %2862  ;;  %2872 = vpow2.f32 %v1868_v55  ;;  %v3929_v17 = vmul.f32 %v3832_v28, %v5352_v30  ;;  %v573_v43 = vrot.slane %v572_v62, 2  ;;  %v635_v2 = vmax.f32 %v633_v5, %v634_v14 }
 0x193   :  { %5351 = vst [vmem:[#allocation55_spill] sm:$0xff] %v3925_v58  ;;  %v3931_v31 = vpop.eup %2864  ;;  %2874 = vpow2.f32 %v1872_v7  ;;  %v644_v20 = vmax.f32 %v642_v12, %v643_v8  ;;  %v3934_v49 = vmax.f32 %v3813_v61, %v659_v45  ;;  %v1435_v3 = vmul.f32 %v3672_v22, %v5349_v54  ;;  %v5357_v7 = vld [vmem:[#allocation58_spill] sm:$0xff]  ;;  %v5358_v8 = vld [vmem:[#allocation35_spill] sm:$0xff]  ;;  %v1602_v54 = vpop.permute.xlu0 %1601 }
 0x194   :  { %5353 = vst [vmem:[#allocation57_spill] sm:$0xff] %v3931_v31  ;;  %v3940_v55 = vsel %vm64_vm0, %v3903_v11, 0.0  ;;  %v3944_v52 = vsel %vm64_vm0, %v3913_v50, 0.0  ;;  %v565_v10 = vmax.f32 %v563_v1, %v564_v40  ;;  %v3946_v5 = vmax.f32 %v579_v4, %v580_v36 }
 0x195   :  { %5354 = vst [vmem:[#allocation56_spill] sm:$0xff] %v3940_v55  ;;  %5355 = vst [vmem:[#allocation84_spill] sm:$0xff] %v3944_v52  ;;  %v3948_v21 = vpop.eup %2866  ;;  %v652_v12 = vrot.slane %v651_v24, 4  ;;  %v1439_v14 = vmul.f32 %v3672_v22, %v5357_v7  ;;  %v3954_v45 = vadd.f32 %v5358_v8, %v1434_v37  ;;  %v3956_v30 = vmax.f32 %v572_v62, %v573_v43  ;;  %v5369_v52 = vld [vmem:[#allocation40_spill] sm:$0xff] }
 0x196   :  { %5356 = vst [vmem:[#allocation85_spill] sm:$0xff] %v3948_v21  ;;  %v636_v16 = vrot.slane %v635_v2, 2  ;;  %v3959_v51 = vadd.f32 %v5359_v32, %v1435_v3  ;;  %v1438_v4 = vmul.f32 %v5350_v6, %v5357_v7  ;;  %v3967_v36 = vsel %vm64_vm0, %v3931_v31, 0.0 }
 0x197   :  { %v3963_v1 = vpop.eup %2868  ;;  %5361 = vst [vmem:[#allocation35_spill] sm:$0xff] %v3967_v36  ;;  %v645_v40 = vrot.slane %v644_v20, 2  ;;  %v3970_v8 = vadd.f32 %v1606_v63, %v1439_v14  ;;  %v566_v62 = vrot.slane %v565_v10, 1  ;;  %v1758_v43 = vsel %vm64_vm0, %v3954_v45, -inf  ;;  %v1529_v14 = vpop.permute.xlu1 %1528 }
 0x198   :  { %5360 = vst [vmem:[#allocation58_spill] sm:$0xff] %v3963_v1  ;;  %v1759_v32 = vsel %vm64_vm0, %v3959_v51, -inf  ;;  %v3976_v3 = vadd.f32 %v1602_v54, %v1438_v4  ;;  %v3982_v61 = vsel %vm64_vm0, %v3948_v21, 0.0  ;;  %v3984_v31 = vmax.f32 %v651_v24, %v652_v12  ;;  %v5364_v4 = vld [vmem:[#allocation64_spill] sm:$0xff]  ;;  %v5365_v12 = vld [vmem:[#allocation65_spill] sm:$0xff] }
 0x199   :  { %v3978_v7 = vpop.eup %2870  ;;  %5363 = vst [vmem:[#allocation86_spill] sm:$0xff] %v3982_v61  ;;  %v1760_v37 = vmax.f32 %v1758_v43, %v1759_v32  ;;  %v1777_v63 = vsel %vm64_vm0, %v3970_v8, -inf  ;;  %v575_v50 = vrot.slane %v3956_v30, 1  ;;  %v3989_v11 = vmax.f32 %v635_v2, %v636_v16  ;;  %v1525_v32 = vpop.permute.xlu0 %1524  ;;  %v5367_v2 = vld [vmem:[#allocation41_spill] sm:$0xff] }
 0x19a   :  { %5362 = vst [vmem:[#allocation34_spill] sm:$0xff] %v3978_v7  ;;  %v1776_v54 = vsel %vm64_vm0, %v3976_v3, -inf  ;;  %v1420_v36 = vmul.f32 %v5350_v6, %v5364_v4  ;;  %v1421_v24 = vmul.f32 %v3672_v22, %v5364_v4  ;;  %v1425_v43 = vmul.f32 %v3672_v22, %v5365_v12 }
 0x19b   :  { %v1761_v58 = vrot.slane %v1760_v37, 4  ;;  %v1778_v21 = vmax.f32 %v1776_v54, %v1777_v63  ;;  %v4001_v7 = vmax.f32 %v565_v10, %v566_v62  ;;  %v4003_v16 = vmax.f32 %v644_v20, %v645_v40  ;;  %v5370_v40 = vld [vmem:[#allocation66_spill] sm:$0xff] }
 0x19c   :  { %v3999_v61 = vpop.eup %2872  ;;  %v4006_v1 = vadd.f32 %v5367_v2, %v1420_v36  ;;  %v1424_v13 = vmul.f32 %v5350_v6, %v5365_v12  ;;  %v4013_v47 = vadd.f32 %v5369_v52, %v1421_v24  ;;  %v4015_v55 = vadd.f32 %v1529_v14, %v1425_v43  ;;  %v5371_v24 = vld [vmem:[#allocation70_spill] sm:$0xff] }
 0x19d   :  { %5366 = vst [vmem:[#allocation64_spill] sm:$0xff] %v3999_v61  ;;  %v4010_v63 = vpop.eup %2874  ;;  %v1762_v54 = vmax.f32 %v1760_v37, %v1761_v58  ;;  %v1779_v4 = vrot.slane %v1778_v21, 4  ;;  %v1436_v36 = vmul.f32 %v5350_v6, %v5370_v40  ;;  %v1437_v62 = vmul.f32 %v3672_v22, %v5370_v40  ;;  %v1617_v37 = vpop.permute.xlu1 %1616 }
 0x19e   :  { %5368 = vst [vmem:[#allocation65_spill] sm:$0xff] %v4010_v63  ;;  %v1695_v10 = vsel %vm64_vm0, %v4006_v1, -inf  ;;  %v4019_v20 = vadd.f32 %v1525_v32, %v1424_v13  ;;  %v1696_v58 = vsel %vm64_vm0, %v4013_v47, -inf  ;;  %v1714_v52 = vsel %vm64_vm0, %v4015_v55, -inf  ;;  %v5372_v32 = vld [vmem:[#allocation43_spill] sm:$0xff]  ;;  %v1613_v29 = vpop.permute.xlu0 %1612 }
 0x19f   :  { %v1763_v12 = vrot.slane %v1762_v54, 2  ;;  %v1780_v2 = vmax.f32 %v1778_v21, %v1779_v4  ;;  %v1697_v14 = vmax.f32 %v1695_v10, %v1696_v58  ;;  %v1441_v43 = vmul.f32 %v3672_v22, %v5371_v24  ;;  %v5373_v4 = vld [vmem:[#allocation42_spill] sm:$0xff] }
 0x1a0   :  { %v1713_v13 = vsel %vm64_vm0, %v4019_v20, -inf  ;;  %v4034_v63 = vadd.f32 %v5372_v32, %v1436_v36  ;;  %v4037_v0 = vadd.f32 %v5373_v4, %v1437_v62  ;;  %v1440_v58 = vmul.f32 %v5350_v6, %v5371_v24 }
 0x1a1   :  { %v1764_v40 = vmax.f32 %v1762_v54, %v1763_v12  ;;  %v1781_v61 = vrot.slane %v1780_v2, 2  ;;  %v1715_v21 = vmax.f32 %v1713_v13, %v1714_v52  ;;  %v1698_v46 = vrot.slane %v1697_v14, 4 }
 0x1a2   :  { %v4039_v9 = vadd.f32 %v1617_v37, %v1441_v43  ;;  %v1767_v10 = vsel %vm64_vm0, %v4034_v63, -inf  ;;  %v1768_v54 = vsel %vm64_vm0, %v4037_v0, -inf  ;;  %v4048_v12 = vmax.f32 %v3956_v30, %v575_v50 }
 0x1a3   :  { %v1765_v22 = vrot.slane %v1764_v40, 1  ;;  %v1782_v27 = vmax.f32 %v1780_v2, %v1781_v61  ;;  %v1716_v36 = vrot.slane %v1715_v21, 4  ;;  %v1699_v62 = vmax.f32 %v1697_v14, %v1698_v46 }
 0x1a4   :  { %v1769_v52 = vmax.f32 %v1767_v10, %v1768_v54  ;;  %v4050_v13 = vadd.f32 %v1613_v29, %v1440_v58  ;;  %v1786_v4 = vsel %vm64_vm0, %v4039_v9, -inf  ;;  %v638_v6 = vrot.slane %v3989_v11, 1 }
 0x1a5   :  { %v1766_v37 = vmax.f32 %v1764_v40, %v1765_v22  ;;  %v1783_v43 = vrot.slane %v1782_v27, 1  ;;  %v1717_v32 = vmax.f32 %v1715_v21, %v1716_v36  ;;  %v1700_v61 = vrot.slane %v1699_v62, 2 }
 0x1a6   :  { %v1770_v2 = vrot.slane %v1769_v52, 4  ;;  %v1785_v24 = vsel %vm64_vm0, %v4050_v13, -inf  ;;  %v647_v14 = vrot.slane %v4003_v16, 1 }
 0x1a7   :  { %v1818_v50 = vsub.f32 %v3954_v45, %v1766_v37  ;;  %v1819_v46 = vsub.f32 %v3959_v51, %v1766_v37  ;;  %v1784_v30 = vmax.f32 %v1782_v27, %v1783_v43  ;;  %v1718_v29 = vrot.slane %v1717_v32, 2 }
 0x1a8   :  { %v1701_v40 = vmax.f32 %v1699_v62, %v1700_v61  ;;  %v1771_v21 = vmax.f32 %v1769_v52, %v1770_v2  ;;  %v1787_v10 = vmax.f32 %v1785_v24, %v1786_v4  ;;  %v4063_v45 = vmax.f32 %v3989_v11, %v638_v6 }
 0x1a9   :  { %v1874_v58 = vmul.f32 1.442695, %v1818_v50  ;;  %v1876_v22 = vmul.f32 1.442695, %v1819_v46  ;;  %v1822_v36 = vsub.f32 %v3976_v3, %v1784_v30  ;;  %v1823_v54 = vsub.f32 %v3970_v8, %v1784_v30  ;;  %v5377_v46 = vld [vmem:[#allocation63_spill] sm:$0xff] }
 0x1aa   :  { %v1702_v48 = vrot.slane %v1701_v40, 1  ;;  %v1719_v35 = vmax.f32 %v1717_v32, %v1718_v29  ;;  %v1772_v33 = vrot.slane %v1771_v21, 2  ;;  %v1788_v41 = vrot.slane %v1787_v10, 4  ;;  %5374 = vst [vmem:[#allocation41_spill] sm:$0xff] %v4063_v45  ;;  %v5399_v8 = vld [vmem:[#allocation31_spill] sm:$0xff] }
 0x1ab   :  { %2876 = vpow2.f32 %v1874_v58  ;;  %v1882_v27 = vmul.f32 1.442695, %v1822_v36  ;;  %v1884_v51 = vmul.f32 1.442695, %v1823_v54  ;;  %v4066_v43 = vmax.f32 %v4003_v16, %v647_v14  ;;  %v5379_v36 = vld [vmem:[#allocation52_spill] sm:$0xff] }
 0x1ac   :  { %2878 = vpow2.f32 %v1876_v22  ;;  %v1703_v62 = vmax.f32 %v1701_v40, %v1702_v48  ;;  %v1720_v52 = vrot.slane %v1719_v35, 1  ;;  %v1773_v37 = vmax.f32 %v1771_v21, %v1772_v33 }
 0x1ad   :  { %5375 = vst [vmem:[#allocation40_spill] sm:$0xff] %v4066_v43  ;;  %2880 = vpow2.f32 %v1882_v27  ;;  %v1789_v3 = vmax.f32 %v1787_v10, %v1788_v41  ;;  %v5378_v10 = vld [vmem:[#allocation51_spill] sm:$0xff]  ;;  %v333_v54 = vmul.f32 %v5377_v46, %v5379_v36 }
 0x1ae   :  { %2882 = vpow2.f32 %v1884_v51  ;;  %v1804_v32 = vsub.f32 %v4006_v1, %v1703_v62  ;;  %v1805_v11 = vsub.f32 %v4013_v47, %v1703_v62  ;;  %v1721_v4 = vmax.f32 %v1719_v35, %v1720_v52  ;;  %v5376_v35 = vld [vmem:[#allocation50_spill] sm:$0xff] }
 0x1af   :  { %v1774_v48 = vrot.slane %v1773_v37, 1  ;;  %v1790_v16 = vrot.slane %v1789_v3, 2  ;;  %v329_v30 = vmul.f32 %v5377_v46, %v5376_v35  ;;  %v330_v40 = vmul.f32 %v3832_v28, %v5376_v35 }
 0x1b0   :  { %v1846_v61 = vmul.f32 1.442695, %v1804_v32  ;;  %v1848_v2 = vmul.f32 1.442695, %v1805_v11  ;;  %v1808_v24 = vsub.f32 %v4019_v20, %v1721_v4  ;;  %v1809_v41 = vsub.f32 %v4015_v55, %v1721_v4 }
 0x1b1   :  { %v1775_v50 = vmax.f32 %v1773_v37, %v1774_v48  ;;  %v1791_v47 = vmax.f32 %v1789_v3, %v1790_v16  ;;  %v331_v58 = vmul.f32 %v5377_v46, %v5378_v10  ;;  %v332_v22 = vmul.f32 %v3832_v28, %v5378_v10  ;;  %v5380_v3 = vld [vmem:[#allocation59_spill] sm:$0xff] }
 0x1b2   :  { %2884 = vpow2.f32 %v1846_v61  ;;  %v1854_v29 = vmul.f32 1.442695, %v1808_v24  ;;  %v1856_v14 = vmul.f32 1.442695, %v1809_v41  ;;  %v334_v37 = vmul.f32 %v3832_v28, %v5379_v36  ;;  %v5383_v36 = vld [vmem:[#allocation73_spill] sm:$0xff] }
 0x1b3   :  { %2886 = vpow2.f32 %v1848_v2  ;;  %v1820_v21 = vsub.f32 %v4034_v63, %v1775_v50  ;;  %v1821_v20 = vsub.f32 %v4037_v0, %v1775_v50  ;;  %v1792_v55 = vrot.slane %v1791_v47, 1  ;;  %v5381_v50 = vld [vmem:[#allocation60_spill] sm:$0xff] }
 0x1b4   :  { %2888 = vpow2.f32 %v1854_v29  ;;  %v345_v32 = vmul.f32 %v5377_v46, %v5380_v3  ;;  %v346_v11 = vmul.f32 %v3832_v28, %v5380_v3  ;;  %v5386_v3 = vld [vmem:[#allocation30_spill] sm:$0xff] }
 0x1b5   :  { %v4092_v27 = vpop.eup %2876  ;;  %2890 = vpow2.f32 %v1856_v14  ;;  %v1878_v51 = vmul.f32 1.442695, %v1820_v21  ;;  %v1880_v62 = vmul.f32 1.442695, %v1821_v20  ;;  %v1793_v52 = vmax.f32 %v1791_v47, %v1792_v55  ;;  %v5382_v20 = vld [vmem:[#allocation62_spill] sm:$0xff] }
 0x1b6   :  { %v4094_v63 = vpop.eup %2878  ;;  %v1998_v0 = vsel %vm64_vm0, %v4092_v27, 0.0  ;;  %v347_v47 = vmul.f32 %v5377_v46, %v5381_v50  ;;  %v4122_v55 = vmul.f32 %v5377_v46, %v5382_v20  ;;  %v4126_v10 = vmul.f32 %v3832_v28, %v5382_v20 }
 0x1b7   :  { %v4104_v4 = vpop.eup %2880  ;;  %v1999_v48 = vsel %vm64_vm0, %v4094_v63, 0.0  ;;  %2892 = vpow2.f32 %v1878_v51  ;;  %v1824_v16 = vsub.f32 %v4050_v13, %v1793_v52  ;;  %v1825_v61 = vsub.f32 %v4039_v9, %v1793_v52  ;;  %v5384_v51 = vld [vmem:[#allocation25_spill] sm:$0xff]  ;;  %v5385_v52 = vld [vmem:[#allocation24_spill] sm:$0xff] }
 0x1b8   :  { %v4110_v2 = vpop.eup %2882  ;;  %v2000_v24 = vadd.f32 %v1999_v48, %v1998_v0  ;;  %v2016_v41 = vsel %vm64_vm0, %v4104_v4, 0.0  ;;  %2894 = vpow2.f32 %v1880_v62  ;;  %v348_v13 = vmul.f32 %v3832_v28, %v5381_v50 }
 0x1b9   :  { %v2017_v35 = vsel %vm64_vm0, %v4110_v2, 0.0  ;;  %v1886_v29 = vmul.f32 1.442695, %v1824_v16  ;;  %v1888_v14 = vmul.f32 1.442695, %v1825_v61  ;;  %v4130_v62 = vadd.f32 %v5384_v51, %v5383_v36 }
 0x1ba   :  { %v2001_v21 = vrot.slane %v2000_v24, 4  ;;  %v2018_v9 = vadd.f32 %v2017_v35, %v2016_v41  ;;  %v4134_v0 = vadd.f32 %v5385_v52, %v3901_v59  ;;  %v4137_v48 = vadd.f32 %v5386_v3, %v329_v30  ;;  %v5387_v41 = vld [vmem:[#allocation29_spill] sm:$0xff]  ;;  %v5391_v59 = vld [vmem:[#allocation36_spill] sm:$0xff] }
 0x1bb   :  { %2896 = vpow2.f32 %v1886_v29  ;;  %v4142_v28 = vadd.f32 %v5387_v41, %v330_v40  ;;  %v5389_v29 = vld [vmem:[#allocation37_spill] sm:$0xff]  ;;  %v4152_v36 = vadd.f32 %v5391_v59, %v332_v22  ;;  %v5394_v52 = vld [vmem:[#allocation44_spill] sm:$0xff]  ;;  %v5396_v59 = vld [vmem:[#allocation27_spill] sm:$0xff]  ;;  %v4184_v18 = vadd.f32 %v5399_v8, %v346_v11 }
 0x1bc   :  { %v4139_v16 = vpop.eup %2884  ;;  %v2002_v46 = vadd.f32 %v2001_v21, %v2000_v24  ;;  %v2019_v61 = vrot.slane %v2018_v9, 4  ;;  %2898 = vpow2.f32 %v1888_v14  ;;  %v4149_v20 = vadd.f32 %v5389_v29, %v331_v58  ;;  %v5393_v30 = vld [vmem:[#allocation45_spill] sm:$0xff]  ;;  %v5395_v29 = vld [vmem:[#allocation74_spill] sm:$0xff]  ;;  %v5401_v11 = vld [vmem:[#allocation39_spill] sm:$0xff] }
 0x1bd   :  { %5388 = vst [vmem:[#allocation66_spill] sm:$0xff] %v4142_v28  ;;  %v4144_v50 = vpop.eup %2886  ;;  %v1935_v35 = vsel %vm64_vm0, %v4139_v16, 0.0  ;;  %5392 = vst [vmem:[#allocation43_spill] sm:$0xff] %v4152_v36  ;;  %v4155_v51 = vadd.f32 %v5393_v30, %v333_v54  ;;  %v4162_v3 = vadd.f32 %v5394_v52, %v334_v37  ;;  %v4170_v54 = vadd.f32 %v5396_v59, %v5395_v29  ;;  %v5397_v30 = vld [vmem:[#allocation26_spill] sm:$0xff]  ;;  %v5398_v52 = vld [vmem:[#allocation32_spill] sm:$0xff] }
 0x1be   :  { %5390 = vst [vmem:[#allocation70_spill] sm:$0xff] %v4149_v20  ;;  %v4157_v24 = vpop.eup %2888  ;;  %v2003_v14 = vrot.slane %v2002_v46, 2  ;;  %v2020_v21 = vadd.f32 %v2019_v61, %v2018_v9  ;;  %v1936_v40 = vsel %vm64_vm0, %v4144_v50, 0.0  ;;  %v4174_v1 = vadd.f32 %v5397_v30, %v3929_v17 }
 0x1bf   :  { %v4164_v41 = vpop.eup %2890  ;;  %v1937_v58 = vadd.f32 %v1936_v40, %v1935_v35  ;;  %v1953_v22 = vsel %vm64_vm0, %v4157_v24, 0.0  ;;  %v4179_v33 = vadd.f32 %v5398_v52, %v345_v32  ;;  %v5400_v29 = vrot.slane %v3920_v53, 4 }
 0x1c0   :  { %v2004_v9 = vadd.f32 %v2003_v14, %v2002_v46  ;;  %v2021_v61 = vrot.slane %v2020_v21, 2  ;;  %v1954_v37 = vsel %vm64_vm0, %v4164_v41, 0.0  ;;  %v596_v32 = vsel %vm64_vm0, %v4134_v0, -inf }
 0x1c1   :  { %v4181_v35 = vpop.eup %2892  ;;  %v1938_v40 = vrot.slane %v1937_v58, 4  ;;  %v1955_v6 = vadd.f32 %v1954_v37, %v1953_v22  ;;  %v590_v17 = vmax.f32 %v3920_v53, %v5400_v29  ;;  %v4198_v22 = vadd.f32 %v5401_v11, %v347_v47 }
 0x1c2   :  { %v4189_v59 = vpop.eup %2894  ;;  %v2005_v46 = vrot.slane %v2004_v9, 1  ;;  %v2022_v14 = vadd.f32 %v2021_v61, %v2020_v21  ;;  %v2007_v30 = vsel %vm64_vm0, %v4181_v35, 0.0  ;;  %v595_v21 = vsel %vm64_vm0, %v4130_v62, -inf }
 0x1c3   :  { %v1939_v52 = vadd.f32 %v1938_v40, %v1937_v58  ;;  %v1956_v34 = vrot.slane %v1955_v6, 4  ;;  %v2008_v8 = vsel %vm64_vm0, %v4189_v59, 0.0  ;;  %v4205_v60 = vadd.f32 %v5402_v39, %v348_v13 }
 0x1c4   :  { %v2006_v37 = vadd.f32 %v2005_v46, %v2004_v9  ;;  %v2023_v53 = vrot.slane %v2022_v14, 1  ;;  %v2009_v29 = vadd.f32 %v2008_v8, %v2007_v30  ;;  %v597_v58 = vmax.f32 %v595_v21, %v596_v32 }
 0x1c5   :  { %v4202_v61 = vpop.eup %2896  ;;  %v1940_v56 = vrot.slane %v1939_v52, 2  ;;  %v1957_v26 = vadd.f32 %v1956_v34, %v1955_v6  ;;  %v582_v9 = vrot.slane %v3946_v5, 2  ;;  %v591_v46 = vrot.slane %v590_v17, 2 }
 0x1c6   :  { %v4207_v40 = vpop.eup %2898  ;;  %v2010_v44 = vrot.slane %v2009_v29, 4  ;;  %v2025_v47 = vsel %vm64_vm0, %v4202_v61, 0.0  ;;  %2900 = vrcp.f32 %v2006_v37  ;;  %v2024_v34 = vadd.f32 %v2023_v53, %v2022_v14 }
 0x1c7   :  { %v1941_v30 = vadd.f32 %v1940_v56, %v1939_v52  ;;  %v1958_v8 = vrot.slane %v1957_v26, 2  ;;  %v2026_v11 = vsel %vm64_vm0, %v4207_v40, 0.0  ;;  %v598_v13 = vrot.slane %v597_v58, 4 }
 0x1c8   :  { %v2011_v6 = vadd.f32 %v2010_v44, %v2009_v29  ;;  %v2027_v39 = vadd.f32 %v2026_v11, %v2025_v47  ;;  %v604_v57 = vsel %vm64_vm0, %v4137_v48, -inf  ;;  %v605_v19 = vsel %vm64_vm0, %v4142_v28, -inf }
 0x1c9   :  { %v1942_v32 = vrot.slane %v1941_v30, 1  ;;  %v1959_v21 = vadd.f32 %v1958_v8, %v1957_v26  ;;  %v599_v37 = vmax.f32 %v597_v58, %v598_v13  ;;  %v606_v56 = vmax.f32 %v604_v57, %v605_v19 }
 0x1ca   :  { %v2012_v43 = vrot.slane %v2011_v6, 2  ;;  %v2028_v38 = vrot.slane %v2027_v39, 4  ;;  %v613_v14 = vsel %vm64_vm0, %v4149_v20, -inf  ;;  %v614_v44 = vsel %vm64_vm0, %v4152_v36, -inf }
 0x1cb   :  { %v1943_v52 = vadd.f32 %v1942_v32, %v1941_v30  ;;  %v1960_v45 = vrot.slane %v1959_v21, 1  ;;  %v600_v29 = vrot.slane %v599_v37, 2  ;;  %v607_v47 = vrot.slane %v606_v56, 4 }
 0x1cc   :  { %v2013_v53 = vadd.f32 %v2012_v43, %v2011_v6  ;;  %v2029_v26 = vadd.f32 %v2028_v38, %v2027_v39  ;;  %2902 = vrcp.f32 %v2024_v34  ;;  %v583_v8 = vmax.f32 %v3946_v5, %v582_v9 }
 0x1cd   :  { %v592_v11 = vmax.f32 %v590_v17, %v591_v46  ;;  %v615_v28 = vmax.f32 %v613_v14, %v614_v44  ;;  %2904 = vrcp.f32 %v1943_v52  ;;  %v608_v57 = vmax.f32 %v606_v56, %v607_v47  ;;  %v5403_v56 = vld [vmem:[#allocation47_spill] sm:$0xff] }
 0x1ce   :  { %v2014_v58 = vrot.slane %v2013_v53, 1  ;;  %v2030_v19 = vrot.slane %v2029_v26, 2  ;;  %v1961_v30 = vadd.f32 %v1960_v45, %v1959_v21  ;;  %v601_v13 = vmax.f32 %v599_v37, %v600_v29  ;;  %v5404_v21 = vld [vmem:[#allocation46_spill] sm:$0xff] }
 0x1cf   :  { %v616_v32 = vrot.slane %v615_v28, 4  ;;  %v623_v20 = vsel %vm64_vm0, %v4162_v3, -inf  ;;  %v609_v38 = vrot.slane %v608_v57, 2  ;;  %v622_v34 = vsel %vm64_vm0, %v4155_v51, -inf }
 0x1d0   :  { %v2015_v36 = vadd.f32 %v2014_v58, %v2013_v53  ;;  %v2031_v43 = vadd.f32 %v2030_v19, %v2029_v26  ;;  %v2901_v6 = vpop.eup %2900  ;;  %v584_v5 = vrot.slane %v583_v8, 1  ;;  %v593_v17 = vrot.slane %v592_v11, 1 }
 0x1d1   :  { %v617_v9 = vmax.f32 %v615_v28, %v616_v32  ;;  %v624_v46 = vmax.f32 %v622_v34, %v623_v20  ;;  %v4229_v45 = vadd.f32 %v5403_v56, %v4122_v55  ;;  %v4233_v37 = vadd.f32 %v5404_v21, %v4126_v10 }
 0x1d2   :  { %v2032_v39 = vrot.slane %v2031_v43, 1  ;;  %v654_v52 = vrot.slane %v3984_v31, 2  ;;  %2906 = vrcp.f32 %v1961_v30  ;;  %v602_v14 = vrot.slane %v601_v13, 1 }
 0x1d3   :  { %v618_v44 = vrot.slane %v617_v9, 2  ;;  %v625_v53 = vrot.slane %v624_v46, 4  ;;  %2908 = vrcp.f32 %v2015_v36  ;;  %v610_v29 = vmax.f32 %v608_v57, %v609_v38 }
 0x1d4   :  { %v2033_v26 = vadd.f32 %v2032_v39, %v2031_v43  ;;  %v5405_v28 = vrot.slane %v3934_v49, 4  ;;  %v4239_v47 = vmax.f32 %v583_v8, %v584_v5  ;;  %v4241_v55 = vmax.f32 %v592_v11, %v593_v17 }
 0x1d5   :  { %v626_v58 = vmax.f32 %v624_v46, %v625_v53  ;;  %v668_v10 = vsel %vm64_vm0, %v4174_v1, -inf  ;;  %v4246_v19 = vmul.f32 %v2901_v6, %v4092_v27  ;;  %v655_v30 = vmax.f32 %v3984_v31, %v654_v52 }
 0x1d6   :  { %v662_v20 = vmax.f32 %v3934_v49, %v5405_v28  ;;  %v667_v57 = vsel %vm64_vm0, %v4170_v54, -inf  ;;  %v2903_v32 = vpop.eup %2902  ;;  %v4252_v49 = vmul.f32 %v2901_v6, %v4094_v63  ;;  %v619_v8 = vmax.f32 %v617_v9, %v618_v44 }
 0x1d7   :  { %5406 = vst [vmem:[#allocation42_spill] sm:$0xff] %v4246_v19  ;;  %v627_v11 = vrot.slane %v626_v58, 2  ;;  %v669_v43 = vmax.f32 %v667_v57, %v668_v10  ;;  %v2905_v38 = vpop.eup %2904  ;;  %2910 = vrcp.f32 %v2033_v26  ;;  %v4254_v34 = vmax.f32 %v601_v13, %v602_v14 }
 0x1d8   :  { %v663_v36 = vrot.slane %v662_v20, 2  ;;  %5407 = vst [vmem:[#allocation50_spill] sm:$0xff] %v4252_v49  ;;  %v611_v5 = vrot.slane %v610_v29, 1  ;;  %v676_v27 = vsel %vm64_vm0, %v4179_v33, -inf  ;;  %v677_v39 = vsel %vm64_vm0, %v4184_v18, -inf }
 0x1d9   :  { %v628_v31 = vmax.f32 %v626_v58, %v627_v11  ;;  %v670_v46 = vrot.slane %v669_v43, 4  ;;  %v4261_v63 = vmul.f32 %v2903_v32, %v4104_v4  ;;  %v4264_v6 = vmul.f32 %v2903_v32, %v4110_v2 }
 0x1da   :  { %v664_v17 = vmax.f32 %v662_v20, %v663_v36  ;;  %v656_v9 = vrot.slane %v655_v30, 1  ;;  %v678_v56 = vmax.f32 %v676_v27, %v677_v39  ;;  %v620_v13 = vrot.slane %v619_v8, 1 }
 0x1db   :  { %5408 = vst [vmem:[#allocation63_spill] sm:$0xff] %v4261_v63  ;;  %5409 = vst [vmem:[#allocation51_spill] sm:$0xff] %v4264_v6  ;;  %v671_v21 = vmax.f32 %v669_v43, %v670_v46  ;;  %v685_v52 = vsel %vm64_vm0, %v4198_v22, -inf  ;;  %v686_v14 = vsel %vm64_vm0, %v4205_v60, -inf  ;;  %v4271_v44 = vmul.f32 %v2905_v38, %v4139_v16 }
 0x1dc   :  { %v4273_v53 = vmax.f32 %v610_v29, %v611_v5  ;;  %v679_v4 = vrot.slane %v678_v56, 4  ;;  %v687_v26 = vmax.f32 %v685_v52, %v686_v14  ;;  %v2907_v28 = vpop.eup %2906  ;;  %v4276_v2 = vmul.f32 %v2905_v38, %v4144_v50 }
 0x1dd   :  { %5410 = vst [vmem:[#allocation52_spill] sm:$0xff] %v4271_v44  ;;  %v629_v20 = vrot.slane %v628_v31, 1  ;;  %v665_v58 = vrot.slane %v664_v17, 1  ;;  %v672_v10 = vrot.slane %v671_v21, 2  ;;  %v2909_v36 = vpop.eup %2908  ;;  %v694_v11 = vsel %vm64_vm0, %v4229_v45, -inf }
 0x1de   :  { %5411 = vst [vmem:[#allocation59_spill] sm:$0xff] %v4276_v2  ;;  %v680_v57 = vmax.f32 %v678_v56, %v679_v4  ;;  %v688_v32 = vrot.slane %v687_v26, 4  ;;  %v695_v16 = vsel %vm64_vm0, %v4233_v37, -inf  ;;  %v4282_v29 = vmax.f32 %v619_v8, %v620_v13 }
 0x1df   :  { %v4284_v43 = vmax.f32 %v655_v30, %v656_v9  ;;  %v673_v5 = vmax.f32 %v671_v21, %v672_v10  ;;  %v696_v27 = vmax.f32 %v694_v11, %v695_v16  ;;  %v4287_v50 = vmul.f32 %v2907_v28, %v4157_v24 }
 0x1e0   :  { %v4290_v38 = vmul.f32 %v2907_v28, %v4164_v41  ;;  %v681_v46 = vrot.slane %v680_v57, 2  ;;  %v689_v39 = vmax.f32 %v687_v26, %v688_v32  ;;  %v4293_v56 = vmul.f32 %v2909_v36, %v4181_v35  ;;  %v5416_v41 = vld [vmem:[#allocation75_spill] sm:$0xff]  ;;  %v5417_v26 = vld [vmem:[#allocation76_spill] sm:$0xff] }
 0x1e1   :  { %5412 = vst [vmem:[#allocation60_spill] sm:$0xff] %v4287_v50  ;;  %v4296_v52 = vmul.f32 %v2909_v36, %v4189_v59  ;;  %v4298_v8 = vmax.f32 %v664_v17, %v665_v58  ;;  %v697_v30 = vrot.slane %v696_v27, 4  ;;  %v2911_v9 = vpop.eup %2910  ;;  %v4300_v13 = vmax.f32 %v628_v31, %v629_v20 }
 0x1e2   :  { %5413 = vst [vmem:[#allocation62_spill] sm:$0xff] %v4290_v38  ;;  %5414 = vst [vmem:[#allocation73_spill] sm:$0xff] %v4293_v56  ;;  %v674_v21 = vrot.slane %v673_v5, 1  ;;  %v682_v24 = vmax.f32 %v680_v57, %v681_v46  ;;  %v690_v14 = vrot.slane %v689_v39, 2  ;;  %v703_v28 = vsub.f32 %v5416_v41, %v4001_v7  ;;  %v5428_v41 = vld [vmem:[#allocation21_spill] sm:$0xff] }
 0x1e3   :  { %5415 = vst [vmem:[#allocation25_spill] sm:$0xff] %v4296_v52  ;;  %v698_v4 = vmax.f32 %v696_v27, %v697_v30  ;;  %v705_v35 = vsub.f32 %v5417_v26, %v4048_v12  ;;  %v707_v59 = vsub.f32 %v3693_v23, %v4239_v47  ;;  %v708_v58 = vsub.f32 %v3863_v42, %v4239_v47  ;;  %v5421_v27 = vld [vmem:[#allocation70_spill] sm:$0xff]  ;;  %v5429_v26 = vld [vmem:[#allocation13_spill] sm:$0xff] }
 0x1e4   :  { %v683_v10 = vrot.slane %v682_v24, 1  ;;  %v691_v17 = vmax.f32 %v689_v39, %v690_v14  ;;  %v709_v31 = vsub.f32 %v3696_v25, %v4241_v55  ;;  %v4313_v20 = vmul.f32 %v2911_v9, %v4202_v61  ;;  %v5424_v39 = vld [vmem:[#allocation77_spill] sm:$0xff] }
 0x1e5   :  { %v4316_v36 = vmul.f32 %v2911_v9, %v4207_v40  ;;  %v699_v57 = vrot.slane %v698_v4, 2  ;;  %v710_v32 = vsub.f32 %v3871_v15, %v4241_v55  ;;  %v4320_v11 = vmax.f32 %v673_v5, %v674_v21  ;;  %v5420_v40 = vld [vmem:[#allocation66_spill] sm:$0xff]  ;;  %v5422_v55 = vld [vmem:[#allocation43_spill] sm:$0xff]  ;;  %v5425_v9 = vld [vmem:[#allocation40_spill] sm:$0xff] }
 0x1e6   :  { %5418 = vst [vmem:[#allocation24_spill] sm:$0xff] %v4313_v20  ;;  %v711_v23 = vsub.f32 %v4130_v62, %v4254_v34  ;;  %v712_v42 = vsub.f32 %v4134_v0, %v4254_v34  ;;  %v713_v25 = vsub.f32 %v4137_v48, %v4273_v53  ;;  %v692_v61 = vrot.slane %v691_v17, 1  ;;  %v5423_v34 = vld [vmem:[#allocation41_spill] sm:$0xff] }
 0x1e7   :  { %5419 = vst [vmem:[#allocation30_spill] sm:$0xff] %v4316_v36  ;;  %v700_v47 = vmax.f32 %v698_v4, %v699_v57  ;;  %v714_v16 = vsub.f32 %v5420_v40, %v4273_v53  ;;  %v715_v46 = vsub.f32 %v5421_v27, %v4282_v29  ;;  %v4332_v15 = vmax.f32 %v682_v24, %v683_v10  ;;  %v5426_v53 = vld [vmem:[#allocation78_spill] sm:$0xff]  ;;  %v5427_v24 = vld [vmem:[#allocation79_spill] sm:$0xff] }
 0x1e8   :  { %v716_v5 = vsub.f32 %v5422_v55, %v4282_v29  ;;  %v717_v62 = vsub.f32 %v4155_v51, %v4300_v13  ;;  %v718_v0 = vsub.f32 %v4162_v3, %v4300_v13  ;;  %v719_v30 = vsub.f32 %v5424_v39, %v5423_v34  ;;  %v5431_v13 = vld [vmem:[#allocation14_spill] sm:$0xff] }
 0x1e9   :  { %v701_v48 = vrot.slane %v700_v47, 1  ;;  %v721_v21 = vsub.f32 %v5426_v53, %v5425_v9  ;;  %v735_v14 = vmul.f32 1.442695, %v703_v28  ;;  %v723_v4 = vsub.f32 %v5427_v24, %v4284_v43  ;;  %v5433_v28 = vld [vmem:[#allocation80_spill] sm:$0xff] }
 0x1ea   :  { %v724_v29 = vsub.f32 %v5428_v41, %v4284_v43  ;;  %v5430_v51 = vsub.f32 %v5429_v26, %v4001_v7  ;;  %v739_v57 = vmul.f32 1.442695, %v705_v35  ;;  %v693_v3 = vmax.f32 %v691_v17, %v692_v61  ;;  %v5434_v43 = vld [vmem:[#allocation18_spill] sm:$0xff] }
 0x1eb   :  { %2912 = vpow2.f32 %v735_v14  ;;  %v5432_v40 = vsub.f32 %v5431_v13, %v4048_v12  ;;  %v743_v55 = vmul.f32 1.442695, %v707_v59  ;;  %v4354_v39 = vmax.f32 %v700_v47, %v701_v48  ;;  %v5435_v48 = vld [vmem:[#allocation17_spill] sm:$0xff] }
 0x1ec   :  { %v737_v10 = vmul.f32 1.442695, %v5430_v51  ;;  %v725_v53 = vsub.f32 %v5433_v28, %v4298_v8  ;;  %v745_v24 = vmul.f32 1.442695, %v708_v58  ;;  %v726_v41 = vsub.f32 %v5434_v43, %v4298_v8 }
 0x1ed   :  { %v741_v27 = vmul.f32 1.442695, %v5432_v40  ;;  %v727_v7 = vsub.f32 %v4170_v54, %v4320_v11  ;;  %v747_v35 = vmul.f32 1.442695, %v709_v31  ;;  %v728_v12 = vsub.f32 %v4174_v1, %v4320_v11 }
 0x1ee   :  { %2914 = vpow2.f32 %v737_v10  ;;  %v729_v59 = vsub.f32 %v4179_v33, %v4332_v15  ;;  %v749_v17 = vmul.f32 1.442695, %v710_v32  ;;  %v730_v61 = vsub.f32 %v4184_v18, %v4332_v15 }
 0x1ef   :  { %2916 = vpow2.f32 %v739_v57  ;;  %v731_v58 = vsub.f32 %v4198_v22, %v693_v3  ;;  %v751_v8 = vmul.f32 1.442695, %v711_v23  ;;  %v732_v47 = vsub.f32 %v4205_v60, %v693_v3 }
 0x1f0   :  { %2918 = vpow2.f32 %v741_v27  ;;  %v733_v54 = vsub.f32 %v4229_v45, %v4354_v39  ;;  %v753_v31 = vmul.f32 1.442695, %v712_v42  ;;  %v734_v1 = vsub.f32 %v4233_v37, %v4354_v39  ;;  %v5437_v42 = vld [vmem:[#allocation15_spill] sm:$0xff] }
 0x1f1   :  { %2920 = vpow2.f32 %v743_v55  ;;  %v755_v33 = vmul.f32 1.442695, %v713_v25  ;;  %v757_v32 = vmul.f32 1.442695, %v714_v16  ;;  %v759_v11 = vmul.f32 1.442695, %v715_v46 }
 0x1f2   :  { %2922 = vpow2.f32 %v745_v24  ;;  %v761_v18 = vmul.f32 1.442695, %v716_v5  ;;  %v763_v15 = vmul.f32 1.442695, %v717_v62  ;;  %v765_v22 = vmul.f32 1.442695, %v718_v0 }
 0x1f3   :  { %2924 = vpow2.f32 %v747_v35  ;;  %v767_v23 = vmul.f32 1.442695, %v719_v30  ;;  %v5436_v60 = vsub.f32 %v5435_v48, %v5423_v34  ;;  %v771_v45 = vmul.f32 1.442695, %v721_v21 }
 0x1f4   :  { %2926 = vpow2.f32 %v749_v17  ;;  %v5438_v26 = vsub.f32 %v5437_v42, %v5425_v9  ;;  %v775_v51 = vmul.f32 1.442695, %v723_v4  ;;  %v777_v16 = vmul.f32 1.442695, %v724_v29 }
 0x1f5   :  { %2928 = vpow2.f32 %v751_v8  ;;  %v769_v14 = vmul.f32 1.442695, %v5436_v60  ;;  %v4380_v25 = vpop.eup %2912  ;;  %v779_v46 = vmul.f32 1.442695, %v725_v53  ;;  %v781_v5 = vmul.f32 1.442695, %v726_v41 }
 0x1f6   :  { %2930 = vpow2.f32 %v753_v31  ;;  %v773_v37 = vmul.f32 1.442695, %v5438_v26  ;;  %v4384_v0 = vmul.f32 1.442695, %v727_v7  ;;  %v4386_v34 = vmul.f32 1.442695, %v728_v12 }
 0x1f7   :  { %2932 = vpow2.f32 %v755_v33  ;;  %v799_v30 = vsel %vm64_vm0, %v4380_v25, 0.0  ;;  %v4392_v9 = vmul.f32 1.442695, %v729_v59  ;;  %v4394_v4 = vmul.f32 1.442695, %v730_v61  ;;  %v5439_v12 = vld [vmem:[#allocation67_spill] sm:$0xff] }
 0x1f8   :  { %v4382_v62 = vpop.eup %2914  ;;  %2934 = vpow2.f32 %v757_v32  ;;  %v4400_v57 = vmul.f32 1.442695, %v731_v58  ;;  %v4406_v27 = vmul.f32 1.442695, %v732_v47  ;;  %v4408_v55 = vmul.f32 1.442695, %v733_v54 }
 0x1f9   :  { %v4390_v21 = vpop.eup %2916  ;;  %2936 = vpow2.f32 %v759_v11  ;;  %v800_v29 = vsel %vm64_vm0, %v4382_v62, 0.0  ;;  %v4418_v7 = vmul.f32 1.442695, %v734_v1  ;;  %v5440_v59 = vld [vmem:[#allocation54_spill] sm:$0xff]  ;;  %v5441_v33 = vld [vmem:[#allocation23_spill] sm:$0xff] }
 0x1fa   :  { %v4398_v10 = vpop.eup %2918  ;;  %2938 = vpow2.f32 %v761_v18  ;;  %v801_v3 = vadd.f32 %v800_v29, %v799_v30  ;;  %v808_v13 = vsel %vm64_vm0, %v4390_v21, 0.0  ;;  %v4424_v17 = vadd.f32 %v5440_v59, %v5439_v12 }
 0x1fb   :  { %v4404_v40 = vpop.eup %2920  ;;  %2940 = vpow2.f32 %v763_v15  ;;  %v809_v39 = vsel %vm64_vm0, %v4398_v10, 0.0  ;;  %v5442_v32 = vrot.slane %v5441_v33, 2 }
 0x1fc   :  { %v4412_v28 = vpop.eup %2922  ;;  %2942 = vpow2.f32 %v765_v22  ;;  %v802_v53 = vrot.slane %v801_v3, 4  ;;  %v810_v24 = vadd.f32 %v809_v39, %v808_v13  ;;  %v817_v43 = vsel %vm64_vm0, %v4404_v40, 0.0 }
 0x1fd   :  { %v4416_v41 = vpop.eup %2924  ;;  %2944 = vpow2.f32 %v767_v23  ;;  %v818_v35 = vsel %vm64_vm0, %v4412_v28, 0.0  ;;  %v4437_v11 = vmax.f32 %v5441_v33, %v5442_v32 }
 0x1fe   :  { %v4426_v61 = vpop.eup %2926  ;;  %2946 = vpow2.f32 %v769_v14  ;;  %v803_v58 = vadd.f32 %v802_v53, %v801_v3  ;;  %v811_v8 = vrot.slane %v810_v24, 4  ;;  %v819_v47 = vadd.f32 %v818_v35, %v817_v43 }
 0x1ff   :  { %v4428_v54 = vpop.eup %2928  ;;  %2948 = vpow2.f32 %v771_v45  ;;  %v826_v31 = vsel %vm64_vm0, %v4416_v41, 0.0  ;;  %v827_v1 = vsel %vm64_vm0, %v4426_v61, 0.0 }
 0x200   :  { %v4439_v18 = vpop.eup %2930  ;;  %2950 = vpow2.f32 %v773_v37  ;;  %v804_v15 = vrot.slane %v803_v58, 2  ;;  %v812_v22 = vadd.f32 %v811_v8, %v810_v24  ;;  %v820_v23 = vrot.slane %v819_v47, 4 }
 0x201   :  { %v4441_v48 = vpop.eup %2932  ;;  %2952 = vpow2.f32 %v775_v51  ;;  %v828_v60 = vadd.f32 %v827_v1, %v826_v31  ;;  %v835_v14 = vsel %vm64_vm0, %v4428_v54, 0.0  ;;  %v836_v45 = vsel %vm64_vm0, %v4439_v18, 0.0 }
 0x202   :  { %v4447_v42 = vpop.eup %2934  ;;  %2954 = vpow2.f32 %v777_v16  ;;  %v805_v26 = vadd.f32 %v804_v15, %v803_v58  ;;  %v813_v30 = vrot.slane %v812_v22, 2  ;;  %v821_v29 = vadd.f32 %v820_v23, %v819_v47  ;;  %v5443_v47 = vld [vmem:[#allocation28_spill] sm:$0xff] }
 0x203   :  { %v4449_v37 = vpop.eup %2936  ;;  %2956 = vpow2.f32 %v779_v46  ;;  %v829_v3 = vrot.slane %v828_v60, 4  ;;  %v837_v13 = vadd.f32 %v836_v45, %v835_v14  ;;  %v844_v51 = vsel %vm64_vm0, %v4441_v48, 0.0 }
 0x204   :  { %v4453_v39 = vpop.eup %2938  ;;  %2958 = vpow2.f32 %v781_v5  ;;  %v806_v53 = vrot.slane %v805_v26, 1  ;;  %v814_v24 = vadd.f32 %v813_v30, %v812_v22  ;;  %v822_v43 = vrot.slane %v821_v29, 2  ;;  %v5444_v5 = vld [vmem:[#allocation48_spill] sm:$0xff] }
 0x205   :  { %v4455_v35 = vpop.eup %2940  ;;  %2960 = vpow2.f32 %v4384_v0  ;;  %v830_v16 = vadd.f32 %v829_v3, %v828_v60  ;;  %v838_v12 = vrot.slane %v837_v13, 4  ;;  %v845_v46 = vsel %vm64_vm0, %v4447_v42, 0.0 }
 0x206   :  { %v4460_v59 = vpop.eup %2942  ;;  %2962 = vpow2.f32 %v4386_v34  ;;  %v815_v58 = vrot.slane %v814_v24, 1  ;;  %v823_v8 = vadd.f32 %v822_v43, %v821_v29  ;;  %v4465_v31 = vadd.f32 %v5444_v5, %v5443_v47 }
 0x207   :  { %v4467_v1 = vpop.eup %2944  ;;  %2964 = vpow2.f32 %v4392_v9  ;;  %v831_v0 = vrot.slane %v830_v16, 2  ;;  %v839_v33 = vadd.f32 %v838_v12, %v837_v13  ;;  %v846_v32 = vadd.f32 %v845_v46, %v844_v51 }
 0x208   :  { %v4470_v15 = vpop.eup %2946  ;;  %2966 = vpow2.f32 %v4394_v4  ;;  %v4473_v22 = vadd.f32 %v806_v53, %v805_v26  ;;  %v824_v34 = vrot.slane %v823_v8, 1  ;;  %v853_v9 = vsel %vm64_vm0, %v4449_v37, 0.0 }
 0x209   :  { %v4476_v60 = vpop.eup %2948  ;;  %v832_v14 = vadd.f32 %v831_v0, %v830_v16  ;;  %v840_v45 = vrot.slane %v839_v33, 2  ;;  %v847_v30 = vrot.slane %v846_v32, 4  ;;  %2968 = vpow2.f32 %v4400_v57 }
 0x20a   :  { %v4480_v29 = vpop.eup %2950  ;;  %v4483_v3 = vadd.f32 %v815_v58, %v814_v24  ;;  %v854_v4 = vsel %vm64_vm0, %v4453_v39, 0.0  ;;  %v862_v26 = vsel %vm64_vm0, %v4455_v35, 0.0  ;;  %2970 = vpow2.f32 %v4406_v27 }
 0x20b   :  { %v4489_v13 = vpop.eup %2952  ;;  %v4492_v51 = vadd.f32 %v824_v34, %v823_v8  ;;  %v833_v53 = vrot.slane %v832_v14, 1  ;;  %v848_v43 = vadd.f32 %v847_v30, %v846_v32  ;;  %2972 = vpow2.f32 %v4408_v55 }
 0x20c   :  { %5445 = vst [vmem:[#allocation29_spill] sm:$0xff] %v4489_v13  ;;  %v4494_v16 = vpop.eup %2954  ;;  %v855_v57 = vadd.f32 %v854_v4, %v853_v9  ;;  %v863_v24 = vsel %vm64_vm0, %v4460_v59, 0.0  ;;  %v871_v12 = vsel %vm64_vm0, %v4467_v1, 0.0  ;;  %2974 = vpow2.f32 %v4418_v7 }
 0x20d   :  { %5446 = vst [vmem:[#allocation37_spill] sm:$0xff] %v4494_v16  ;;  %v4501_v46 = vpop.eup %2956  ;;  %v841_v27 = vadd.f32 %v840_v45, %v839_v33  ;;  %v849_v58 = vrot.slane %v848_v43, 2  ;;  %v864_v8 = vadd.f32 %v863_v24, %v862_v26  ;;  %v872_v55 = vsel %vm64_vm0, %v4470_v15, 0.0 }
 0x20e   :  { %5447 = vst [vmem:[#allocation36_spill] sm:$0xff] %v4501_v46  ;;  %v4504_v47 = vpop.eup %2958  ;;  %v856_v5 = vrot.slane %v855_v57, 4  ;;  %v880_v0 = vsel %vm64_vm0, %v4476_v60, 0.0  ;;  %v881_v32 = vsel %vm64_vm0, %v4480_v29, 0.0  ;;  %v4514_v30 = vadd.f32 %v833_v53, %v832_v14 }
 0x20f   :  { %5448 = vst [vmem:[#allocation45_spill] sm:$0xff] %v4504_v47  ;;  %v4512_v34 = vpop.eup %2960  ;;  %v850_v7 = vadd.f32 %v849_v58, %v848_v43  ;;  %v865_v33 = vrot.slane %v864_v8, 4  ;;  %v873_v45 = vadd.f32 %v872_v55, %v871_v12  ;;  %v882_v26 = vadd.f32 %v881_v32, %v880_v0 }
 0x210   :  { %5449 = vst [vmem:[#allocation44_spill] sm:$0xff] %v4512_v34  ;;  %v4516_v9 = vpop.eup %2962  ;;  %v857_v4 = vadd.f32 %v856_v5, %v855_v57  ;;  %v889_v24 = vsel %vm64_vm0, %v4489_v13, 0.0  ;;  %v890_v23 = vsel %vm64_vm0, %v4494_v16, 0.0  ;;  %v842_v20 = vrot.slane %v841_v27, 1 }
 0x211   :  { %5450 = vst [vmem:[#allocation74_spill] sm:$0xff] %v4516_v9  ;;  %v4522_v36 = vpop.eup %2964  ;;  %v866_v6 = vadd.f32 %v865_v33, %v864_v8  ;;  %v874_v63 = vrot.slane %v873_v45, 4  ;;  %v891_v14 = vadd.f32 %v890_v23, %v889_v24  ;;  %v883_v12 = vrot.slane %v882_v26, 4 }
 0x212   :  { %v4524_v53 = vpop.eup %2966  ;;  %v858_v43 = vrot.slane %v857_v4, 2  ;;  %v898_v57 = vsel %vm64_vm0, %v4501_v46, 0.0  ;;  %v899_v58 = vsel %vm64_vm0, %v4504_v47, 0.0  ;;  %v851_v5 = vrot.slane %v850_v7, 1 }
 0x213   :  { %v867_v55 = vrot.slane %v866_v6, 2  ;;  %v875_v0 = vadd.f32 %v874_v63, %v873_v45  ;;  %v892_v32 = vrot.slane %v891_v14, 4  ;;  %v4530_v52 = vpop.eup %2968  ;;  %v884_v8 = vadd.f32 %v883_v12, %v882_v26 }
 0x214   :  { %5451 = vst [vmem:[#allocation27_spill] sm:$0xff] %v4530_v52  ;;  %v859_v56 = vadd.f32 %v858_v43, %v857_v4  ;;  %v900_v33 = vadd.f32 %v899_v58, %v898_v57  ;;  %v907_v23 = vsel %vm64_vm0, %v4512_v34, 0.0  ;;  %v4534_v24 = vpop.eup %2970  ;;  %v908_v50 = vsel %vm64_vm0, %v4516_v9, 0.0 }
 0x215   :  { %v868_v49 = vadd.f32 %v867_v55, %v866_v6  ;;  %v876_v19 = vrot.slane %v875_v0, 2  ;;  %v893_v38 = vadd.f32 %v892_v32, %v891_v14  ;;  %v4538_v2 = vpop.eup %2972  ;;  %v885_v45 = vrot.slane %v884_v8, 2 }
 0x216   :  { %v860_v63 = vrot.slane %v859_v56, 1  ;;  %v901_v44 = vrot.slane %v900_v33, 4  ;;  %v909_v47 = vadd.f32 %v908_v50, %v907_v23  ;;  %v4540_v4 = vpop.eup %2974  ;;  %v843_v26 = vadd.f32 %v842_v20, %v841_v27 }
 0x217   :  { %v877_v43 = vadd.f32 %v876_v19, %v875_v0  ;;  %v894_v12 = vrot.slane %v893_v38, 2  ;;  %v916_v57 = vsel %vm64_vm0, %v4522_v36, 0.0  ;;  %v869_v6 = vrot.slane %v868_v49, 1 }
 0x218   :  { %v886_v58 = vadd.f32 %v885_v45, %v884_v8  ;;  %v902_v14 = vadd.f32 %v901_v44, %v900_v33  ;;  %v910_v55 = vrot.slane %v909_v47, 4  ;;  %v852_v32 = vadd.f32 %v851_v5, %v850_v7 }
 0x219   :  { %v878_v9 = vrot.slane %v877_v43, 1  ;;  %v895_v34 = vadd.f32 %v894_v12, %v893_v38  ;;  %v917_v46 = vsel %vm64_vm0, %v4524_v53, 0.0  ;;  %v861_v16 = vadd.f32 %v860_v63, %v859_v56 }
 0x21a   :  { %v903_v50 = vrot.slane %v902_v14, 2  ;;  %v911_v23 = vadd.f32 %v910_v55, %v909_v47  ;;  %v918_v13 = vadd.f32 %v917_v46, %v916_v57  ;;  %v887_v20 = vrot.slane %v886_v58, 1 }
 0x21b   :  { %v896_v19 = vrot.slane %v895_v34, 1  ;;  %v925_v27 = vsel %vm64_vm0, %v4530_v52, 0.0  ;;  %v926_v0 = vsel %vm64_vm0, %v4534_v24, 0.0  ;;  %v870_v44 = vadd.f32 %v869_v6, %v868_v49 }
 0x21c   :  { %v904_v8 = vadd.f32 %v903_v50, %v902_v14  ;;  %v912_v7 = vrot.slane %v911_v23, 2  ;;  %v919_v5 = vrot.slane %v918_v13, 4  ;;  %v879_v38 = vadd.f32 %v878_v9, %v877_v43 }
 0x21d   :  { %v927_v33 = vadd.f32 %v926_v0, %v925_v27  ;;  %v934_v56 = vsel %vm64_vm0, %v4538_v2, 0.0  ;;  %v935_v46 = vsel %vm64_vm0, %v4540_v4, 0.0  ;;  %v888_v57 = vadd.f32 %v887_v20, %v886_v58 }
 0x21e   :  { %v905_v47 = vrot.slane %v904_v8, 1  ;;  %v913_v63 = vadd.f32 %v912_v7, %v911_v23  ;;  %v920_v45 = vadd.f32 %v919_v5, %v918_v13  ;;  %v936_v12 = vadd.f32 %v935_v46, %v934_v56  ;;  %v5456_v56 = vld [vmem:[#allocation33_spill] sm:$0xff] }
 0x21f   :  { %v897_v55 = vadd.f32 %v896_v19, %v895_v34  ;;  %v928_v52 = vrot.slane %v927_v33, 4  ;;  %2976 = vrcp.f32 %v4473_v22  ;;  %v5452_v9 = vrot.slane %v4437_v11, 1  ;;  %v5454_v19 = vld [vmem:[#allocation68_spill] sm:$0xff] }
 0x220   :  { %v921_v49 = vrot.slane %v920_v45, 2  ;;  %v937_v6 = vrot.slane %v936_v12, 4  ;;  %v1704_v14 = vsel %vm64_vm0, %v4424_v17, -inf  ;;  %v906_v50 = vadd.f32 %v905_v47, %v904_v8 }
 0x221   :  { %v1694_v43 = vmax.f32 %v4437_v11, %v5452_v9  ;;  %v929_v27 = vadd.f32 %v928_v52, %v927_v33  ;;  %2978 = vrcp.f32 %v4483_v3  ;;  %v1705_v13 = vsel %vm64_vm0, %v4465_v31, -inf  ;;  %v5453_v11 = vld [vmem:[#allocation20_spill] sm:$0xff]  ;;  %v5455_v52 = vld [vmem:[#allocation69_spill] sm:$0xff] }
 0x222   :  { %v914_v34 = vrot.slane %v913_v63, 1  ;;  %v922_v58 = vadd.f32 %v921_v49, %v920_v45  ;;  %v938_v23 = vadd.f32 %v937_v6, %v936_v12  ;;  %2980 = vrcp.f32 %v4492_v51  ;;  %v5457_v51 = vld [vmem:[#allocation82_spill] sm:$0xff]  ;;  %v5458_v12 = vld [vmem:[#allocation72_spill] sm:$0xff] }
 0x223   :  { %v930_v22 = vrot.slane %v929_v27, 2  ;;  %2982 = vrcp.f32 %v4514_v30  ;;  %v1706_v20 = vmax.f32 %v1704_v14, %v1705_v13  ;;  %v1800_v0 = vsub.f32 %v5454_v19, %v5453_v11  ;;  %v5460_v13 = vld [vmem:[#allocation19_spill] sm:$0xff] }
 0x224   :  { %v923_v7 = vrot.slane %v922_v58, 1  ;;  %v939_v8 = vrot.slane %v938_v23, 2  ;;  %2984 = vrcp.f32 %v843_v26  ;;  %v1802_v3 = vsub.f32 %v5455_v52, %v1694_v43  ;;  %v5459_v26 = vld [vmem:[#allocation61_spill] sm:$0xff] }
 0x225   :  { %v931_v5 = vadd.f32 %v930_v22, %v929_v27  ;;  %2986 = vrcp.f32 %v852_v32  ;;  %v1707_v33 = vrot.slane %v1706_v20, 4  ;;  %v1803_v46 = vsub.f32 %v5456_v56, %v1694_v43  ;;  %v4584_v22 = vpop.permute.xlu0 %991 }
 0x226   :  { %v915_v47 = vadd.f32 %v914_v34, %v913_v63  ;;  %v940_v45 = vadd.f32 %v939_v8, %v938_v23  ;;  %2988 = vrcp.f32 %v861_v16  ;;  %v1816_v30 = vsub.f32 %v5458_v12, %v5457_v51  ;;  %v4592_v8 = vpop.permute.xlu1 %993 }
 0x227   :  { %v924_v49 = vadd.f32 %v923_v7, %v922_v58  ;;  %v932_v6 = vrot.slane %v931_v5, 1  ;;  %2990 = vrcp.f32 %v870_v44  ;;  %v1708_v9 = vmax.f32 %v1706_v20, %v1707_v33 }
 0x228   :  { %v941_v14 = vrot.slane %v940_v45, 1  ;;  %2992 = vrcp.f32 %v879_v38  ;;  %v5461_v11 = vsub.f32 %v5459_v26, %v5460_v13  ;;  %v4576_v32 = vmul.f32 1.442695, %v1800_v0  ;;  %v5462_v0 = vld [vmem:[#allocation16_spill] sm:$0xff] }
 0x229   :  { %v2977_v43 = vpop.eup %2976  ;;  %2994 = vrcp.f32 %v888_v57  ;;  %v1709_v63 = vrot.slane %v1708_v9, 2  ;;  %v4578_v16 = vmul.f32 1.442695, %v1802_v3  ;;  %v4580_v34 = vmul.f32 1.442695, %v1803_v46 }
 0x22a   :  { %v4574_v27 = vmul.f32 1.442695, %v5461_v11  ;;  %v933_v58 = vadd.f32 %v932_v6, %v931_v5  ;;  %2996 = vrcp.f32 %v897_v55  ;;  %v959_v44 = vmul.f32 %v2977_v43, %v4380_v25 }
 0x22b   :  { %v960_v38 = vmul.f32 %v2977_v43, %v4382_v62  ;;  %v2979_v23 = vpop.eup %2978  ;;  %v942_v20 = vadd.f32 %v941_v14, %v940_v45  ;;  %2998 = vrcp.f32 %v906_v50  ;;  %v4586_v19 = vmax.f32 %v1708_v9, %v1709_v63 }
 0x22c   :  { %v4590_v57 = vsel %vm64_vm0, %v5462_v0, 0.0  ;;  %v2981_v7 = vpop.eup %2980  ;;  %3000 = vrcp.f32 %v915_v47  ;;  %v961_v55 = vmul.f32 %v2979_v23, %v4390_v21  ;;  %v962_v25 = vmul.f32 %v2979_v23, %v4398_v10 }
 0x22d   :  { %v4597_v62 = vmul.f32 %v4584_v22, %v959_v44  ;;  %v2983_v52 = vpop.eup %2982  ;;  %3002 = vrcp.f32 %v924_v49  ;;  %v963_v50 = vmul.f32 %v2981_v7, %v4404_v40  ;;  %v964_v3 = vmul.f32 %v2981_v7, %v4412_v28 }
 0x22e   :  { %v4602_v5 = vmul.f32 %v4592_v8, %v960_v38  ;;  %v2985_v33 = vpop.eup %2984  ;;  %3004 = vrcp.f32 %v933_v58  ;;  %v965_v56 = vmul.f32 %v2983_v52, %v4416_v41  ;;  %v966_v21 = vmul.f32 %v2983_v52, %v4426_v61  ;;  %v5464_v52 = vld [vmem:[#allocation37_spill] sm:$0xff] }
 0x22f   :  { %v4607_v10 = vmul.f32 %v4584_v22, %v961_v55  ;;  %v2987_v46 = vpop.eup %2986  ;;  %3006 = vrcp.f32 %v942_v20  ;;  %v967_v47 = vmul.f32 %v2985_v33, %v4428_v54  ;;  %v968_v40 = vmul.f32 %v2985_v33, %v4439_v18  ;;  %v5463_v55 = vld [vmem:[#allocation29_spill] sm:$0xff]  ;;  %v5465_v33 = vld [vmem:[#allocation36_spill] sm:$0xff] }
 0x230   :  { %v4612_v28 = vmul.f32 %v4592_v8, %v962_v25  ;;  %v2989_v45 = vpop.eup %2988  ;;  %v969_v49 = vmul.f32 %v2987_v46, %v4441_v48  ;;  %v970_v6 = vmul.f32 %v2987_v46, %v4447_v42  ;;  %v1001_v41 = vmul.f32 %v4584_v22, %v963_v50 }
 0x231   :  { %v4618_v61 = vmul.f32 %v4592_v8, %v964_v3  ;;  %v2991_v9 = vpop.eup %2990  ;;  %v971_v14 = vmul.f32 %v2989_v45, %v4449_v37  ;;  %v972_v54 = vmul.f32 %v2989_v45, %v4453_v39  ;;  %v1003_v18 = vmul.f32 %v4584_v22, %v965_v56  ;;  %v5466_v56 = vld [vmem:[#allocation45_spill] sm:$0xff] }
 0x232   :  { %v1004_v26 = vmul.f32 %v4592_v8, %v966_v21  ;;  %v2993_v13 = vpop.eup %2992  ;;  %v973_v11 = vmul.f32 %v2991_v9, %v4455_v35  ;;  %v974_v48 = vmul.f32 %v2991_v9, %v4460_v59  ;;  %v1005_v42 = vmul.f32 %v4584_v22, %v967_v47 }
 0x233   :  { %v1006_v43 = vmul.f32 %v4592_v8, %v968_v40  ;;  %v2995_v63 = vpop.eup %2994  ;;  %v975_v58 = vmul.f32 %v2993_v13, %v4467_v1  ;;  %v976_v37 = vmul.f32 %v2993_v13, %v4470_v15  ;;  %v1007_v39 = vmul.f32 %v4584_v22, %v969_v49  ;;  %v5467_v40 = vld [vmem:[#allocation44_spill] sm:$0xff]  ;;  %v5468_v49 = vld [vmem:[#allocation74_spill] sm:$0xff] }
 0x234   :  { %v1008_v44 = vmul.f32 %v4592_v8, %v970_v6  ;;  %v2997_v38 = vpop.eup %2996  ;;  %v977_v23 = vmul.f32 %v2995_v63, %v4476_v60  ;;  %v978_v35 = vmul.f32 %v2995_v63, %v4480_v29  ;;  %v1009_v59 = vmul.f32 %v4584_v22, %v971_v14 }
 0x235   :  { %v1010_v20 = vmul.f32 %v4592_v8, %v972_v54  ;;  %v2999_v7 = vpop.eup %2998  ;;  %v979_v25 = vmul.f32 %v2997_v38, %v5463_v55  ;;  %v980_v1 = vmul.f32 %v2997_v38, %v5464_v52  ;;  %v4639_v15 = vmul.f32 %v4584_v22, %v973_v11 }
 0x236   :  { %v4642_v50 = vmul.f32 %v4592_v8, %v974_v48  ;;  %v3001_v3 = vpop.eup %3000  ;;  %v981_v60 = vmul.f32 %v2999_v7, %v5465_v33  ;;  %v982_v29 = vmul.f32 %v2999_v7, %v5466_v56  ;;  %v4647_v21 = vmul.f32 %v4584_v22, %v975_v58 }
 0x237   :  { %v4650_v46 = vmul.f32 %v4592_v8, %v976_v37  ;;  %v3003_v47 = vpop.eup %3002  ;;  %v983_v45 = vmul.f32 %v3001_v3, %v5467_v40  ;;  %v984_v6 = vmul.f32 %v3001_v3, %v5468_v49  ;;  %v4655_v9 = vmul.f32 %v4584_v22, %v977_v23  ;;  %v5469_v37 = vld [vmem:[#allocation27_spill] sm:$0xff] }
 0x238   :  { %v4658_v14 = vmul.f32 %v4592_v8, %v978_v35  ;;  %v3005_v54 = vpop.eup %3004  ;;  %v985_v13 = vmul.f32 %v3003_v47, %v4522_v36  ;;  %v986_v11 = vmul.f32 %v3003_v47, %v4524_v53  ;;  %v4663_v48 = vmul.f32 %v4584_v22, %v979_v25 }
 0x239   :  { %v4666_v63 = vmul.f32 %v4592_v8, %v980_v1  ;;  %v3007_v58 = vpop.eup %3006  ;;  %v987_v38 = vmul.f32 %v3005_v54, %v5469_v37  ;;  %v988_v23 = vmul.f32 %v3005_v54, %v4534_v24  ;;  %v4671_v7 = vmul.f32 %v4584_v22, %v981_v60 }
 0x23a   :  { %v4674_v35 = vmul.f32 %v4592_v8, %v982_v29  ;;  %v989_v36 = vmul.f32 %v3007_v58, %v4538_v2  ;;  %v990_v53 = vmul.f32 %v3007_v58, %v4540_v4  ;;  %v4679_v55 = vmul.f32 %v4584_v22, %v983_v45 }
 0x23b   :  { %v4682_v25 = vmul.f32 %v4592_v8, %v984_v6  ;;  %v4685_v52 = vmul.f32 %v4584_v22, %v985_v13  ;;  %v4688_v24 = vmul.f32 %v4592_v8, %v986_v11  ;;  %v4691_v1 = vmul.f32 %v4584_v22, %v987_v38 }
 0x23c   :  { %v4694_v3 = vmul.f32 %v4592_v8, %v988_v23  ;;  %v4697_v2 = vmul.f32 %v4584_v22, %v989_v36  ;;  %v4700_v4 = vmul.f32 %v4592_v8, %v990_v53  ;;  %v1029_v33 = vsel %vm64_vm0, %v4597_v62, 0.0 }
 0x23d   :  { %v1030_v60 = vsel %vm64_vm0, %v4602_v5, 0.0  ;;  %v1038_v29 = vsel %vm64_vm0, %v4607_v10, 0.0  ;;  %v1039_v47 = vsel %vm64_vm0, %v4612_v28, 0.0  ;;  %v1047_v40 = vsel %vm64_vm0, %v1001_v41, 0.0 }
 0x23e   :  { %v1031_v56 = vadd.f32 %v1030_v60, %v1029_v33  ;;  %v1040_v22 = vadd.f32 %v1039_v47, %v1038_v29  ;;  %v1048_v8 = vsel %vm64_vm0, %v4618_v61, 0.0  ;;  %v1056_v45 = vsel %vm64_vm0, %v1003_v18, 0.0 }
 0x23f   :  { %v1057_v62 = vsel %vm64_vm0, %v1004_v26, 0.0  ;;  %v1049_v6 = vadd.f32 %v1048_v8, %v1047_v40  ;;  %v1065_v54 = vsel %vm64_vm0, %v1005_v42, 0.0  ;;  %v1066_v10 = vsel %vm64_vm0, %v1006_v43, 0.0 }
 0x240   :  { %v1032_v49 = vrot.slane %v1031_v56, 4  ;;  %v1058_v5 = vadd.f32 %v1057_v62, %v1056_v45  ;;  %v1041_v13 = vrot.slane %v1040_v22, 4  ;;  %v1074_v28 = vsel %vm64_vm0, %v1007_v39, 0.0 }
 0x241   :  { %v1075_v41 = vsel %vm64_vm0, %v1008_v44, 0.0  ;;  %v1050_v58 = vrot.slane %v1049_v6, 4  ;;  %v1067_v61 = vadd.f32 %v1066_v10, %v1065_v54  ;;  %v1083_v26 = vsel %vm64_vm0, %v1009_v59, 0.0 }
 0x242   :  { %v1033_v11 = vadd.f32 %v1032_v49, %v1031_v56  ;;  %v1059_v37 = vrot.slane %v1058_v5, 4  ;;  %v1042_v38 = vadd.f32 %v1041_v13, %v1040_v22  ;;  %v1076_v18 = vadd.f32 %v1075_v41, %v1074_v28 }
 0x243   :  { %v1084_v23 = vsel %vm64_vm0, %v1010_v20, 0.0  ;;  %v1051_v53 = vadd.f32 %v1050_v58, %v1049_v6  ;;  %v1068_v33 = vrot.slane %v1067_v61, 4  ;;  %v1092_v39 = vsel %vm64_vm0, %v4639_v15, 0.0 }
 0x244   :  { %v1034_v36 = vrot.slane %v1033_v11, 2  ;;  %v1060_v42 = vadd.f32 %v1059_v37, %v1058_v5  ;;  %v1043_v60 = vrot.slane %v1042_v38, 2  ;;  %v1077_v43 = vrot.slane %v1076_v18, 4 }
 0x245   :  { %v1085_v29 = vadd.f32 %v1084_v23, %v1083_v26  ;;  %v1052_v56 = vrot.slane %v1051_v53, 2  ;;  %v1069_v40 = vadd.f32 %v1068_v33, %v1067_v61  ;;  %v1093_v59 = vsel %vm64_vm0, %v4642_v50, 0.0 }
 0x246   :  { %v1035_v44 = vadd.f32 %v1034_v36, %v1033_v11  ;;  %v1061_v47 = vrot.slane %v1060_v42, 2  ;;  %v1044_v22 = vadd.f32 %v1043_v60, %v1042_v38  ;;  %v1078_v8 = vadd.f32 %v1077_v43, %v1076_v18 }
 0x247   :  { %v1086_v45 = vrot.slane %v1085_v29, 4  ;;  %v1053_v62 = vadd.f32 %v1052_v56, %v1051_v53  ;;  %v1070_v6 = vrot.slane %v1069_v40, 2  ;;  %v1094_v10 = vadd.f32 %v1093_v59, %v1092_v39 }
 0x248   :  { %v1036_v20 = vrot.slane %v1035_v44, 1  ;;  %v1062_v49 = vadd.f32 %v1061_v47, %v1060_v42  ;;  %v1045_v5 = vrot.slane %v1044_v22, 1  ;;  %v1079_v54 = vrot.slane %v1078_v8, 2 }
 0x249   :  { %v1087_v13 = vadd.f32 %v1086_v45, %v1085_v29  ;;  %v1054_v15 = vrot.slane %v1053_v62, 1  ;;  %v1071_v11 = vadd.f32 %v1070_v6, %v1069_v40  ;;  %v1095_v38 = vrot.slane %v1094_v10, 4 }
 0x24a   :  { %v4725_v28 = vadd.f32 %v1036_v20, %v1035_v44  ;;  %v1063_v41 = vrot.slane %v1062_v49, 1  ;;  %v4727_v58 = vadd.f32 %v1045_v5, %v1044_v22  ;;  %v1080_v37 = vadd.f32 %v1079_v54, %v1078_v8 }
 0x24b   :  { %v1088_v61 = vrot.slane %v1087_v13, 2  ;;  %v4729_v18 = vadd.f32 %v1054_v15, %v1053_v62  ;;  %v1072_v26 = vrot.slane %v1071_v11, 1  ;;  %v1101_v23 = vsel %vm64_vm0, %v4647_v21, 0.0 }
 0x24c   :  { %v4731_v50 = vadd.f32 %v1063_v41, %v1062_v49  ;;  %v1081_v36 = vrot.slane %v1080_v37, 1  ;;  %v1096_v42 = vadd.f32 %v1095_v38, %v1094_v10  ;;  %v1102_v33 = vsel %vm64_vm0, %v4650_v46, 0.0 }
 0x24d   :  { %v1089_v53 = vadd.f32 %v1088_v61, %v1087_v13  ;;  %v4737_v60 = vadd.f32 %v1072_v26, %v1071_v11  ;;  %v1103_v43 = vadd.f32 %v1102_v33, %v1101_v23  ;;  %v1110_v29 = vsel %vm64_vm0, %v4655_v9, 0.0 }
 0x24e   :  { %v1111_v39 = vsel %vm64_vm0, %v4658_v14, 0.0  ;;  %v4743_v44 = vadd.f32 %v1081_v36, %v1080_v37  ;;  %v1097_v47 = vrot.slane %v1096_v42, 2  ;;  %v1119_v22 = vsel %vm64_vm0, %v4663_v48, 0.0 }
 0x24f   :  { %v1090_v56 = vrot.slane %v1089_v53, 1  ;;  %v1112_v21 = vadd.f32 %v1111_v39, %v1110_v29  ;;  %v1104_v40 = vrot.slane %v1103_v43, 4  ;;  %v1120_v46 = vsel %vm64_vm0, %v4666_v63, 0.0 }
 0x250   :  { %v1128_v8 = vsel %vm64_vm0, %v4671_v7, 0.0  ;;  %v1098_v9 = vadd.f32 %v1097_v47, %v1096_v42  ;;  %v1121_v14 = vadd.f32 %v1120_v46, %v1119_v22  ;;  %v1129_v62 = vsel %vm64_vm0, %v4674_v35, 0.0 }
 0x251   :  { %v4751_v45 = vadd.f32 %v1090_v56, %v1089_v53  ;;  %v1113_v59 = vrot.slane %v1112_v21, 4  ;;  %v1105_v20 = vadd.f32 %v1104_v40, %v1103_v43  ;;  %v1137_v49 = vsel %vm64_vm0, %v4679_v55, 0.0 }
 0x252   :  { %v1138_v48 = vsel %vm64_vm0, %v4682_v25, 0.0  ;;  %v1099_v63 = vrot.slane %v1098_v9, 1  ;;  %v1122_v5 = vrot.slane %v1121_v14, 4  ;;  %v1130_v7 = vadd.f32 %v1129_v62, %v1128_v8 }
 0x253   :  { %v1114_v6 = vadd.f32 %v1113_v59, %v1112_v21  ;;  %v1106_v54 = vrot.slane %v1105_v20, 2  ;;  %v1139_v13 = vadd.f32 %v1138_v48, %v1137_v49  ;;  %v1146_v10 = vsel %vm64_vm0, %v4685_v52, 0.0 }
 0x254   :  { %v1147_v15 = vsel %vm64_vm0, %v4688_v24, 0.0  ;;  %v4763_v35 = vadd.f32 %v1099_v63, %v1098_v9  ;;  %v1123_v41 = vadd.f32 %v1122_v5, %v1121_v14  ;;  %v1131_v11 = vrot.slane %v1130_v7, 4 }
 0x255   :  { %v1115_v55 = vrot.slane %v1114_v6, 2  ;;  %v1107_v25 = vadd.f32 %v1106_v54, %v1105_v20  ;;  %v1140_v37 = vrot.slane %v1139_v13, 4  ;;  %v1148_v61 = vadd.f32 %v1147_v15, %v1146_v10 }
 0x256   :  { %v1155_v38 = vsel %vm64_vm0, %v4691_v1, 0.0  ;;  %v1124_v23 = vrot.slane %v1123_v41, 2  ;;  %v1132_v36 = vadd.f32 %v1131_v11, %v1130_v7  ;;  %v1156_v52 = vsel %vm64_vm0, %v4694_v3, 0.0 }
 0x257   :  { %v1116_v26 = vadd.f32 %v1115_v55, %v1114_v6  ;;  %v1108_v24 = vrot.slane %v1107_v25, 1  ;;  %v1141_v53 = vadd.f32 %v1140_v37, %v1139_v13  ;;  %v1149_v42 = vrot.slane %v1148_v61, 4 }
 0x258   :  { %v1157_v33 = vadd.f32 %v1156_v52, %v1155_v38  ;;  %v1125_v29 = vadd.f32 %v1124_v23, %v1123_v41  ;;  %v1133_v39 = vrot.slane %v1132_v36, 2  ;;  %v1164_v56 = vsel %vm64_vm0, %v4697_v2, 0.0 }
 0x259   :  { %v1117_v43 = vrot.slane %v1116_v26, 1  ;;  %v1109_v1 = vadd.f32 %v1108_v24, %v1107_v25  ;;  %v1142_v47 = vrot.slane %v1141_v53, 2  ;;  %v1150_v21 = vadd.f32 %v1149_v42, %v1148_v61 }
 0x25a   :  { %v1158_v40 = vrot.slane %v1157_v33, 4  ;;  %v1126_v3 = vrot.slane %v1125_v29, 1  ;;  %v1134_v46 = vadd.f32 %v1133_v39, %v1132_v36  ;;  %v1165_v8 = vsel %vm64_vm0, %v4700_v4, 0.0 }
 0x25b   :  { %v1118_v22 = vadd.f32 %v1117_v43, %v1116_v26  ;;  %v1143_v9 = vadd.f32 %v1142_v47, %v1141_v53  ;;  %v1151_v59 = vrot.slane %v1150_v21, 2  ;;  %v1166_v20 = vadd.f32 %v1165_v8, %v1164_v56  ;;  %v5475_v47 = vld [vmem:[#allocation84_spill] sm:$0xff] }
 0x25c   :  { %v1159_v14 = vadd.f32 %v1158_v40, %v1157_v33  ;;  %v1127_v62 = vadd.f32 %v1126_v3, %v1125_v29  ;;  %v1135_v49 = vrot.slane %v1134_v46, 1  ;;  %v1190_v2 = vsel %vm1189_vm6, %v4727_v58, %v4725_v28  ;;  %v5476_v40 = vld [vmem:[#allocation83_spill] sm:$0xff] }
 0x25d   :  { %v1203_v48 = vsel %vm1189_vm6, %v1118_v22, %v1109_v1  ;;  %v1144_v63 = vrot.slane %v1143_v9, 1  ;;  %v1152_v6 = vadd.f32 %v1151_v59, %v1150_v21  ;;  %v1167_v7 = vrot.slane %v1166_v20, 4  ;;  %v5477_v22 = vld [vmem:[#allocation58_spill] sm:$0xff] }
 0x25e   :  { %v1160_v5 = vrot.slane %v1159_v14, 2  ;;  %v1136_v54 = vadd.f32 %v1135_v49, %v1134_v46  ;;  %v1192_v4 = vsel %vm1191_vm7, %v4729_v18, %v1190_v2  ;;  %v1204_v13 = vsel %vm1191_vm7, %v1127_v62, %v1203_v48  ;;  %v5481_v62 = vld [vmem:[#allocation86_spill] sm:$0xff] }
 0x25f   :  { %v1711_v10 = vrot.slane %v4586_v19, 1  ;;  %v1145_v15 = vadd.f32 %v1144_v63, %v1143_v9  ;;  %v1153_v55 = vrot.slane %v1152_v6, 1  ;;  %v1168_v11 = vadd.f32 %v1167_v7, %v1166_v20  ;;  %v5479_v9 = vld [vmem:[#allocation55_spill] sm:$0xff]  ;;  %v4832_v7 = vpop.permute.xlu1 %2084 }
 0x260   :  { %v1161_v41 = vadd.f32 %v1160_v5, %v1159_v14  ;;  %v1194_v28 = vsel %vm1193_vm8, %v4731_v50, %v1192_v4  ;;  %v1205_v58 = vsel %vm1193_vm8, %v1136_v54, %v1204_v13  ;;  %3008 = vpow2.f32 %v4574_v27  ;;  %v5480_v14 = vld [vmem:[#allocation35_spill] sm:$0xff]  ;;  %v4834_v54 = vpop.permute.xlu0 %2082 }
 0x261   :  { %v1712_v25 = vmax.f32 %v4586_v19, %v1711_v10  ;;  %v1154_v37 = vadd.f32 %v1153_v55, %v1152_v6  ;;  %v1169_v18 = vrot.slane %v1168_v11, 2  ;;  %v1196_v38 = vsel %vm1195_vm9, %v4737_v60, %v1194_v28  ;;  %v5482_v6 = vld [vmem:[#allocation64_spill] sm:$0xff] }
 0x262   :  { %v1162_v61 = vrot.slane %v1161_v41, 1  ;;  %v1198_v26 = vsel %vm1197_vm10, %v4743_v44, %v1196_v38  ;;  %v1206_v23 = vsel %vm1195_vm9, %v1145_v15, %v1205_v58  ;;  %3010 = vpow2.f32 %v4576_v32  ;;  %v5483_v15 = vld [vmem:[#allocation65_spill] sm:$0xff]  ;;  %v5484_v28 = vld [vmem:[#allocation52_spill] sm:$0xff] }
 0x263   :  { %v1806_v36 = vsub.f32 %v4424_v17, %v1712_v25  ;;  %v1807_v50 = vsub.f32 %v4465_v31, %v1712_v25  ;;  %v1170_v24 = vadd.f32 %v1169_v18, %v1168_v11  ;;  %v1200_v27 = vsel %vm1199_vm11, %v4751_v45, %v1198_v26  ;;  %v5470_v17 = vld [vmem:[#allocation71_spill] sm:$0xff]  ;;  %v5471_v31 = vld [vmem:[#allocation53_spill] sm:$0xff]  ;;  %v5473_v45 = vld [vmem:[#allocation56_spill] sm:$0xff] }
 0x264   :  { %v1163_v52 = vadd.f32 %v1162_v61, %v1161_v41  ;;  %v1207_v19 = vsel %vm1197_vm10, %v1154_v37, %v1206_v23  ;;  %v1202_v53 = vsel %vm1201_vm12, %v4763_v35, %v1200_v27  ;;  %3012 = vpow2.f32 %v4578_v16  ;;  %v5474_v35 = vld [vmem:[#allocation22_spill] sm:$0xff]  ;;  %v5485_v25 = vld [vmem:[#allocation59_spill] sm:$0xff]  ;;  %v5486_v23 = vld [vmem:[#allocation60_spill] sm:$0xff] }
 0x265   :  { %v1850_v60 = vmul.f32 1.442695, %v1806_v36  ;;  %v1852_v44 = vmul.f32 1.442695, %v1807_v50  ;;  %v1171_v42 = vrot.slane %v1170_v24, 1  ;;  %1212 = vst.msk [vmem:[#allocation3] sm:$0xff] %vm64_vm0, %v1202_v53  ;;  %v5472_v33 = vsub.f32 %v5470_v17, %v5471_v31 }
 0x266   :  { %v1892_v29 = vadd.f32 %v5473_v45, %v4590_v57  ;;  %v1208_v39 = vsel %vm1199_vm11, %v1163_v52, %v1207_v19  ;;  %3014 = vpow2.f32 %v4580_v34  ;;  %v1870_v32 = vmul.f32 1.442695, %v1816_v30  ;;  %v5478_v34 = vld [vmem:[#allocation34_spill] sm:$0xff] }
 0x267   :  { %v1866_v43 = vmul.f32 1.442695, %v5472_v33  ;;  %v1899_v56 = vsel %vm64_vm0, %v5474_v35, 0.0  ;;  %v1172_v1 = vadd.f32 %v1171_v42, %v1170_v24  ;;  %3016 = vpow2.f32 %v1850_v60  ;;  %v5487_v53 = vld [vmem:[#allocation62_spill] sm:$0xff] }
 0x268   :  { %v1893_v16 = vrot.slane %v1892_v29, 4  ;;  %v1901_v21 = vadd.f32 %v5475_v47, %v1899_v56  ;;  %3018 = vpow2.f32 %v1852_v44  ;;  %v1909_v57 = vsel %vm64_vm0, %v5476_v40, 0.0 }
 0x269   :  { %v1962_v3 = vsel %vm64_vm0, %v5477_v22, 0.0  ;;  %v1971_v46 = vsel %vm64_vm0, %v5478_v34, 0.0  ;;  %v1209_v51 = vsel %vm1201_vm12, %v1172_v1, %v1208_v39  ;;  %3020 = vpow2.f32 %v1866_v43 }
 0x26a   :  { %v1894_v12 = vadd.f32 %v1893_v16, %v1892_v29  ;;  %v1902_v30 = vrot.slane %v1901_v21, 4  ;;  %v4821_v8 = vpop.eup %3008  ;;  %1213 = vst.msk [vmem:[#allocation3 + $0x8] sm:$0xff] %vm64_vm0, %v1209_v51  ;;  %3022 = vpow2.f32 %v1870_v32  ;;  %v1918_v59 = vsel %vm64_vm0, %v5479_v9, 0.0 }
 0x26b   :  { %v1964_v20 = vadd.f32 %v5480_v14, %v1962_v3  ;;  %v1973_v49 = vadd.f32 %v5481_v62, %v1971_v46  ;;  %v1908_v63 = vsel %vm64_vm0, %v4821_v8, 0.0  ;;  %v1981_v5 = vsel %vm64_vm0, %v5482_v6, 0.0 }
 0x26c   :  { %v1895_v2 = vrot.slane %v1894_v12, 2  ;;  %v1903_v48 = vadd.f32 %v1902_v30, %v1901_v21  ;;  %v1910_v4 = vadd.f32 %v1909_v57, %v1908_v63  ;;  %v1990_v55 = vsel %vm64_vm0, %v5483_v15, 0.0  ;;  %v4846_v61 = vpop.eup %3010  ;;  %v2299_v52 = vld [vmem:[#allocation3] sm:$0xff] }
 0x26d   :  { %v1965_v13 = vrot.slane %v1964_v20, 4  ;;  %v1974_v10 = vrot.slane %v1973_v49, 4  ;;  %v4840_v58 = vmul.f32 %v4834_v54, %v5484_v28  ;;  %v4844_v37 = vmul.f32 %v4832_v7, %v5485_v25 }
 0x26e   :  { %v1896_v41 = vadd.f32 %v1895_v2, %v1894_v12  ;;  %v1904_v11 = vrot.slane %v1903_v48, 2  ;;  %v1911_v18 = vrot.slane %v1910_v4, 4  ;;  %v4850_v36 = vmul.f32 %v4834_v54, %v5486_v23  ;;  %v4852_v50 = vpop.eup %3012 }
 0x26f   :  { %v1966_v38 = vadd.f32 %v1965_v13, %v1964_v20  ;;  %v1975_v26 = vadd.f32 %v1974_v10, %v1973_v49  ;;  %v1917_v19 = vsel %vm64_vm0, %v4846_v61, 0.0  ;;  %v4858_v60 = vmul.f32 %v4832_v7, %v5487_v53 }
 0x270   :  { %v1897_v24 = vrot.slane %v1896_v41, 1  ;;  %v1905_v27 = vadd.f32 %v1904_v11, %v1903_v48  ;;  %v4860_v44 = vpop.eup %3014  ;;  %v1912_v42 = vadd.f32 %v1911_v18, %v1910_v4  ;;  %v1919_v17 = vadd.f32 %v1918_v59, %v1917_v19 }
 0x271   :  { %v1926_v31 = vsel %vm64_vm0, %v4852_v50, 0.0  ;;  %v1967_v33 = vrot.slane %v1966_v38, 2  ;;  %v4864_v43 = vpop.eup %3016  ;;  %v2300_v45 = vld [vmem:[#allocation3 + $0x8] sm:$0xff]  ;;  %v1927_v32 = vsel %vm64_vm0, %v4860_v44, 0.0  ;;  %v1976_v56 = vrot.slane %v1975_v26, 2 }
 0x272   :  { %v1898_v29 = vadd.f32 %v1897_v24, %v1896_v41  ;;  %v1906_v39 = vrot.slane %v1905_v27, 1  ;;  %v4868_v1 = vpop.eup %3018  ;;  %v2303_v16 = vpack.c.bf16 %v2300_v45, %v2299_v52  ;;  %v1913_v47 = vrot.slane %v1912_v42, 2 }
 0x273   :  { %v1920_v21 = vrot.slane %v1919_v17, 4  ;;  %v1928_v57 = vadd.f32 %v1927_v32, %v1926_v31  ;;  %v4870_v3 = vpop.eup %3020  ;;  %v1944_v51 = vsel %vm64_vm0, %v4864_v43, 0.0  ;;  %v1945_v12 = vsel %vm64_vm0, %v4868_v1, 0.0 }
 0x274   :  { %v1907_v46 = vadd.f32 %v1906_v39, %v1905_v27  ;;  %v1968_v30 = vadd.f32 %v1967_v33, %v1966_v38  ;;  %v4876_v59 = vpop.eup %3022  ;;  %2807 = vmatprep.mubr.msk.bf16.mxu1 %vm64_vm0, %v2303_v16  ;;  %v1914_v14 = vadd.f32 %v1913_v47, %v1912_v42  ;;  %v1946_v49 = vadd.f32 %v1945_v12, %v1944_v51  ;;  %v5488_v39 = vld [vmem:[#allocation42_spill] sm:$0xff] }
 0x275   :  { %v1921_v20 = vadd.f32 %v1920_v21, %v1919_v17  ;;  %v1929_v62 = vrot.slane %v1928_v57, 4  ;;  %v1977_v48 = vadd.f32 %v1976_v56, %v1975_v26  ;;  %v1980_v63 = vsel %vm64_vm0, %v4870_v3, 0.0  ;;  %v5489_v21 = vld [vmem:[#allocation50_spill] sm:$0xff] }
 0x276   :  { %v1969_v2 = vrot.slane %v1968_v30, 1  ;;  %v1989_v4 = vsel %vm64_vm0, %v4876_v59, 0.0  ;;  %v1915_v13 = vrot.slane %v1914_v14, 1  ;;  %v1947_v11 = vrot.slane %v1946_v49, 4 }
 0x277   :  { %v1922_v10 = vrot.slane %v1921_v20, 2  ;;  %v1930_v41 = vadd.f32 %v1929_v62, %v1928_v57  ;;  %v1978_v25 = vrot.slane %v1977_v48, 1  ;;  %v1982_v18 = vadd.f32 %v1981_v5, %v1980_v63  ;;  %v5493_v63 = vld [vmem:[#allocation51_spill] sm:$0xff] }
 0x278   :  { %v1970_v28 = vadd.f32 %v1969_v2, %v1968_v30  ;;  %v1991_v38 = vadd.f32 %v1990_v55, %v1989_v4  ;;  %v1916_v23 = vadd.f32 %v1915_v13, %v1914_v14  ;;  %v1948_v27 = vadd.f32 %v1947_v11, %v1946_v49  ;;  %v5492_v49 = vld [vmem:[#allocation63_spill] sm:$0xff] }
 0x279   :  { %v1923_v52 = vadd.f32 %v1922_v10, %v1921_v20  ;;  %v1931_v24 = vrot.slane %v1930_v41, 2  ;;  %v1979_v19 = vadd.f32 %v1978_v25, %v1977_v48  ;;  %v1983_v26 = vrot.slane %v1982_v18, 4  ;;  %v5491_v20 = vld [vmem:[#allocation25_spill] sm:$0xff]  ;;  %v5494_v25 = vld [vmem:[#allocation24_spill] sm:$0xff] }
 0x27a   :  { %v1992_v53 = vrot.slane %v1991_v38, 4  ;;  %3024 = vrcp.f32 %v1898_v29  ;;  %v1949_v31 = vrot.slane %v1948_v27, 2  ;;  %v2112_v32 = vmul.f32 %v4834_v54, %v5488_v39 }
 0x27b   :  { %v1924_v42 = vrot.slane %v1923_v52, 1  ;;  %v1932_v17 = vadd.f32 %v1931_v24, %v1930_v41  ;;  %3026 = vrcp.f32 %v1907_v46  ;;  %v1984_v33 = vadd.f32 %v1983_v26, %v1982_v18  ;;  %v5490_v46 = vld [vmem:[#allocation73_spill] sm:$0xff] }
 0x27c   :  { %v1993_v45 = vadd.f32 %v1992_v53, %v1991_v38  ;;  %3028 = vrcp.f32 %v1916_v23  ;;  %v1950_v56 = vadd.f32 %v1949_v31, %v1948_v27  ;;  %v2113_v29 = vmul.f32 %v4832_v7, %v5489_v21  ;;  %v5495_v27 = vld [vmem:[#allocation30_spill] sm:$0xff]  ;;  %v5496_v53 = vld [vmem:[#allocation81_spill] sm:$0xff] }
 0x27d   :  { %v1925_v5 = vadd.f32 %v1924_v42, %v1923_v52  ;;  %v1933_v55 = vrot.slane %v1932_v17, 1  ;;  %3030 = vrcp.f32 %v1970_v28  ;;  %v1985_v16 = vrot.slane %v1984_v33, 2  ;;  %v5498_v21 = vld [vmem:[#allocation57_spill] sm:$0xff] }
 0x27e   :  { %v1994_v47 = vrot.slane %v1993_v45, 2  ;;  %3032 = vrcp.f32 %v1979_v19  ;;  %v1951_v51 = vrot.slane %v1950_v56, 1  ;;  %v4889_v12 = vmul.f32 %v4834_v54, %v5490_v46 }
 0x27f   :  { %v1934_v57 = vadd.f32 %v1933_v55, %v1932_v17  ;;  %3034 = vrcp.f32 %v1925_v5  ;;  %v1986_v30 = vadd.f32 %v1985_v16, %v1984_v33  ;;  %v4893_v62 = vmul.f32 %v4832_v7, %v5491_v20 }
 0x280   :  { %v1995_v14 = vadd.f32 %v1994_v47, %v1993_v45  ;;  %v4897_v2 = vmul.f32 %v4834_v54, %v5492_v49  ;;  %v1952_v48 = vadd.f32 %v1951_v51, %v1950_v56  ;;  %v4901_v4 = vmul.f32 %v4832_v7, %v5493_v63  ;;  %v5497_v45 = vld [vmem:[#allocation49_spill] sm:$0xff] }
 0x281   :  { %3036 = vrcp.f32 %v1934_v57  ;;  %v2165_v13 = vsel %vm64_vm0, %v4840_v58, 0.0  ;;  %v1987_v10 = vrot.slane %v1986_v30, 1  ;;  %v2166_v11 = vsel %vm64_vm0, %v4844_v37, 0.0  ;;  %v5499_v49 = vld [vmem:[#allocation85_spill] sm:$0xff] }
 0x282   :  { %v1996_v41 = vrot.slane %v1995_v14, 1  ;;  %v2183_v28 = vsel %vm64_vm0, %v4850_v36, 0.0  ;;  %3038 = vrcp.f32 %v1952_v48  ;;  %v4911_v18 = vmul.f32 %v4834_v54, %v5494_v25 }
 0x283   :  { %v4913_v38 = vadd.f32 %v2166_v11, %v2165_v13  ;;  %v2184_v23 = vsel %vm64_vm0, %v4858_v60, 0.0  ;;  %v1988_v58 = vadd.f32 %v1987_v10, %v1986_v30  ;;  %v4919_v19 = vmul.f32 %v4832_v7, %v5495_v27 }
 0x284   :  { %v3025_v52 = vpop.eup %3024  ;;  %v1997_v24 = vadd.f32 %v1996_v41, %v1995_v14  ;;  %v4921_v37 = vadd.f32 %v2184_v23, %v2183_v28  ;;  %v2228_v17 = vsel %vm64_vm0, %v2112_v32, 0.0  ;;  %v2229_v31 = vsel %vm64_vm0, %v2113_v29, 0.0 }
 0x285   :  { %v3027_v36 = vpop.eup %3026  ;;  %v2050_v26 = vmul.f32 %v3025_v52, %v5462_v0  ;;  %v2051_v42 = vmul.f32 %v3025_v52, %v5496_v53  ;;  %3040 = vrcp.f32 %v1988_v58  ;;  %v2168_v5 = vrot.slane %v4913_v38, 4 }
 0x286   :  { %v3029_v33 = vpop.eup %3028  ;;  %v2052_v60 = vmul.f32 %v3027_v36, %v5474_v35  ;;  %v2053_v39 = vmul.f32 %v3027_v36, %v5497_v45  ;;  %3042 = vrcp.f32 %v1997_v24  ;;  %v2186_v57 = vrot.slane %v4921_v37, 4 }
 0x287   :  { %v3031_v55 = vpop.eup %3030  ;;  %v2054_v56 = vmul.f32 %v3029_v33, %v4821_v8  ;;  %v2055_v0 = vmul.f32 %v3029_v33, %v5476_v40  ;;  %v2088_v16 = vmul.f32 %v4834_v54, %v2050_v26  ;;  %v4936_v35 = vadd.f32 %v2229_v31, %v2228_v17 }
 0x288   :  { %v3033_v47 = vpop.eup %3032  ;;  %v2066_v32 = vmul.f32 %v3031_v55, %v5477_v22  ;;  %v2067_v29 = vmul.f32 %v3031_v55, %v5498_v21  ;;  %v2089_v46 = vmul.f32 %v4832_v7, %v2051_v42  ;;  %v2090_v30 = vmul.f32 %v4834_v54, %v2052_v60 }
 0x289   :  { %v3035_v51 = vpop.eup %3034  ;;  %v2091_v8 = vmul.f32 %v4832_v7, %v2053_v39  ;;  %v2092_v40 = vmul.f32 %v4834_v54, %v2054_v56  ;;  %v2068_v22 = vmul.f32 %v3033_v47, %v5478_v34  ;;  %v2069_v48 = vmul.f32 %v3033_v47, %v5499_v49 }
 0x28a   :  { %v2056_v14 = vmul.f32 %v3035_v51, %v4846_v61  ;;  %v2057_v20 = vmul.f32 %v3035_v51, %v5479_v9  ;;  %v2093_v13 = vmul.f32 %v4832_v7, %v2055_v0  ;;  %v4948_v10 = vmul.f32 %v4834_v54, %v2066_v32 }
 0x28b   :  { %v3037_v63 = vpop.eup %3036  ;;  %v4951_v41 = vmul.f32 %v4832_v7, %v2067_v29  ;;  %v2120_v11 = vsel %vm64_vm0, %v2088_v16, 0.0  ;;  %v2121_v23 = vsel %vm64_vm0, %v2089_v46, 0.0  ;;  %v2129_v52 = vsel %vm64_vm0, %v2090_v30, 0.0 }
 0x28c   :  { %v2058_v28 = vmul.f32 %v3037_v63, %v4852_v50  ;;  %v2059_v61 = vmul.f32 %v3037_v63, %v4860_v44  ;;  %v2094_v9 = vmul.f32 %v4834_v54, %v2056_v14  ;;  %v2095_v34 = vmul.f32 %v4832_v7, %v2057_v20  ;;  %v3039_v25 = vpop.eup %3038 }
 0x28d   :  { %v2130_v58 = vsel %vm64_vm0, %v2091_v8, 0.0  ;;  %v2138_v24 = vsel %vm64_vm0, %v2092_v40, 0.0  ;;  %v2062_v27 = vmul.f32 %v3039_v25, %v4864_v43  ;;  %v2063_v36 = vmul.f32 %v3039_v25, %v4868_v1 }
 0x28e   :  { %v4965_v50 = vmul.f32 %v4834_v54, %v2068_v22  ;;  %v4968_v44 = vmul.f32 %v4832_v7, %v2069_v48  ;;  %v2122_v26 = vadd.f32 %v2121_v23, %v2120_v11  ;;  %v2131_v53 = vadd.f32 %v2130_v58, %v2129_v52 }
 0x28f   :  { %v2139_v42 = vsel %vm64_vm0, %v2093_v13, 0.0  ;;  %v2147_v17 = vsel %vm64_vm0, %v2094_v9, 0.0  ;;  %v3041_v31 = vpop.eup %3040  ;;  %v2096_v33 = vmul.f32 %v4834_v54, %v2058_v28  ;;  %v2097_v60 = vmul.f32 %v4832_v7, %v2059_v61 }
 0x290   :  { %v2140_v43 = vadd.f32 %v2139_v42, %v2138_v24  ;;  %v2148_v1 = vsel %vm64_vm0, %v2095_v34, 0.0  ;;  %v3043_v45 = vpop.eup %3042  ;;  %v2070_v39 = vmul.f32 %v3041_v31, %v4870_v3  ;;  %v2071_v55 = vmul.f32 %v3041_v31, %v5482_v6 }
 0x291   :  { %v2123_v56 = vrot.slane %v2122_v26, 4  ;;  %v2132_v0 = vrot.slane %v2131_v53, 4  ;;  %v2100_v16 = vmul.f32 %v4834_v54, %v2062_v27  ;;  %v2101_v47 = vmul.f32 %v4832_v7, %v2063_v36 }
 0x292   :  { %v2141_v32 = vrot.slane %v2140_v43, 4  ;;  %v2149_v21 = vadd.f32 %v2148_v1, %v2147_v17  ;;  %v2072_v29 = vmul.f32 %v3043_v45, %v4876_v59  ;;  %v2073_v51 = vmul.f32 %v3043_v45, %v5483_v15 }
 0x293   :  { %v2124_v46 = vadd.f32 %v2123_v56, %v2122_v26  ;;  %v2133_v30 = vadd.f32 %v2132_v0, %v2131_v53  ;;  %v2108_v8 = vmul.f32 %v4834_v54, %v2070_v39  ;;  %v2109_v3 = vmul.f32 %v4832_v7, %v2071_v55 }
 0x294   :  { %v2142_v40 = vadd.f32 %v2141_v32, %v2140_v43  ;;  %v2150_v6 = vrot.slane %v2149_v21, 4  ;;  %v2156_v22 = vsel %vm64_vm0, %v2096_v33, 0.0  ;;  %v2157_v49 = vsel %vm64_vm0, %v2097_v60, 0.0 }
 0x295   :  { %v2125_v14 = vrot.slane %v2124_v46, 2  ;;  %v2134_v20 = vrot.slane %v2133_v30, 2  ;;  %v2158_v13 = vadd.f32 %v2157_v49, %v2156_v22  ;;  %v2169_v15 = vadd.f32 %v2168_v5, %v4913_v38 }
 0x296   :  { %v2143_v48 = vrot.slane %v2142_v40, 2  ;;  %v2151_v63 = vadd.f32 %v2150_v6, %v2149_v21  ;;  %v2174_v28 = vsel %vm64_vm0, %v2100_v16, 0.0  ;;  %v2175_v61 = vsel %vm64_vm0, %v2101_v47, 0.0 }
 0x297   :  { %v2126_v59 = vadd.f32 %v2125_v14, %v2124_v46  ;;  %v2135_v11 = vadd.f32 %v2134_v20, %v2133_v30  ;;  %v2159_v25 = vrot.slane %v2158_v13, 4  ;;  %v2170_v23 = vrot.slane %v2169_v15, 2 }
 0x298   :  { %v2144_v9 = vadd.f32 %v2143_v48, %v2142_v40  ;;  %v2152_v34 = vrot.slane %v2151_v63, 2  ;;  %v2176_v24 = vadd.f32 %v2175_v61, %v2174_v28  ;;  %v2187_v27 = vadd.f32 %v2186_v57, %v4921_v37 }
 0x299   :  { %v2127_v52 = vrot.slane %v2126_v59, 1  ;;  %v2136_v58 = vrot.slane %v2135_v11, 1  ;;  %v2160_v38 = vadd.f32 %v2159_v25, %v2158_v13  ;;  %v2171_v5 = vadd.f32 %v2170_v23, %v2169_v15 }
 0x29a   :  { %v2145_v36 = vrot.slane %v2144_v9, 1  ;;  %v2153_v26 = vadd.f32 %v2152_v34, %v2151_v63  ;;  %v2110_v53 = vmul.f32 %v4834_v54, %v2072_v29  ;;  %v2111_v42 = vmul.f32 %v4832_v7, %v2073_v51 }
 0x29b   :  { %v2177_v17 = vrot.slane %v2176_v24, 4  ;;  %v2188_v31 = vrot.slane %v2187_v27, 2  ;;  %v4995_v33 = vadd.f32 %v2127_v52, %v2126_v59  ;;  %v2161_v43 = vrot.slane %v2160_v38, 2 }
 0x29c   :  { %v2154_v60 = vrot.slane %v2153_v26, 1  ;;  %v2172_v1 = vrot.slane %v2171_v5, 1  ;;  %v2192_v37 = vsel %vm64_vm0, %v4948_v10, 0.0  ;;  %v2193_v57 = vsel %vm64_vm0, %v4951_v41, 0.0 }
 0x29d   :  { %v2178_v45 = vadd.f32 %v2177_v17, %v2176_v24  ;;  %v2189_v39 = vadd.f32 %v2188_v31, %v2187_v27  ;;  %v2137_v55 = vadd.f32 %v2136_v58, %v2135_v11  ;;  %v5001_v56 = vadd.f32 %v2145_v36, %v2144_v9 }
 0x29e   :  { %v2162_v54 = vadd.f32 %v2161_v43, %v2160_v38  ;;  %v2194_v7 = vadd.f32 %v2193_v57, %v2192_v37  ;;  %v2201_v47 = vsel %vm64_vm0, %v4965_v50, 0.0  ;;  %v2202_v32 = vsel %vm64_vm0, %v4968_v44, 0.0 }
 0x29f   :  { %v2179_v0 = vrot.slane %v2178_v45, 2  ;;  %v2190_v16 = vrot.slane %v2189_v39, 1  ;;  %v5007_v21 = vadd.f32 %v2154_v60, %v2153_v26  ;;  %v2203_v10 = vadd.f32 %v2202_v32, %v2201_v47 }
 0x2a0   :  { %v2195_v29 = vrot.slane %v2194_v7, 4  ;;  %v2210_v51 = vsel %vm64_vm0, %v2108_v8, 0.0  ;;  %v2163_v41 = vrot.slane %v2162_v54, 1  ;;  %v5010_v46 = vadd.f32 %v2172_v1, %v2171_v5 }
 0x2a1   :  { %v2211_v30 = vsel %vm64_vm0, %v2109_v3, 0.0  ;;  %v2219_v40 = vsel %vm64_vm0, %v2110_v53, 0.0  ;;  %v2180_v6 = vadd.f32 %v2179_v0, %v2178_v45  ;;  %v2204_v20 = vrot.slane %v2203_v10, 4 }
 0x2a2   :  { %v2196_v14 = vadd.f32 %v2195_v29, %v2194_v7  ;;  %v2212_v50 = vadd.f32 %v2211_v30, %v2210_v51  ;;  %v5014_v22 = vadd.f32 %v2190_v16, %v2189_v39  ;;  %v2220_v44 = vsel %vm64_vm0, %v2111_v42, 0.0 }
 0x2a3   :  { %v2231_v49 = vrot.slane %v4936_v35, 4  ;;  %v2237_v8 = vsel %vm64_vm0, %v4889_v12, 0.0  ;;  %v2205_v63 = vadd.f32 %v2204_v20, %v2203_v10  ;;  %v2221_v15 = vadd.f32 %v2220_v44, %v2219_v40 }
 0x2a4   :  { %v2197_v48 = vrot.slane %v2196_v14, 2  ;;  %v2213_v13 = vrot.slane %v2212_v50, 4  ;;  %v2164_v3 = vadd.f32 %v2163_v41, %v2162_v54  ;;  %v2238_v11 = vsel %vm64_vm0, %v4893_v62, 0.0 }
 0x2a5   :  { %v2232_v59 = vadd.f32 %v2231_v49, %v4936_v35  ;;  %v2246_v28 = vsel %vm64_vm0, %v4897_v2, 0.0  ;;  %v2206_v9 = vrot.slane %v2205_v63, 2  ;;  %v2222_v25 = vrot.slane %v2221_v15, 4 }
 0x2a6   :  { %v2198_v61 = vadd.f32 %v2197_v48, %v2196_v14  ;;  %v2214_v34 = vadd.f32 %v2213_v13, %v2212_v50  ;;  %v2239_v52 = vadd.f32 %v2238_v11, %v2237_v8  ;;  %v2247_v12 = vsel %vm64_vm0, %v4901_v4, 0.0 }
 0x2a7   :  { %v2233_v23 = vrot.slane %v2232_v59, 2  ;;  %v2255_v58 = vsel %vm64_vm0, %v4911_v18, 0.0  ;;  %v2207_v35 = vadd.f32 %v2206_v9, %v2205_v63  ;;  %v2223_v36 = vadd.f32 %v2222_v25, %v2221_v15 }
 0x2a8   :  { %v2199_v24 = vrot.slane %v2198_v61, 1  ;;  %v2215_v27 = vrot.slane %v2214_v34, 2  ;;  %v2240_v26 = vrot.slane %v2239_v52, 4  ;;  %v2248_v38 = vadd.f32 %v2247_v12, %v2246_v28 }
 0x2a9   :  { %v2234_v62 = vadd.f32 %v2233_v23, %v2232_v59  ;;  %v2256_v2 = vsel %vm64_vm0, %v4919_v19, 0.0  ;;  %v2208_v53 = vrot.slane %v2207_v35, 1  ;;  %v2224_v17 = vrot.slane %v2223_v36, 2 }
 0x2aa   :  { %v2200_v5 = vadd.f32 %v2199_v24, %v2198_v61  ;;  %v2216_v42 = vadd.f32 %v2215_v27, %v2214_v34  ;;  %v2181_v31 = vrot.slane %v2180_v6, 1  ;;  %v2241_v60 = vadd.f32 %v2240_v26, %v2239_v52  ;;  %v5500_v34 = vld [vmem:[#allocation7_spill] sm:$0xff] }
 0x2ab   :  { %v2249_v4 = vrot.slane %v2248_v38, 4  ;;  %v2257_v43 = vadd.f32 %v2256_v2, %v2255_v58  ;;  %v2209_v1 = vadd.f32 %v2208_v53, %v2207_v35  ;;  %v2225_v45 = vadd.f32 %v2224_v17, %v2223_v36  ;;  %v3068_v36 = vld [vmem:[%s5153_s0] sm:$0xff]  ;;  %v3069_v2 = vld [vmem:[%s5153_s0 + $0x8] sm:$0xff]  ;;  %v3070_v53 = vld [vmem:[%s5153_s0 + $0x10] sm:$0xff] }
 0x2ac   :  { %v2217_v18 = vrot.slane %v2216_v42, 1  ;;  %v2280_v39 = vsel %vm1189_vm6, %v2137_v55, %v4995_v33  ;;  %v2235_v37 = vrot.slane %v2234_v62, 1  ;;  %v2242_v57 = vrot.slane %v2241_v60, 2 }
 0x2ad   :  { %v2250_v54 = vadd.f32 %v2249_v4, %v2248_v38  ;;  %v2258_v7 = vrot.slane %v2257_v43, 4  ;;  %v2226_v19 = vrot.slane %v2225_v45, 1  ;;  %v2281_v16 = vsel %vm1191_vm7, %v5001_v56, %v2280_v39 }
 0x2ae   :  { %v2218_v0 = vadd.f32 %v2217_v18, %v2216_v42  ;;  %v2287_v47 = vsel %vm1189_vm6, %v2209_v1, %v2200_v5  ;;  %v2243_v32 = vadd.f32 %v2242_v57, %v2241_v60  ;;  %v2282_v51 = vsel %vm1193_vm8, %v5007_v21, %v2281_v16  ;;  %v3071_v60 = vld [vmem:[%s5153_s0 + $0x18] sm:$0xff] }
 0x2af   :  { %v2251_v29 = vrot.slane %v2250_v54, 2  ;;  %v2259_v10 = vadd.f32 %v2258_v7, %v2257_v43  ;;  %v2182_v41 = vadd.f32 %v2181_v31, %v2180_v6  ;;  %v2227_v30 = vadd.f32 %v2226_v19, %v2225_v45 }
 0x2b0   :  { %v2283_v33 = vsel %vm1195_vm9, %v2164_v3, %v2282_v51  ;;  %v2288_v55 = vsel %vm1191_vm7, %v2218_v0, %v2287_v47  ;;  %v2244_v40 = vrot.slane %v2243_v32, 1  ;;  %v2236_v50 = vadd.f32 %v2235_v37, %v2234_v62 }
 0x2b1   :  { %v2252_v14 = vadd.f32 %v2251_v29, %v2250_v54  ;;  %v2260_v20 = vrot.slane %v2259_v10, 2  ;;  %v2284_v56 = vsel %vm1197_vm10, %v5010_v46, %v2283_v33  ;;  %v2289_v49 = vsel %vm1193_vm8, %v2227_v30, %v2288_v55 }
 0x2b2   :  { %v2285_v44 = vsel %vm1199_vm11, %v2182_v41, %v2284_v56  ;;  %v2245_v8 = vadd.f32 %v2244_v40, %v2243_v32  ;;  %v2290_v63 = vsel %vm1195_vm9, %v2236_v50, %v2289_v49  ;;  %v2846_v40 = vld [vmem:[%s5158_s5] sm:$0xff]  }
 0x2b3   :  { %v2253_v48 = vrot.slane %v2252_v14, 1  ;;  %v2261_v21 = vadd.f32 %v2260_v20, %v2259_v10  ;;  %v2286_v6 = vsel %vm1201_vm12, %v5014_v22, %v2285_v44  ;;  %v5056_v22 = vld [vmem:[%s5161_s8] sm:$0x3f]  ;;  %2811 = vmatprep.subr.bf16.mxu0 %v2846_v40 }
 0x2b4   :  { %2297 = vst.msk [vmem:[#allocation3 + $0x10] sm:$0xff] %vm64_vm0, %v2286_v6  ;;  %v2291_v3 = vsel %vm1197_vm10, %v2245_v8, %v2290_v63  ;;  %v2312_v25 = vrot.slane %v5056_v22, %v5500_v34  ;;  %2812 = vmatpush3.bf16.msra.mxu0 %v2846_v40  ;;  %v5502_v34 = vld [vmem:[#allocation9_spill] sm:$0xff] }
 0x2b5   :  { %v2254_v13 = vadd.f32 %v2253_v48, %v2252_v14  ;;  %v2262_v15 = vrot.slane %v2261_v21, 1  ;;  %v2847_v14 = vld [vmem:[%s5158_s5 + $0x8] sm:$0xff]  }
 0x2b6   :  { %2813 = vmatprep.subr.bf16.mxu0 %v2847_v14 }
 0x2b7   :  { %v2263_v46 = vadd.f32 %v2262_v15, %v2261_v21  ;;  %v2292_v59 = vsel %vm1199_vm11, %v2254_v13, %v2291_v3  ;;  %v5501_v3 = vld [vmem:[#allocation8_spill] sm:$0xff] }
 0x2b8   :  { %2814 = vmatpush3.bf16.msra.mxu0 %v2847_v14 }
 0x2b9   :  { %v2293_v11 = vsel %vm1201_vm12, %v2263_v46, %v2292_v59  ;;  %v2440_v46 = vrot.slane %v5056_v22, %v5501_v3 }
 0x2ba   :  { %2298 = vst.msk [vmem:[#allocation3 + $0x18] sm:$0xff] %vm64_vm0, %v2293_v11 }
 0x2bb   :  { %v2301_v28 = vld [vmem:[#allocation3 + $0x10] sm:$0xff] }
 0x2c1   :  { %v2302_v61 = vld [vmem:[#allocation3 + $0x18] sm:$0xff] }
 0x2c2   :  { %v2304_v9 = vpack.c.bf16 %v2302_v61, %v2301_v28 }
 0x2c4   :  { %2808 = vmatmul.mubr.msk.bf16.vlgmr.msra.gmra.mrb[0].mxu1 %vm64_vm0, %v2304_v9 }
 0x397   :  { %v2809_v23 = vpop.f32.mrb[0].mxu1 }
 0x398   :  { %v2365_v52 = vpop.f32.mrb[1].mxu1  ;;  %v2374_v12 = vadd.f32 %v2809_v23, %v2312_v25 }
 0x399   :  { %v2366_v58 = vadd.f32 %v2365_v52, %v2312_v25  ;;  %v2810_v24 = vpop.f32.mrb[2].mxu1 }
 0x39a   :  { %v2368_v35 = vpop.f32.mrb[3].mxu1  ;;  %v2377_v26 = vadd.f32 %v2810_v24, %v2312_v25  ;;  %v2382_v42 = vadd.f32 %v3070_v53, %v2374_v12  ;;  %v2848_v53 = vld [vmem:[%s5159_s6] sm:$0xff]  }
 0x39b   :  { %v2369_v27 = vadd.f32 %v2368_v35, %v2312_v25  ;;  %v2380_v62 = vadd.f32 %v3068_v36, %v2366_v58  ;;  %v2448_v25 = vrot.slane %v5056_v22, %v5502_v34  ;;  %2819 = vmatprep.subr.bf16.mxu1 %v2848_v53 }
 0x39c   :  { %v2390_v31 = vsel %vm64_vm0, %v2382_v42, 0.0  ;;  %v2383_v4 = vadd.f32 %v3071_v60, %v2377_v26  ;;  %2820 = vmatpush3.bf16.msra.mxu1 %v2848_v53  ;;  %v2766_v60 = vld [vmem:[%s5160_s7] ss:$0 sm:$0xff] }
 0x39d   :  { %v2384_v38 = vsel %vm64_vm0, %v2380_v62, 0.0  ;;  %v2381_v5 = vadd.f32 %v3069_v2, %v2369_v27 }
 0x39e   :  { %2385 = vadd.xlane.f32.xlu0 %v2384_v38  ;;  %v2393_v43 = vsel %vm64_vm0, %v2383_v4, 0.0 }
 0x39f   :  { %v2387_v17 = vsel %vm64_vm0, %v2381_v5, 0.0 }
 0x3a0   :  { %2388 = vadd.xlane.f32.xlu1 %v2387_v17  ;;  %v2850_v17 = vld [vmem:[%s5159_s6 + $0x10] sm:$0xff]  }
 0x3a2   :  { %2391 = vadd.xlane.f32.xlu0 %v2390_v31  ;;  %v2851_v31 = vld [vmem:[%s5159_s6 + $0x18] sm:$0xff]  }
 0x3a6   :  { %2394 = vadd.xlane.f32.xlu0 %v2393_v43 }
 0x42b   :  { %v2386_v1 = vpop.xlane.xlu0 %2385 }
 0x42c   :  { %v2397_v18 = vmul.f32 0.03125, %v2386_v1 }
 0x42d   :  { %v2389_v45 = vpop.xlane.xlu1 %2388 }
 0x42e   :  { %v2401_v39 = vsub.f32 %v2380_v62, %v2397_v18  ;;  %v2398_v37 = vmul.f32 0.03125, %v2389_v45 }
 0x42f   :  { %v2392_v57 = vpop.xlane.xlu0 %2391 }
 0x430   :  { %v2402_v54 = vsub.f32 %v2381_v5, %v2398_v37  ;;  %v2399_v7 = vmul.f32 0.03125, %v2392_v57  ;;  %v2405_v0 = vmul.f32 %v2401_v39, %v2401_v39 }
 0x432   :  { %v2403_v19 = vsub.f32 %v2382_v42, %v2399_v7  ;;  %v2409_v16 = vsel %vm64_vm0, %v2405_v0, 0.0  ;;  %v2406_v47 = vmul.f32 %v2402_v54, %v2402_v54  ;;  %v2849_v42 = vld [vmem:[%s5159_s6 + $0x8] sm:$0xff]   ;;  %s3100_s6 = smov [#allocation4]  }
 0x433   :  { %2410 = vadd.xlane.f32.xlu1 %v2409_v16  ;;  %v2395_v32 = vpop.xlane.xlu0 %2394  ;;  %2821 = vmatprep.subr.bf16.mxu1 %v2849_v42  ;;  %s2744_s7 = sshll.u32 %s3100_s6, 4  ;;  %s2745_s7 = int_to_ptr.vmem [resolvable:$true] %s2744_s7 }
 0x434   :  { %v2400_v29 = vmul.f32 0.03125, %v2395_v32  ;;  %v2412_v10 = vsel %vm64_vm0, %v2406_v47, 0.0  ;;  %v2407_v51 = vmul.f32 %v2403_v19, %v2403_v19  ;;  %2822 = vmatpush3.bf16.msra.mxu1 %v2849_v42  ;;  %s3072_s30 = scalar_lea.vmem %s2745_s7, 512  ;;  %p3077_p1 = scmp.lt.s32.totalorder %s2745_s7, %s2745_s7 }
 0x435   :  { %2413 = vadd.xlane.f32.xlu0 %v2412_v10  ;;  %2823 = vmatprep.subr.bf16.mxu1 %v2850_v17  ;;  %p3073_p0 = scmp.ne.s32.totalorder %s2745_s7, %s3072_s30  ;;  %p3078_p2 = scmp.lt.s32.totalorder %s3072_s30, %s3072_s30 }
 0x436   :  { %v2404_v41 = vsub.f32 %v2383_v4, %v2400_v29  ;;  %v2415_v30 = vsel %vm64_vm0, %v2407_v51, 0.0 }
 0x437   :  { %2416 = vadd.xlane.f32.xlu1 %v2415_v30  ;;  %p3079_p3 = por %p3078_p2, %p3077_p1 }
 0x438   :  { %v2408_v33 = vmul.f32 %v2404_v41, %v2404_v41  ;;  %2824 = vmatpush3.bf16.msra.mxu1 %v2850_v17 }
 0x439   :  { %2825 = vmatprep.subr.bf16.mxu1 %v2851_v31  ;;  %p3080_p4 = pnand %p3079_p3, %p3073_p0 }
 0x43a   :  { %v2418_v55 = vsel %vm64_vm0, %v2408_v33, 0.0 }
 0x43b   :  { %2419 = vadd.xlane.f32.xlu0 %v2418_v55 }
 0x43c   :  { %2826 = vmatpush3.bf16.msra.mxu1 %v2851_v31 }
 0x4c0   :  { %v2411_v20 = vpop.xlane.xlu1 %2410 }
 0x4c1   :  { %v2421_v56 = vmul.f32 0.03125, %v2411_v20 }
 0x4c2   :  { %v2414_v50 = vpop.xlane.xlu0 %2413 }
 0x4c3   :  { %v2425_v44 = vadd.f32 1e-12, %v2421_v56  ;;  %v2422_v49 = vmul.f32 0.03125, %v2414_v50 }
 0x4c4   :  { %v2417_v8 = vpop.xlane.xlu1 %2416 }
 0x4c5   :  { %3044 = vrsqrt.f32 %v2425_v44  ;;  %v2426_v48 = vadd.f32 1e-12, %v2422_v49  ;;  %v2423_v21 = vmul.f32 0.03125, %v2417_v8 }
 0x4c7   :  { %3046 = vrsqrt.f32 %v2426_v48  ;;  %v2427_v6 = vadd.f32 1e-12, %v2423_v21 }
 0x4c8   :  { %v2420_v63 = vpop.xlane.xlu0 %2419 }
 0x4c9   :  { %3048 = vrsqrt.f32 %v2427_v6  ;;  %v2424_v13 = vmul.f32 0.03125, %v2420_v63 }
 0x4cb   :  { %v2428_v15 = vadd.f32 1e-12, %v2424_v13 }
 0x4cd   :  { %3050 = vrsqrt.f32 %v2428_v15 }
 0x4cf   :  { %v3045_v59 = vpop.eup %3044 }
 0x4d0   :  { %v2433_v11 = vmul.f32 %v3045_v59, %v2401_v39 }
 0x4d1   :  { %v3047_v28 = vpop.eup %3046 }
 0x4d2   :  { %v2434_v61 = vmul.f32 %v3047_v28, %v2402_v54  ;;  %v2441_v9 = vmul.f32 %v2440_v46, %v2433_v11 }
 0x4d3   :  { %v3049_v23 = vpop.eup %3048 }
 0x4d4   :  { %v2435_v52 = vmul.f32 %v3049_v23, %v2403_v19  ;;  %v2442_v12 = vmul.f32 %v2440_v46, %v2434_v61  ;;  %v5090_v58 = vadd.f32 %v2448_v25, %v2441_v9 }
 0x4d6   :  { %v5092_v24 = vadd.f32 %v2448_v25, %v2442_v12  ;;  %v2443_v27 = vmul.f32 %v2440_v46, %v2435_v52  ;;  %v5503_v52 = vld [vmem:[#allocation10_spill] sm:$0xff] }
 0x4d7   :  { %v3051_v35 = vpop.eup %3050  ;;  %v2582_v12 = vrot.slane %v5056_v22, %v5503_v52 }
 0x4d8   :  { %v2436_v36 = vmul.f32 %v3051_v35, %v2404_v41  ;;  %v2453_v62 = vpack.c.bf16 %v5092_v24, %v5090_v58  ;;  %v5097_v38 = vadd.f32 %v2448_v25, %v2443_v27 }
 0x4da   :  { %v2444_v26 = vmul.f32 %v2440_v46, %v2436_v36  ;;  %2815 = vmatprep.mubr.msk.bf16.mxu0 %vm64_vm0, %v2453_v62 }
 0x4dc   :  { %v5099_v2 = vadd.f32 %v2448_v25, %v2444_v26 }
 0x4de   :  { %v2454_v5 = vpack.c.bf16 %v5099_v2, %v5097_v38 }
 0x4e0   :  { %2816 = vmatmul.mubr.msk.bf16.vlgmr.msra.gmra.mrb[4].mxu0 %vm64_vm0, %v2454_v5 }
 0x5b3   :  { %v2817_v4 = vpop.f32.mrb[4].mxu0 }
 0x5b4   :  { %v2527_v43 = vadd.f32 %v2817_v4, %v2766_v60  ;;  %v2518_v1 = vpop.f32.mrb[5].mxu0 }
 0x5b5   :  { %v2519_v18 = vadd.f32 %v2766_v60, %v2518_v1  ;;  %v2818_v45 = vpop.f32.mrb[6].mxu0 }
 0x5b6   :  { %v2535_v39 = vmul.f32 %v2527_v43, %v2527_v43  ;;  %v2530_v37 = vadd.f32 %v2818_v45, %v2766_v60  ;;  %v2521_v57 = vpop.f32.mrb[7].mxu0 }
 0x5b7   :  { %v2533_v54 = vmul.f32 %v2519_v18, %v2519_v18  ;;  %v2522_v7 = vadd.f32 %v2766_v60, %v2521_v57 }
 0x5b8   :  { %v2539_v0 = vmul.f32 %v2535_v39, %v2527_v43  ;;  %v2536_v19 = vmul.f32 %v2530_v37, %v2530_v37 }
 0x5b9   :  { %v2537_v16 = vmul.f32 %v2533_v54, %v2519_v18  ;;  %v2534_v47 = vmul.f32 %v2522_v7, %v2522_v7 }
 0x5ba   :  { %v2543_v32 = vmul.f32 0.044715, %v2539_v0  ;;  %v2540_v29 = vmul.f32 %v2536_v19, %v2530_v37 }
 0x5bb   :  { %v2541_v10 = vmul.f32 0.044715, %v2537_v16  ;;  %v2538_v51 = vmul.f32 %v2534_v47, %v2522_v7 }
 0x5bc   :  { %v2547_v41 = vadd.f32 %v2543_v32, %v2527_v43  ;;  %v2544_v30 = vmul.f32 0.044715, %v2540_v29 }
 0x5bd   :  { %v2545_v33 = vadd.f32 %v2541_v10, %v2519_v18  ;;  %v2542_v55 = vmul.f32 0.044715, %v2538_v51 }
 0x5be   :  { %v2551_v40 = vmul.f32 0.7978846, %v2547_v41  ;;  %v2548_v14 = vadd.f32 %v2544_v30, %v2530_v37 }
 0x5bf   :  { %v2549_v20 = vmul.f32 0.7978846, %v2545_v33  ;;  %v2546_v56 = vadd.f32 %v2542_v55, %v2522_v7 }
 0x5c0   :  { %3052 = vtanh.f32 %v2551_v40  ;;  %v2552_v50 = vmul.f32 0.7978846, %v2548_v14 }
 0x5c1   :  { %3054 = vtanh.f32 %v2549_v20  ;;  %v2550_v44 = vmul.f32 0.7978846, %v2546_v56 }
 0x5c2   :  { %3056 = vtanh.f32 %v2552_v50 }
 0x5c3   :  { %3058 = vtanh.f32 %v2550_v44 }
 0x5ca   :  { %v3053_v49 = vpop.eup %3052 }
 0x5cb   :  { %v3055_v8 = vpop.eup %3054  ;;  %v2559_v48 = vadd.f32 1.0, %v3053_v49 }
 0x5cc   :  { %v3057_v21 = vpop.eup %3056  ;;  %v2557_v6 = vadd.f32 1.0, %v3055_v8 }
 0x5cd   :  { %v3059_v63 = vpop.eup %3058  ;;  %v2563_v13 = vmul.f32 0.5, %v2559_v48  ;;  %v2560_v15 = vadd.f32 1.0, %v3057_v21 }
 0x5ce   :  { %v2561_v3 = vmul.f32 0.5, %v2557_v6  ;;  %v2558_v46 = vadd.f32 1.0, %v3059_v63  ;;  %v5504_v63 = vld [vmem:[#allocation11_spill] sm:$0xff] }
 0x5cf   :  { %v2564_v59 = vmul.f32 0.5, %v2560_v15  ;;  %v2567_v28 = vmul.f32 %v2563_v13, %v2527_v43  ;;  %v2722_v13 = vrot.slane %v5056_v22, %v5504_v63 }
 0x5d0   :  { %v2562_v11 = vmul.f32 0.5, %v2558_v46  ;;  %v2565_v9 = vmul.f32 %v2561_v3, %v2519_v18  ;;  %v5505_v3 = vld [vmem:[#allocation12_spill] sm:$0xff] }
 0x5d1   :  { %v2568_v61 = vmul.f32 %v2564_v59, %v2530_v37  ;;  %v2730_v46 = vrot.slane %v5056_v22, %v5505_v3 }
 0x5d2   :  { %v2566_v34 = vmul.f32 %v2562_v11, %v2522_v7 }
 0x5d3   :  { %v2570_v25 = vpack.c.bf16 %v2568_v61, %v2567_v28 }
 0x5d4   :  { %v2569_v23 = vpack.c.bf16 %v2566_v34, %v2565_v9 }
 0x5d6   :  { %2827 = vmatprep.mubr.msk.bf16.mxu1 %vm2607_vm13, %v2569_v23 }
 0x5d7   :  { %2828 = vmatmul.mubr.msk.bf16.vlgmr.msra.gmra.mrb[4].mxu1 %vm2607_vm13, %v2570_v25 }
 0x6aa   :  { %v2829_v35 = vpop.f32.mrb[4].mxu1 }
 0x6ab   :  { %v2648_v27 = vpop.f32.mrb[5].mxu1  ;;  %v2657_v36 = vadd.f32 %v2829_v35, %v2582_v12 }
 0x6ac   :  { %v2649_v62 = vadd.f32 %v2648_v27, %v2582_v12  ;;  %v2830_v26 = vpop.f32.mrb[6].mxu1 }
 0x6ad   :  { %v2651_v5 = vpop.f32.mrb[7].mxu1  ;;  %v2660_v53 = vadd.f32 %v2830_v26, %v2582_v12  ;;  %v2665_v4 = vadd.f32 %v2657_v36, %v5097_v38 }
 0x6ae   :  { %v2652_v42 = vadd.f32 %v2651_v5, %v2582_v12  ;;  %v2663_v17 = vadd.f32 %v2649_v62, %v5090_v58 }
 0x6af   :  { %v2666_v1 = vadd.f32 %v2660_v53, %v5099_v2  ;;  %v2673_v18 = vsel %vm64_vm0, %v2665_v4, 0.0 }
 0x6b0   :  { %v2667_v31 = vsel %vm64_vm0, %v2663_v17, 0.0  ;;  %v2664_v60 = vadd.f32 %v2652_v42, %v5092_v24 }
 0x6b1   :  { %2668 = vadd.xlane.f32.xlu1 %v2667_v31  ;;  %v2676_v45 = vsel %vm64_vm0, %v2666_v1, 0.0 }
 0x6b2   :  { %v2670_v43 = vsel %vm64_vm0, %v2664_v60, 0.0 }
 0x6b3   :  { %2671 = vadd.xlane.f32.xlu0 %v2670_v43 }
 0x6b5   :  { %2674 = vadd.xlane.f32.xlu1 %v2673_v18 }
 0x6b7   :  { %2677 = vadd.xlane.f32.xlu0 %v2676_v45 }
 0x73e   :  { %v2669_v39 = vpop.xlane.xlu1 %2668 }
 0x73f   :  { %v2679_v58 = vmul.f32 0.03125, %v2669_v39 }
 0x740   :  { %v2672_v37 = vpop.xlane.xlu0 %2671 }
 0x741   :  { %v2683_v57 = vsub.f32 %v2663_v17, %v2679_v58  ;;  %v2680_v54 = vmul.f32 0.03125, %v2672_v37 }
 0x742   :  { %v2675_v24 = vpop.xlane.xlu1 %2674 }
 0x743   :  { %v2684_v7 = vsub.f32 %v2664_v60, %v2680_v54  ;;  %v2681_v38 = vmul.f32 0.03125, %v2675_v24  ;;  %v2687_v0 = vmul.f32 %v2683_v57, %v2683_v57 }
 0x744   :  { %v2678_v19 = vpop.xlane.xlu0 %2677 }
 0x745   :  { %v2685_v16 = vsub.f32 %v2665_v4, %v2681_v38  ;;  %v2682_v47 = vmul.f32 0.03125, %v2678_v19  ;;  %v2691_v2 = vsel %vm64_vm0, %v2687_v0, 0.0  ;;  %v2688_v32 = vmul.f32 %v2684_v7, %v2684_v7 }
 0x746   :  { %2692 = vadd.xlane.f32.xlu1 %v2691_v2 }
 0x747   :  { %v2686_v29 = vsub.f32 %v2666_v1, %v2682_v47  ;;  %v2694_v10 = vsel %vm64_vm0, %v2688_v32, 0.0  ;;  %v2689_v51 = vmul.f32 %v2685_v16, %v2685_v16 }
 0x748   :  { %2695 = vadd.xlane.f32.xlu0 %v2694_v10 }
 0x749   :  { %v2697_v41 = vsel %vm64_vm0, %v2689_v51, 0.0  ;;  %v2690_v30 = vmul.f32 %v2686_v29, %v2686_v29 }
 0x74a   :  { %2698 = vadd.xlane.f32.xlu1 %v2697_v41 }
 0x74b   :  { %v2700_v33 = vsel %vm64_vm0, %v2690_v30, 0.0 }
 0x74c   :  { %2701 = vadd.xlane.f32.xlu0 %v2700_v33 }
 0x7d3   :  { %v2693_v55 = vpop.xlane.xlu1 %2692 }
 0x7d4   :  { %v2703_v40 = vmul.f32 0.03125, %v2693_v55 }
 0x7d5   :  { %v2696_v14 = vpop.xlane.xlu0 %2695 }
 0x7d6   :  { %v2707_v20 = vadd.f32 1e-12, %v2703_v40  ;;  %v2704_v56 = vmul.f32 0.03125, %v2696_v14 }
 0x7d7   :  { %v2699_v50 = vpop.xlane.xlu1 %2698 }
 0x7d8   :  { %3060 = vrsqrt.f32 %v2707_v20  ;;  %v2708_v44 = vadd.f32 1e-12, %v2704_v56  ;;  %v2705_v49 = vmul.f32 0.03125, %v2699_v50 }
 0x7d9   :  { %v2702_v8 = vpop.xlane.xlu0 %2701 }
 0x7da   :  { %3062 = vrsqrt.f32 %v2708_v44  ;;  %v2709_v48 = vadd.f32 1e-12, %v2705_v49  ;;  %v2706_v21 = vmul.f32 0.03125, %v2702_v8 }
 0x7dc   :  { %3064 = vrsqrt.f32 %v2709_v48  ;;  %v2710_v6 = vadd.f32 1e-12, %v2706_v21 }
 0x7de   :  { %3066 = vrsqrt.f32 %v2710_v6 }
 0x7e2   :  { %v3061_v15 = vpop.eup %3060 }
 0x7e3   :  { %v2715_v59 = vmul.f32 %v3061_v15, %v2683_v57 }
 0x7e4   :  { %v3063_v11 = vpop.eup %3062 }
 0x7e5   :  { %v2723_v28 = vmul.f32 %v2722_v13, %v2715_v59  ;;  %v2716_v61 = vmul.f32 %v3063_v11, %v2684_v7 }
 0x7e6   :  { %v3065_v9 = vpop.eup %3064 }
 0x7e7   :  { %v2731_v34 = vadd.f32 %v2730_v46, %v2723_v28  ;;  %v2724_v25 = vmul.f32 %v2722_v13, %v2716_v61  ;;  %v2717_v23 = vmul.f32 %v3065_v9, %v2685_v16 }
 0x7e8   :  { %v3067_v52 = vpop.eup %3066 }
 0x7e9   :  { %2735 = vst.msk [vmem:[#allocation4] sm:$0xff] %vm64_vm0, %v2731_v34  ;;  %v2732_v12 = vadd.f32 %v2730_v46, %v2724_v25  ;;  %v2725_v35 = vmul.f32 %v2722_v13, %v2717_v23  ;;  %v2718_v27 = vmul.f32 %v3067_v52, %v2686_v29 }
 0x7eb   :  { %2736 = vst.msk [vmem:[#allocation4 + $0x8] sm:$0xff] %vm64_vm0, %v2732_v12  ;;  %v2733_v36 = vadd.f32 %v2730_v46, %v2725_v35  ;;  %v2726_v22 = vmul.f32 %v2722_v13, %v2718_v27 }
 0x7ed   :  { %2737 = vst.msk [vmem:[#allocation4 + $0x10] sm:$0xff] %vm64_vm0, %v2733_v36  ;;  %v2734_v62 = vadd.f32 %v2730_v46, %v2726_v22 }
 0x7ef   :  { %2738 = vst.msk [vmem:[#allocation4 + $0x18] sm:$0xff] %vm64_vm0, %v2734_v62 }
 0x7f0   :  { %3083 = shalt.err (!%p3080_p4)
}
 0x7f1   :  { %s3084_s12 = scalar_lea.hbm %s5162_s9, 512 }
 0x7f2   :  { %p3085_p5 = scmp.ne.s32.totalorder %s5162_s9, %s3084_s12  ;;  %p3088_p6 = scmp.lt.u32.totalorder %s3084_s12, %s5162_s9 }
 0x7f4   :  { %p3090_p7 = pnand %p3088_p6, %p3085_p5 }
 0x7f6   :  { %3093 = shalt.err (!%p3090_p7)
}
 0x7f7   :  { %s3101_s8 = smov 128   ;;  %s3102_s16 = smov 8  }
 0x7f8   :  { %2750 = dma.vmem_to_hbm [thread:$0]  %s2745_s7, 512, %s5162_s9, [#allocation5], %s3101_s8, %s3101_s8, %s3102_s16  }
 0x7f9   :  { %3094 = dma.done.wait [#allocation5], 512  }
 0x7fa   :  { %3095 = vsyncadd [#allocation5], 4294966784 }
 0x7fb   :  { %2754 = vsyncpa [#allocation5], 1 }

</bundles_post_ra>
